<compile_context>
chip_gen: v6e
topology: v6e:2x2x1
jax: 0.10.0
libtpu: 0.0.40
codegen_flags: <defaults>
</compile_context>

<pallas_src>
import math

import jax
import jax.numpy as jnp
from jax.experimental import pallas as pl
from jax.experimental.pallas import tpu as pltpu


def _minplus_kernel(xg_ref, wt_ref, o_ref, acc_ref):
    """One (8*ng batch rows, tn out-features) output block, reduced over the K grid axis.

    xg_ref : (ng, tk, 8)   grouped X^T block  (sublane -> k, lane -> row-in-group)
    wt_ref : (tk, tn)      W^T block          (sublane -> k, lane -> out-feature)
    o_ref  : (8*ng, tn)    output block
    acc_ref: (8*ng, tn) f32 running-min accumulator (persists across the K grid axis)
    """
    ng, tk, _ = xg_ref.shape
    tn = wt_ref.shape[1]
    # K-chunk size: keep the transient (kc, tn) z tile at <= ~32 vregs (128 KiB f32).
    kc = min(tk, 128, max(8, ((32 * 1024) // tn) // 8 * 8))

    k_step = pl.program_id(2)

    @pl.when(k_step == 0)
    def _init():
        acc_ref[...] = jnp.full_like(acc_ref, jnp.inf)

    for ig in range(ng):                      # static unroll over batch groups of 8
        for b in range(8):                    # static unroll over the rows of a group
            best = None
            for k0 in range(0, tk, kc):       # static chunking of the K tile
                kz = min(kc, tk - k0)
                xcol = xg_ref[ig, k0:k0 + kz, b:b + 1]       # (kz, 1) static slice
                z = wt_ref[k0:k0 + kz, :] + xcol             # (kz, tn): VPU add (lane-bcast x)
                m = jnp.min(z, axis=0, keepdims=True)        # sublane reduce -> (1, tn)
                best = m if best is None else jnp.minimum(best, m)
            r = ig * 8 + b
            acc_ref[r:r + 1, :] = jnp.minimum(acc_ref[r:r + 1, :],
                                              best.astype(jnp.float32))

    @pl.when(k_step == pl.num_programs(2) - 1)
    def _store():
        o_ref[...] = acc_ref[...].astype(o_ref.dtype)


def leaky_min_plus(x, w, *, tn=128, tk=256, batch_groups_per_block=1):
    """Y[b, j] = min_i (x[b, i] + w[j, i]).   x: (B, K), w: (N, K) -> (B, N)."""
    B, K = x.shape
    N, K2 = w.shape
    assert K == K2, "in_features mismatch"
    assert tn % 128 == 0, "tn must be lane-dense (multiple of 128)"
    assert tk % 8 == 0, "tk must be a multiple of the sublane width (8)"
    ng = int(batch_groups_per_block)
    gb = 8 * ng                                   # batch rows per output block

    # Clamp tiles to the (rounded-up) problem size to avoid pointless padding.
    tk = min(tk, pl.cdiv(K, 8) * 8)
    tn = min(tn, pl.cdiv(N, 128) * 128)

    Bp = pl.cdiv(B, gb) * gb
    Kp = pl.cdiv(K, tk) * tk
    Np = pl.cdiv(N, tn) * tn

    # K tail: pad X with +inf (never wins the min) and W with 0 -> inf + 0 = inf.
    # Padded batch rows / out-features produce junk that is sliced away below.
    if (Bp, Kp) != (B, K):
        x = jnp.pad(x, ((0, Bp - B), (0, Kp - K)), constant_values=jnp.inf)
    if (Np, Kp) != (N, K):
        w = jnp.pad(w, ((0, Np - N), (0, Kp - K)))

    # Group batch by 8 and put K on the sublane axis: xg[g, k, i] = x[8*g + i, k].
    xg = x.reshape(Bp // 8, 8, Kp).transpose(0, 2, 1)        # (Bp/8, Kp, 8)
    wt = w.T                                                 # (Kp, Np); W can be stored pre-transposed

    grid = (Bp // gb, Np // tn, Kp // tk)

    out = pl.pallas_call(
        _minplus_kernel,
        out_shape=jax.ShapeDtypeStruct((Bp, Np), x.dtype),
        grid_spec=pltpu.PrefetchScalarGridSpec(
            num_scalar_prefetch=0,
            grid=grid,
            in_specs=[
                pl.BlockSpec((ng, tk, 8), lambda g, j, k: (g, k, 0)),   # grouped X^T
                pl.BlockSpec((tk, tn), lambda g, j, k: (k, j)),         # W^T tile
            ],
            out_specs=pl.BlockSpec((gb, tn), lambda g, j, k: (g, j)),
            scratch_shapes=[pltpu.VMEM((gb, tn), jnp.float32)],
        ),
        compiler_params=pltpu.CompilerParams(
            dimension_semantics=("parallel", "parallel", "arbitrary"),
            vmem_limit_bytes=32 * 1024 * 1024,
        ),
        cost_estimate=pl.CostEstimate(
            flops=2 * B * N * K,                  # one add + one min per (b, j, i)
            transcendentals=0,
            bytes_accessed=x.dtype.itemsize * (B * K + N * K + B * N),
        ),
    )(xg, wt)
    return out[:B, :N]


if __name__ == "__main__":
    # Small shapes consistent with the module, e.g. LeakyMinPlus(512, 256) on a batch of 16.
    B, in_features, out_features = 16, 512, 256

    key = jax.random.PRNGKey(0)
    kx, kw = jax.random.split(key)

    # Deterministic xavier_uniform init for W (out_features, in_features), as in __init__.
    bound = math.sqrt(6.0 / (in_features + out_features))
    W = jax.random.uniform(
        kw, (out_features, in_features), minval=-bound, maxval=bound, dtype=jnp.float32
    )
    X = jax.random.normal(kx, (B, in_features), dtype=jnp.float32)

    # leaky_factor=1.0, is_random=False, is_tracking=False (defaults): the forward
    # pass is the plain tropical min-plus map; those parameters only affect backward.
    Y = leaky_min_plus(X, W, tn=128, tk=256, batch_groups_per_block=2)
    Y = jax.block_until_ready(Y)

    # Pure-JAX reference check.
    Y_ref = jnp.min(X[:, None, :] + W[None, :, :], axis=-1)
    assert Y.shape == (B, out_features)
    assert jnp.allclose(Y, Y_ref, atol=1e-5), "mismatch vs reference"

    print("KERNEL_OK")
</pallas_src>

<mosaic_0001>
module attributes {stable_mosaic.version = 11 : i64} {
  func.func @_minplus_kernel(%arg0: i32, %arg1: i32, %arg2: i32, %arg3: memref<2x256x8xf32, #tpu.memory_space<vmem>>, %arg4: memref<256x128xf32, #tpu.memory_space<vmem>>, %arg5: memref<16x128xf32, #tpu.memory_space<vmem>>, %arg6: memref<16x128xf32, #tpu.memory_space<vmem>>) attributes {dimension_semantics = [#tpu.dimension_semantics<parallel>, #tpu.dimension_semantics<parallel>, #tpu.dimension_semantics<arbitrary>], iteration_bounds = array<i64: 1, 2, 2>, scalar_prefetch = 0 : i64, scratch_operands = 1 : i64, tpu.core_type = #tpu.core_type<tc>, window_params = [{transform_indices = @transform_0, window_bounds = array<i64: 2, 256, 8>}, {transform_indices = @transform_1, window_bounds = array<i64: 256, 128>}, {transform_indices = @transform_2, window_bounds = array<i64: 16, 128>}]} {
    %c0_i32 = arith.constant 0 : i32
    %0 = arith.cmpi eq, %arg2, %c0_i32 : i32
    %1 = arith.extui %0 : i1 to i32
    %c0_i32_0 = arith.constant 0 : i32
    %2 = arith.cmpi ne, %1, %c0_i32_0 : i32
    scf.if %2 {
      %cst_240 = arith.constant 0x7F800000 : f32
      %294 = vector.broadcast %cst_240 : f32 to vector<16x128xf32>
      %c0_241 = arith.constant 0 : index
      %c0_242 = arith.constant 0 : index
      %295 = vector.load %arg6[%c0_241, %c0_242] : memref<16x128xf32, #tpu.memory_space<vmem>>, vector<16x128xf32>
      tpu.vector_store %arg6[%c0_241, %c0_242], %294 {strides = array<i32>} : memref<16x128xf32, #tpu.memory_space<vmem>>, vector<16x128xf32>,
    } else {
    }
    %c0 = arith.constant 0 : index
    %c0_1 = arith.constant 0 : index
    %c0_2 = arith.constant 0 : index
    %3 = vector.load %arg3[%c0, %c0_1, %c0_2] : memref<2x256x8xf32, #tpu.memory_space<vmem>>, vector<1x128x1xf32>
    %4 = vector.shape_cast %3 : vector<1x128x1xf32> to vector<128x1xf32>
    %c0_3 = arith.constant 0 : index
    %c0_4 = arith.constant 0 : index
    %5 = vector.load %arg4[%c0_3, %c0_4] : memref<256x128xf32, #tpu.memory_space<vmem>>, vector<128x128xf32>
    %6 = vector.broadcast %4 : vector<128x1xf32> to vector<128x128xf32>
    %7 = arith.addf %5, %6 : vector<128x128xf32>
    %cst = arith.constant dense<0x7F800000> : vector<128xf32>
    %8 = vector.multi_reduction <minimumf>, %7, %cst [0] : vector<128x128xf32> to vector<128xf32>
    %9 = vector.shape_cast %8 : vector<128xf32> to vector<1x128xf32>
    %c0_5 = arith.constant 0 : index
    %c128 = arith.constant 128 : index
    %c0_6 = arith.constant 0 : index
    %10 = vector.load %arg3[%c0_5, %c128, %c0_6] : memref<2x256x8xf32, #tpu.memory_space<vmem>>, vector<1x128x1xf32>
    %11 = vector.shape_cast %10 : vector<1x128x1xf32> to vector<128x1xf32>
    %c128_7 = arith.constant 128 : index
    %c0_8 = arith.constant 0 : index
    %12 = vector.load %arg4[%c128_7, %c0_8] : memref<256x128xf32, #tpu.memory_space<vmem>>, vector<128x128xf32>
    %13 = vector.broadcast %11 : vector<128x1xf32> to vector<128x128xf32>
    %14 = arith.addf %12, %13 : vector<128x128xf32>
    %cst_9 = arith.constant dense<0x7F800000> : vector<128xf32>
    %15 = vector.multi_reduction <minimumf>, %14, %cst_9 [0] : vector<128x128xf32> to vector<128xf32>
    %16 = vector.shape_cast %15 : vector<128xf32> to vector<1x128xf32>
    %17 = arith.minimumf %9, %16 : vector<1x128xf32>
    %c0_10 = arith.constant 0 : index
    %c0_11 = arith.constant 0 : index
    %18 = vector.load %arg6[%c0_10, %c0_11] : memref<16x128xf32, #tpu.memory_space<vmem>>, vector<1x128xf32>
    %19 = arith.minimumf %18, %17 : vector<1x128xf32>
    %c0_12 = arith.constant 0 : index
    %c0_13 = arith.constant 0 : index
    %20 = vector.load %arg6[%c0_12, %c0_13] : memref<16x128xf32, #tpu.memory_space<vmem>>, vector<1x128xf32>
    tpu.vector_store %arg6[%c0_12, %c0_13], %19 {strides = array<i32>} : memref<16x128xf32, #tpu.memory_space<vmem>>, vector<1x128xf32>,
    %c0_14 = arith.constant 0 : index
    %c0_15 = arith.constant 0 : index
    %c1 = arith.constant 1 : index
    %21 = vector.load %arg3[%c0_14, %c0_15, %c1] : memref<2x256x8xf32, #tpu.memory_space<vmem>>, vector<1x128x1xf32>
    %22 = vector.shape_cast %21 : vector<1x128x1xf32> to vector<128x1xf32>
    %c0_16 = arith.constant 0 : index
    %c0_17 = arith.constant 0 : index
    %23 = vector.load %arg4[%c0_16, %c0_17] : memref<256x128xf32, #tpu.memory_space<vmem>>, vector<128x128xf32>
    %24 = vector.broadcast %22 : vector<128x1xf32> to vector<128x128xf32>
    %25 = arith.addf %23, %24 : vector<128x128xf32>
    %cst_18 = arith.constant dense<0x7F800000> : vector<128xf32>
    %26 = vector.multi_reduction <minimumf>, %25, %cst_18 [0] : vector<128x128xf32> to vector<128xf32>
    %27 = vector.shape_cast %26 : vector<128xf32> to vector<1x128xf32>
    %c0_19 = arith.constant 0 : index
    %c128_20 = arith.constant 128 : index
    %c1_21 = arith.constant 1 : index
    %28 = vector.load %arg3[%c0_19, %c128_20, %c1_21] : memref<2x256x8xf32, #tpu.memory_space<vmem>>, vector<1x128x1xf32>
    %29 = vector.shape_cast %28 : vector<1x128x1xf32> to vector<128x1xf32>
    %c128_22 = arith.constant 128 : index
    %c0_23 = arith.constant 0 : index
    %30 = vector.load %arg4[%c128_22, %c0_23] : memref<256x128xf32, #tpu.memory_space<vmem>>, vector<128x128xf32>
    %31 = vector.broadcast %29 : vector<128x1xf32> to vector<128x128xf32>
    %32 = arith.addf %30, %31 : vector<128x128xf32>
    %cst_24 = arith.constant dense<0x7F800000> : vector<128xf32>
    %33 = vector.multi_reduction <minimumf>, %32, %cst_24 [0] : vector<128x128xf32> to vector<128xf32>
    %34 = vector.shape_cast %33 : vector<128xf32> to vector<1x128xf32>
    %35 = arith.minimumf %27, %34 : vector<1x128xf32>
    %c1_25 = arith.constant 1 : index
    %c0_26 = arith.constant 0 : index
    %36 = vector.load %arg6[%c1_25, %c0_26] : memref<16x128xf32, #tpu.memory_space<vmem>>, vector<1x128xf32>
    %37 = arith.minimumf %36, %35 : vector<1x128xf32>
    %c1_27 = arith.constant 1 : index
    %c0_28 = arith.constant 0 : index
    %38 = vector.load %arg6[%c1_27, %c0_28] : memref<16x128xf32, #tpu.memory_space<vmem>>, vector<1x128xf32>
    tpu.vector_store %arg6[%c1_27, %c0_28], %37 {strides = array<i32>} : memref<16x128xf32, #tpu.memory_space<vmem>>, vector<1x128xf32>,
    %c0_29 = arith.constant 0 : index
    %c0_30 = arith.constant 0 : index
    %c2 = arith.constant 2 : index
    %39 = vector.load %arg3[%c0_29, %c0_30, %c2] : memref<2x256x8xf32, #tpu.memory_space<vmem>>, vector<1x128x1xf32>
    %40 = vector.shape_cast %39 : vector<1x128x1xf32> to vector<128x1xf32>
    %c0_31 = arith.constant 0 : index
    %c0_32 = arith.constant 0 : index
    %41 = vector.load %arg4[%c0_31, %c0_32] : memref<256x128xf32, #tpu.memory_space<vmem>>, vector<128x128xf32>
    %42 = vector.broadcast %40 : vector<128x1xf32> to vector<128x128xf32>
    %43 = arith.addf %41, %42 : vector<128x128xf32>
    %cst_33 = arith.constant dense<0x7F800000> : vector<128xf32>
    %44 = vector.multi_reduction <minimumf>, %43, %cst_33 [0] : vector<128x128xf32> to vector<128xf32>
    %45 = vector.shape_cast %44 : vector<128xf32> to vector<1x128xf32>
    %c0_34 = arith.constant 0 : index
    %c128_35 = arith.constant 128 : index
    %c2_36 = arith.constant 2 : index
    %46 = vector.load %arg3[%c0_34, %c128_35, %c2_36] : memref<2x256x8xf32, #tpu.memory_space<vmem>>, vector<1x128x1xf32>
    %47 = vector.shape_cast %46 : vector<1x128x1xf32> to vector<128x1xf32>
    %c128_37 = arith.constant 128 : index
    %c0_38 = arith.constant 0 : index
    %48 = vector.load %arg4[%c128_37, %c0_38] : memref<256x128xf32, #tpu.memory_space<vmem>>, vector<128x128xf32>
    %49 = vector.broadcast %47 : vector<128x1xf32> to vector<128x128xf32>
    %50 = arith.addf %48, %49 : vector<128x128xf32>
    %cst_39 = arith.constant dense<0x7F800000> : vector<128xf32>
    %51 = vector.multi_reduction <minimumf>, %50, %cst_39 [0] : vector<128x128xf32> to vector<128xf32>
    %52 = vector.shape_cast %51 : vector<128xf32> to vector<1x128xf32>
    %53 = arith.minimumf %45, %52 : vector<1x128xf32>
    %c2_40 = arith.constant 2 : index
    %c0_41 = arith.constant 0 : index
    %54 = vector.load %arg6[%c2_40, %c0_41] : memref<16x128xf32, #tpu.memory_space<vmem>>, vector<1x128xf32>
    %55 = arith.minimumf %54, %53 : vector<1x128xf32>
    %c2_42 = arith.constant 2 : index
    %c0_43 = arith.constant 0 : index
    %56 = vector.load %arg6[%c2_42, %c0_43] : memref<16x128xf32, #tpu.memory_space<vmem>>, vector<1x128xf32>
    tpu.vector_store %arg6[%c2_42, %c0_43], %55 {strides = array<i32>} : memref<16x128xf32, #tpu.memory_space<vmem>>, vector<1x128xf32>,
    %c0_44 = arith.constant 0 : index
    %c0_45 = arith.constant 0 : index
    %c3 = arith.constant 3 : index
    %57 = vector.load %arg3[%c0_44, %c0_45, %c3] : memref<2x256x8xf32, #tpu.memory_space<vmem>>, vector<1x128x1xf32>
    %58 = vector.shape_cast %57 : vector<1x128x1xf32> to vector<128x1xf32>
    %c0_46 = arith.constant 0 : index
    %c0_47 = arith.constant 0 : index
    %59 = vector.load %arg4[%c0_46, %c0_47] : memref<256x128xf32, #tpu.memory_space<vmem>>, vector<128x128xf32>
    %60 = vector.broadcast %58 : vector<128x1xf32> to vector<128x128xf32>
    %61 = arith.addf %59, %60 : vector<128x128xf32>
    %cst_48 = arith.constant dense<0x7F800000> : vector<128xf32>
    %62 = vector.multi_reduction <minimumf>, %61, %cst_48 [0] : vector<128x128xf32> to vector<128xf32>
    %63 = vector.shape_cast %62 : vector<128xf32> to vector<1x128xf32>
    %c0_49 = arith.constant 0 : index
    %c128_50 = arith.constant 128 : index
    %c3_51 = arith.constant 3 : index
    %64 = vector.load %arg3[%c0_49, %c128_50, %c3_51] : memref<2x256x8xf32, #tpu.memory_space<vmem>>, vector<1x128x1xf32>
    %65 = vector.shape_cast %64 : vector<1x128x1xf32> to vector<128x1xf32>
    %c128_52 = arith.constant 128 : index
    %c0_53 = arith.constant 0 : index
    %66 = vector.load %arg4[%c128_52, %c0_53] : memref<256x128xf32, #tpu.memory_space<vmem>>, vector<128x128xf32>
    %67 = vector.broadcast %65 : vector<128x1xf32> to vector<128x128xf32>
    %68 = arith.addf %66, %67 : vector<128x128xf32>
    %cst_54 = arith.constant dense<0x7F800000> : vector<128xf32>
    %69 = vector.multi_reduction <minimumf>, %68, %cst_54 [0] : vector<128x128xf32> to vector<128xf32>
    %70 = vector.shape_cast %69 : vector<128xf32> to vector<1x128xf32>
    %71 = arith.minimumf %63, %70 : vector<1x128xf32>
    %c3_55 = arith.constant 3 : index
    %c0_56 = arith.constant 0 : index
    %72 = vector.load %arg6[%c3_55, %c0_56] : memref<16x128xf32, #tpu.memory_space<vmem>>, vector<1x128xf32>
    %73 = arith.minimumf %72, %71 : vector<1x128xf32>
    %c3_57 = arith.constant 3 : index
    %c0_58 = arith.constant 0 : index
    %74 = vector.load %arg6[%c3_57, %c0_58] : memref<16x128xf32, #tpu.memory_space<vmem>>, vector<1x128xf32>
    tpu.vector_store %arg6[%c3_57, %c0_58], %73 {strides = array<i32>} : memref<16x128xf32, #tpu.memory_space<vmem>>, vector<1x128xf32>,
    %c0_59 = arith.constant 0 : index
    %c0_60 = arith.constant 0 : index
    %c4 = arith.constant 4 : index
    %75 = vector.load %arg3[%c0_59, %c0_60, %c4] : memref<2x256x8xf32, #tpu.memory_space<vmem>>, vector<1x128x1xf32>
    %76 = vector.shape_cast %75 : vector<1x128x1xf32> to vector<128x1xf32>
    %c0_61 = arith.constant 0 : index
    %c0_62 = arith.constant 0 : index
    %77 = vector.load %arg4[%c0_61, %c0_62] : memref<256x128xf32, #tpu.memory_space<vmem>>, vector<128x128xf32>
    %78 = vector.broadcast %76 : vector<128x1xf32> to vector<128x128xf32>
    %79 = arith.addf %77, %78 : vector<128x128xf32>
    %cst_63 = arith.constant dense<0x7F800000> : vector<128xf32>
    %80 = vector.multi_reduction <minimumf>, %79, %cst_63 [0] : vector<128x128xf32> to vector<128xf32>
    %81 = vector.shape_cast %80 : vector<128xf32> to vector<1x128xf32>
    %c0_64 = arith.constant 0 : index
    %c128_65 = arith.constant 128 : index
    %c4_66 = arith.constant 4 : index
    %82 = vector.load %arg3[%c0_64, %c128_65, %c4_66] : memref<2x256x8xf32, #tpu.memory_space<vmem>>, vector<1x128x1xf32>
    %83 = vector.shape_cast %82 : vector<1x128x1xf32> to vector<128x1xf32>
    %c128_67 = arith.constant 128 : index
    %c0_68 = arith.constant 0 : index
    %84 = vector.load %arg4[%c128_67, %c0_68] : memref<256x128xf32, #tpu.memory_space<vmem>>, vector<128x128xf32>
    %85 = vector.broadcast %83 : vector<128x1xf32> to vector<128x128xf32>
    %86 = arith.addf %84, %85 : vector<128x128xf32>
    %cst_69 = arith.constant dense<0x7F800000> : vector<128xf32>
    %87 = vector.multi_reduction <minimumf>, %86, %cst_69 [0] : vector<128x128xf32> to vector<128xf32>
    %88 = vector.shape_cast %87 : vector<128xf32> to vector<1x128xf32>
    %89 = arith.minimumf %81, %88 : vector<1x128xf32>
    %c4_70 = arith.constant 4 : index
    %c0_71 = arith.constant 0 : index
    %90 = vector.load %arg6[%c4_70, %c0_71] : memref<16x128xf32, #tpu.memory_space<vmem>>, vector<1x128xf32>
    %91 = arith.minimumf %90, %89 : vector<1x128xf32>
    %c4_72 = arith.constant 4 : index
    %c0_73 = arith.constant 0 : index
    %92 = vector.load %arg6[%c4_72, %c0_73] : memref<16x128xf32, #tpu.memory_space<vmem>>, vector<1x128xf32>
    tpu.vector_store %arg6[%c4_72, %c0_73], %91 {strides = array<i32>} : memref<16x128xf32, #tpu.memory_space<vmem>>, vector<1x128xf32>,
    %c0_74 = arith.constant 0 : index
    %c0_75 = arith.constant 0 : index
    %c5 = arith.constant 5 : index
    %93 = vector.load %arg3[%c0_74, %c0_75, %c5] : memref<2x256x8xf32, #tpu.memory_space<vmem>>, vector<1x128x1xf32>
    %94 = vector.shape_cast %93 : vector<1x128x1xf32> to vector<128x1xf32>
    %c0_76 = arith.constant 0 : index
    %c0_77 = arith.constant 0 : index
    %95 = vector.load %arg4[%c0_76, %c0_77] : memref<256x128xf32, #tpu.memory_space<vmem>>, vector<128x128xf32>
    %96 = vector.broadcast %94 : vector<128x1xf32> to vector<128x128xf32>
    %97 = arith.addf %95, %96 : vector<128x128xf32>
    %cst_78 = arith.constant dense<0x7F800000> : vector<128xf32>
    %98 = vector.multi_reduction <minimumf>, %97, %cst_78 [0] : vector<128x128xf32> to vector<128xf32>
    %99 = vector.shape_cast %98 : vector<128xf32> to vector<1x128xf32>
    %c0_79 = arith.constant 0 : index
    %c128_80 = arith.constant 128 : index
    %c5_81 = arith.constant 5 : index
    %100 = vector.load %arg3[%c0_79, %c128_80, %c5_81] : memref<2x256x8xf32, #tpu.memory_space<vmem>>, vector<1x128x1xf32>
    %101 = vector.shape_cast %100 : vector<1x128x1xf32> to vector<128x1xf32>
    %c128_82 = arith.constant 128 : index
    %c0_83 = arith.constant 0 : index
    %102 = vector.load %arg4[%c128_82, %c0_83] : memref<256x128xf32, #tpu.memory_space<vmem>>, vector<128x128xf32>
    %103 = vector.broadcast %101 : vector<128x1xf32> to vector<128x128xf32>
    %104 = arith.addf %102, %103 : vector<128x128xf32>
    %cst_84 = arith.constant dense<0x7F800000> : vector<128xf32>
    %105 = vector.multi_reduction <minimumf>, %104, %cst_84 [0] : vector<128x128xf32> to vector<128xf32>
    %106 = vector.shape_cast %105 : vector<128xf32> to vector<1x128xf32>
    %107 = arith.minimumf %99, %106 : vector<1x128xf32>
    %c5_85 = arith.constant 5 : index
    %c0_86 = arith.constant 0 : index
    %108 = vector.load %arg6[%c5_85, %c0_86] : memref<16x128xf32, #tpu.memory_space<vmem>>, vector<1x128xf32>
    %109 = arith.minimumf %108, %107 : vector<1x128xf32>
    %c5_87 = arith.constant 5 : index
    %c0_88 = arith.constant 0 : index
    %110 = vector.load %arg6[%c5_87, %c0_88] : memref<16x128xf32, #tpu.memory_space<vmem>>, vector<1x128xf32>
    tpu.vector_store %arg6[%c5_87, %c0_88], %109 {strides = array<i32>} : memref<16x128xf32, #tpu.memory_space<vmem>>, vector<1x128xf32>,
    %c0_89 = arith.constant 0 : index
    %c0_90 = arith.constant 0 : index
    %c6 = arith.constant 6 : index
    %111 = vector.load %arg3[%c0_89, %c0_90, %c6] : memref<2x256x8xf32, #tpu.memory_space<vmem>>, vector<1x128x1xf32>
    %112 = vector.shape_cast %111 : vector<1x128x1xf32> to vector<128x1xf32>
    %c0_91 = arith.constant 0 : index
    %c0_92 = arith.constant 0 : index
    %113 = vector.load %arg4[%c0_91, %c0_92] : memref<256x128xf32, #tpu.memory_space<vmem>>, vector<128x128xf32>
    %114 = vector.broadcast %112 : vector<128x1xf32> to vector<128x128xf32>
    %115 = arith.addf %113, %114 : vector<128x128xf32>
    %cst_93 = arith.constant dense<0x7F800000> : vector<128xf32>
    %116 = vector.multi_reduction <minimumf>, %115, %cst_93 [0] : vector<128x128xf32> to vector<128xf32>
    %117 = vector.shape_cast %116 : vector<128xf32> to vector<1x128xf32>
    %c0_94 = arith.constant 0 : index
    %c128_95 = arith.constant 128 : index
    %c6_96 = arith.constant 6 : index
    %118 = vector.load %arg3[%c0_94, %c128_95, %c6_96] : memref<2x256x8xf32, #tpu.memory_space<vmem>>, vector<1x128x1xf32>
    %119 = vector.shape_cast %118 : vector<1x128x1xf32> to vector<128x1xf32>
    %c128_97 = arith.constant 128 : index
    %c0_98 = arith.constant 0 : index
    %120 = vector.load %arg4[%c128_97, %c0_98] : memref<256x128xf32, #tpu.memory_space<vmem>>, vector<128x128xf32>
    %121 = vector.broadcast %119 : vector<128x1xf32> to vector<128x128xf32>
    %122 = arith.addf %120, %121 : vector<128x128xf32>
    %cst_99 = arith.constant dense<0x7F800000> : vector<128xf32>
    %123 = vector.multi_reduction <minimumf>, %122, %cst_99 [0] : vector<128x128xf32> to vector<128xf32>
    %124 = vector.shape_cast %123 : vector<128xf32> to vector<1x128xf32>
    %125 = arith.minimumf %117, %124 : vector<1x128xf32>
    %c6_100 = arith.constant 6 : index
    %c0_101 = arith.constant 0 : index
    %126 = vector.load %arg6[%c6_100, %c0_101] : memref<16x128xf32, #tpu.memory_space<vmem>>, vector<1x128xf32>
    %127 = arith.minimumf %126, %125 : vector<1x128xf32>
    %c6_102 = arith.constant 6 : index
    %c0_103 = arith.constant 0 : index
    %128 = vector.load %arg6[%c6_102, %c0_103] : memref<16x128xf32, #tpu.memory_space<vmem>>, vector<1x128xf32>
    tpu.vector_store %arg6[%c6_102, %c0_103], %127 {strides = array<i32>} : memref<16x128xf32, #tpu.memory_space<vmem>>, vector<1x128xf32>,
    %c0_104 = arith.constant 0 : index
    %c0_105 = arith.constant 0 : index
    %c7 = arith.constant 7 : index
    %129 = vector.load %arg3[%c0_104, %c0_105, %c7] : memref<2x256x8xf32, #tpu.memory_space<vmem>>, vector<1x128x1xf32>
    %130 = vector.shape_cast %129 : vector<1x128x1xf32> to vector<128x1xf32>
    %c0_106 = arith.constant 0 : index
    %c0_107 = arith.constant 0 : index
    %131 = vector.load %arg4[%c0_106, %c0_107] : memref<256x128xf32, #tpu.memory_space<vmem>>, vector<128x128xf32>
    %132 = vector.broadcast %130 : vector<128x1xf32> to vector<128x128xf32>
    %133 = arith.addf %131, %132 : vector<128x128xf32>
    %cst_108 = arith.constant dense<0x7F800000> : vector<128xf32>
    %134 = vector.multi_reduction <minimumf>, %133, %cst_108 [0] : vector<128x128xf32> to vector<128xf32>
    %135 = vector.shape_cast %134 : vector<128xf32> to vector<1x128xf32>
    %c0_109 = arith.constant 0 : index
    %c128_110 = arith.constant 128 : index
    %c7_111 = arith.constant 7 : index
    %136 = vector.load %arg3[%c0_109, %c128_110, %c7_111] : memref<2x256x8xf32, #tpu.memory_space<vmem>>, vector<1x128x1xf32>
    %137 = vector.shape_cast %136 : vector<1x128x1xf32> to vector<128x1xf32>
    %c128_112 = arith.constant 128 : index
    %c0_113 = arith.constant 0 : index
    %138 = vector.load %arg4[%c128_112, %c0_113] : memref<256x128xf32, #tpu.memory_space<vmem>>, vector<128x128xf32>
    %139 = vector.broadcast %137 : vector<128x1xf32> to vector<128x128xf32>
    %140 = arith.addf %138, %139 : vector<128x128xf32>
    %cst_114 = arith.constant dense<0x7F800000> : vector<128xf32>
    %141 = vector.multi_reduction <minimumf>, %140, %cst_114 [0] : vector<128x128xf32> to vector<128xf32>
    %142 = vector.shape_cast %141 : vector<128xf32> to vector<1x128xf32>
    %143 = arith.minimumf %135, %142 : vector<1x128xf32>
    %c7_115 = arith.constant 7 : index
    %c0_116 = arith.constant 0 : index
    %144 = vector.load %arg6[%c7_115, %c0_116] : memref<16x128xf32, #tpu.memory_space<vmem>>, vector<1x128xf32>
    %145 = arith.minimumf %144, %143 : vector<1x128xf32>
    %c7_117 = arith.constant 7 : index
    %c0_118 = arith.constant 0 : index
    %146 = vector.load %arg6[%c7_117, %c0_118] : memref<16x128xf32, #tpu.memory_space<vmem>>, vector<1x128xf32>
    tpu.vector_store %arg6[%c7_117, %c0_118], %145 {strides = array<i32>} : memref<16x128xf32, #tpu.memory_space<vmem>>, vector<1x128xf32>,
    %c1_119 = arith.constant 1 : index
    %c0_120 = arith.constant 0 : index
    %c0_121 = arith.constant 0 : index
    %147 = vector.load %arg3[%c1_119, %c0_120, %c0_121] : memref<2x256x8xf32, #tpu.memory_space<vmem>>, vector<1x128x1xf32>
    %148 = vector.shape_cast %147 : vector<1x128x1xf32> to vector<128x1xf32>
    %c0_122 = arith.constant 0 : index
    %c0_123 = arith.constant 0 : index
    %149 = vector.load %arg4[%c0_122, %c0_123] : memref<256x128xf32, #tpu.memory_space<vmem>>, vector<128x128xf32>
    %150 = vector.broadcast %148 : vector<128x1xf32> to vector<128x128xf32>
    %151 = arith.addf %149, %150 : vector<128x128xf32>
    %cst_124 = arith.constant dense<0x7F800000> : vector<128xf32>
    %152 = vector.multi_reduction <minimumf>, %151, %cst_124 [0] : vector<128x128xf32> to vector<128xf32>
    %153 = vector.shape_cast %152 : vector<128xf32> to vector<1x128xf32>
    %c1_125 = arith.constant 1 : index
    %c128_126 = arith.constant 128 : index
    %c0_127 = arith.constant 0 : index
    %154 = vector.load %arg3[%c1_125, %c128_126, %c0_127] : memref<2x256x8xf32, #tpu.memory_space<vmem>>, vector<1x128x1xf32>
    %155 = vector.shape_cast %154 : vector<1x128x1xf32> to vector<128x1xf32>
    %c128_128 = arith.constant 128 : index
    %c0_129 = arith.constant 0 : index
    %156 = vector.load %arg4[%c128_128, %c0_129] : memref<256x128xf32, #tpu.memory_space<vmem>>, vector<128x128xf32>
    %157 = vector.broadcast %155 : vector<128x1xf32> to vector<128x128xf32>
    %158 = arith.addf %156, %157 : vector<128x128xf32>
    %cst_130 = arith.constant dense<0x7F800000> : vector<128xf32>
    %159 = vector.multi_reduction <minimumf>, %158, %cst_130 [0] : vector<128x128xf32> to vector<128xf32>
    %160 = vector.shape_cast %159 : vector<128xf32> to vector<1x128xf32>
    %161 = arith.minimumf %153, %160 : vector<1x128xf32>
    %c8 = arith.constant 8 : index
    %c0_131 = arith.constant 0 : index
    %162 = vector.load %arg6[%c8, %c0_131] : memref<16x128xf32, #tpu.memory_space<vmem>>, vector<1x128xf32>
    %163 = arith.minimumf %162, %161 : vector<1x128xf32>
    %c8_132 = arith.constant 8 : index
    %c0_133 = arith.constant 0 : index
    %164 = vector.load %arg6[%c8_132, %c0_133] : memref<16x128xf32, #tpu.memory_space<vmem>>, vector<1x128xf32>
    tpu.vector_store %arg6[%c8_132, %c0_133], %163 {strides = array<i32>} : memref<16x128xf32, #tpu.memory_space<vmem>>, vector<1x128xf32>,
    %c1_134 = arith.constant 1 : index
    %c0_135 = arith.constant 0 : index
    %c1_136 = arith.constant 1 : index
    %165 = vector.load %arg3[%c1_134, %c0_135, %c1_136] : memref<2x256x8xf32, #tpu.memory_space<vmem>>, vector<1x128x1xf32>
    %166 = vector.shape_cast %165 : vector<1x128x1xf32> to vector<128x1xf32>
    %c0_137 = arith.constant 0 : index
    %c0_138 = arith.constant 0 : index
    %167 = vector.load %arg4[%c0_137, %c0_138] : memref<256x128xf32, #tpu.memory_space<vmem>>, vector<128x128xf32>
    %168 = vector.broadcast %166 : vector<128x1xf32> to vector<128x128xf32>
    %169 = arith.addf %167, %168 : vector<128x128xf32>
    %cst_139 = arith.constant dense<0x7F800000> : vector<128xf32>
    %170 = vector.multi_reduction <minimumf>, %169, %cst_139 [0] : vector<128x128xf32> to vector<128xf32>
    %171 = vector.shape_cast %170 : vector<128xf32> to vector<1x128xf32>
    %c1_140 = arith.constant 1 : index
    %c128_141 = arith.constant 128 : index
    %c1_142 = arith.constant 1 : index
    %172 = vector.load %arg3[%c1_140, %c128_141, %c1_142] : memref<2x256x8xf32, #tpu.memory_space<vmem>>, vector<1x128x1xf32>
    %173 = vector.shape_cast %172 : vector<1x128x1xf32> to vector<128x1xf32>
    %c128_143 = arith.constant 128 : index
    %c0_144 = arith.constant 0 : index
    %174 = vector.load %arg4[%c128_143, %c0_144] : memref<256x128xf32, #tpu.memory_space<vmem>>, vector<128x128xf32>
    %175 = vector.broadcast %173 : vector<128x1xf32> to vector<128x128xf32>
    %176 = arith.addf %174, %175 : vector<128x128xf32>
    %cst_145 = arith.constant dense<0x7F800000> : vector<128xf32>
    %177 = vector.multi_reduction <minimumf>, %176, %cst_145 [0] : vector<128x128xf32> to vector<128xf32>
    %178 = vector.shape_cast %177 : vector<128xf32> to vector<1x128xf32>
    %179 = arith.minimumf %171, %178 : vector<1x128xf32>
    %c9 = arith.constant 9 : index
    %c0_146 = arith.constant 0 : index
    %180 = vector.load %arg6[%c9, %c0_146] : memref<16x128xf32, #tpu.memory_space<vmem>>, vector<1x128xf32>
    %181 = arith.minimumf %180, %179 : vector<1x128xf32>
    %c9_147 = arith.constant 9 : index
    %c0_148 = arith.constant 0 : index
    %182 = vector.load %arg6[%c9_147, %c0_148] : memref<16x128xf32, #tpu.memory_space<vmem>>, vector<1x128xf32>
    tpu.vector_store %arg6[%c9_147, %c0_148], %181 {strides = array<i32>} : memref<16x128xf32, #tpu.memory_space<vmem>>, vector<1x128xf32>,
    %c1_149 = arith.constant 1 : index
    %c0_150 = arith.constant 0 : index
    %c2_151 = arith.constant 2 : index
    %183 = vector.load %arg3[%c1_149, %c0_150, %c2_151] : memref<2x256x8xf32, #tpu.memory_space<vmem>>, vector<1x128x1xf32>
    %184 = vector.shape_cast %183 : vector<1x128x1xf32> to vector<128x1xf32>
    %c0_152 = arith.constant 0 : index
    %c0_153 = arith.constant 0 : index
    %185 = vector.load %arg4[%c0_152, %c0_153] : memref<256x128xf32, #tpu.memory_space<vmem>>, vector<128x128xf32>
    %186 = vector.broadcast %184 : vector<128x1xf32> to vector<128x128xf32>
    %187 = arith.addf %185, %186 : vector<128x128xf32>
    %cst_154 = arith.constant dense<0x7F800000> : vector<128xf32>
    %188 = vector.multi_reduction <minimumf>, %187, %cst_154 [0] : vector<128x128xf32> to vector<128xf32>
    %189 = vector.shape_cast %188 : vector<128xf32> to vector<1x128xf32>
    %c1_155 = arith.constant 1 : index
    %c128_156 = arith.constant 128 : index
    %c2_157 = arith.constant 2 : index
    %190 = vector.load %arg3[%c1_155, %c128_156, %c2_157] : memref<2x256x8xf32, #tpu.memory_space<vmem>>, vector<1x128x1xf32>
    %191 = vector.shape_cast %190 : vector<1x128x1xf32> to vector<128x1xf32>
    %c128_158 = arith.constant 128 : index
    %c0_159 = arith.constant 0 : index
    %192 = vector.load %arg4[%c128_158, %c0_159] : memref<256x128xf32, #tpu.memory_space<vmem>>, vector<128x128xf32>
    %193 = vector.broadcast %191 : vector<128x1xf32> to vector<128x128xf32>
    %194 = arith.addf %192, %193 : vector<128x128xf32>
    %cst_160 = arith.constant dense<0x7F800000> : vector<128xf32>
    %195 = vector.multi_reduction <minimumf>, %194, %cst_160 [0] : vector<128x128xf32> to vector<128xf32>
    %196 = vector.shape_cast %195 : vector<128xf32> to vector<1x128xf32>
    %197 = arith.minimumf %189, %196 : vector<1x128xf32>
    %c10 = arith.constant 10 : index
    %c0_161 = arith.constant 0 : index
    %198 = vector.load %arg6[%c10, %c0_161] : memref<16x128xf32, #tpu.memory_space<vmem>>, vector<1x128xf32>
    %199 = arith.minimumf %198, %197 : vector<1x128xf32>
    %c10_162 = arith.constant 10 : index
    %c0_163 = arith.constant 0 : index
    %200 = vector.load %arg6[%c10_162, %c0_163] : memref<16x128xf32, #tpu.memory_space<vmem>>, vector<1x128xf32>
    tpu.vector_store %arg6[%c10_162, %c0_163], %199 {strides = array<i32>} : memref<16x128xf32, #tpu.memory_space<vmem>>, vector<1x128xf32>,
    %c1_164 = arith.constant 1 : index
    %c0_165 = arith.constant 0 : index
    %c3_166 = arith.constant 3 : index
    %201 = vector.load %arg3[%c1_164, %c0_165, %c3_166] : memref<2x256x8xf32, #tpu.memory_space<vmem>>, vector<1x128x1xf32>
    %202 = vector.shape_cast %201 : vector<1x128x1xf32> to vector<128x1xf32>
    %c0_167 = arith.constant 0 : index
    %c0_168 = arith.constant 0 : index
    %203 = vector.load %arg4[%c0_167, %c0_168] : memref<256x128xf32, #tpu.memory_space<vmem>>, vector<128x128xf32>
    %204 = vector.broadcast %202 : vector<128x1xf32> to vector<128x128xf32>
    %205 = arith.addf %203, %204 : vector<128x128xf32>
    %cst_169 = arith.constant dense<0x7F800000> : vector<128xf32>
    %206 = vector.multi_reduction <minimumf>, %205, %cst_169 [0] : vector<128x128xf32> to vector<128xf32>
    %207 = vector.shape_cast %206 : vector<128xf32> to vector<1x128xf32>
    %c1_170 = arith.constant 1 : index
    %c128_171 = arith.constant 128 : index
    %c3_172 = arith.constant 3 : index
    %208 = vector.load %arg3[%c1_170, %c128_171, %c3_172] : memref<2x256x8xf32, #tpu.memory_space<vmem>>, vector<1x128x1xf32>
    %209 = vector.shape_cast %208 : vector<1x128x1xf32> to vector<128x1xf32>
    %c128_173 = arith.constant 128 : index
    %c0_174 = arith.constant 0 : index
    %210 = vector.load %arg4[%c128_173, %c0_174] : memref<256x128xf32, #tpu.memory_space<vmem>>, vector<128x128xf32>
    %211 = vector.broadcast %209 : vector<128x1xf32> to vector<128x128xf32>
    %212 = arith.addf %210, %211 : vector<128x128xf32>
    %cst_175 = arith.constant dense<0x7F800000> : vector<128xf32>
    %213 = vector.multi_reduction <minimumf>, %212, %cst_175 [0] : vector<128x128xf32> to vector<128xf32>
    %214 = vector.shape_cast %213 : vector<128xf32> to vector<1x128xf32>
    %215 = arith.minimumf %207, %214 : vector<1x128xf32>
    %c11 = arith.constant 11 : index
    %c0_176 = arith.constant 0 : index
    %216 = vector.load %arg6[%c11, %c0_176] : memref<16x128xf32, #tpu.memory_space<vmem>>, vector<1x128xf32>
    %217 = arith.minimumf %216, %215 : vector<1x128xf32>
    %c11_177 = arith.constant 11 : index
    %c0_178 = arith.constant 0 : index
    %218 = vector.load %arg6[%c11_177, %c0_178] : memref<16x128xf32, #tpu.memory_space<vmem>>, vector<1x128xf32>
    tpu.vector_store %arg6[%c11_177, %c0_178], %217 {strides = array<i32>} : memref<16x128xf32, #tpu.memory_space<vmem>>, vector<1x128xf32>,
    %c1_179 = arith.constant 1 : index
    %c0_180 = arith.constant 0 : index
    %c4_181 = arith.constant 4 : index
    %219 = vector.load %arg3[%c1_179, %c0_180, %c4_181] : memref<2x256x8xf32, #tpu.memory_space<vmem>>, vector<1x128x1xf32>
    %220 = vector.shape_cast %219 : vector<1x128x1xf32> to vector<128x1xf32>
    %c0_182 = arith.constant 0 : index
    %c0_183 = arith.constant 0 : index
    %221 = vector.load %arg4[%c0_182, %c0_183] : memref<256x128xf32, #tpu.memory_space<vmem>>, vector<128x128xf32>
    %222 = vector.broadcast %220 : vector<128x1xf32> to vector<128x128xf32>
    %223 = arith.addf %221, %222 : vector<128x128xf32>
    %cst_184 = arith.constant dense<0x7F800000> : vector<128xf32>
    %224 = vector.multi_reduction <minimumf>, %223, %cst_184 [0] : vector<128x128xf32> to vector<128xf32>
    %225 = vector.shape_cast %224 : vector<128xf32> to vector<1x128xf32>
    %c1_185 = arith.constant 1 : index
    %c128_186 = arith.constant 128 : index
    %c4_187 = arith.constant 4 : index
    %226 = vector.load %arg3[%c1_185, %c128_186, %c4_187] : memref<2x256x8xf32, #tpu.memory_space<vmem>>, vector<1x128x1xf32>
    %227 = vector.shape_cast %226 : vector<1x128x1xf32> to vector<128x1xf32>
    %c128_188 = arith.constant 128 : index
    %c0_189 = arith.constant 0 : index
    %228 = vector.load %arg4[%c128_188, %c0_189] : memref<256x128xf32, #tpu.memory_space<vmem>>, vector<128x128xf32>
    %229 = vector.broadcast %227 : vector<128x1xf32> to vector<128x128xf32>
    %230 = arith.addf %228, %229 : vector<128x128xf32>
    %cst_190 = arith.constant dense<0x7F800000> : vector<128xf32>
    %231 = vector.multi_reduction <minimumf>, %230, %cst_190 [0] : vector<128x128xf32> to vector<128xf32>
    %232 = vector.shape_cast %231 : vector<128xf32> to vector<1x128xf32>
    %233 = arith.minimumf %225, %232 : vector<1x128xf32>
    %c12 = arith.constant 12 : index
    %c0_191 = arith.constant 0 : index
    %234 = vector.load %arg6[%c12, %c0_191] : memref<16x128xf32, #tpu.memory_space<vmem>>, vector<1x128xf32>
    %235 = arith.minimumf %234, %233 : vector<1x128xf32>
    %c12_192 = arith.constant 12 : index
    %c0_193 = arith.constant 0 : index
    %236 = vector.load %arg6[%c12_192, %c0_193] : memref<16x128xf32, #tpu.memory_space<vmem>>, vector<1x128xf32>
    tpu.vector_store %arg6[%c12_192, %c0_193], %235 {strides = array<i32>} : memref<16x128xf32, #tpu.memory_space<vmem>>, vector<1x128xf32>,
    %c1_194 = arith.constant 1 : index
    %c0_195 = arith.constant 0 : index
    %c5_196 = arith.constant 5 : index
    %237 = vector.load %arg3[%c1_194, %c0_195, %c5_196] : memref<2x256x8xf32, #tpu.memory_space<vmem>>, vector<1x128x1xf32>
    %238 = vector.shape_cast %237 : vector<1x128x1xf32> to vector<128x1xf32>
    %c0_197 = arith.constant 0 : index
    %c0_198 = arith.constant 0 : index
    %239 = vector.load %arg4[%c0_197, %c0_198] : memref<256x128xf32, #tpu.memory_space<vmem>>, vector<128x128xf32>
    %240 = vector.broadcast %238 : vector<128x1xf32> to vector<128x128xf32>
    %241 = arith.addf %239, %240 : vector<128x128xf32>
    %cst_199 = arith.constant dense<0x7F800000> : vector<128xf32>
    %242 = vector.multi_reduction <minimumf>, %241, %cst_199 [0] : vector<128x128xf32> to vector<128xf32>
    %243 = vector.shape_cast %242 : vector<128xf32> to vector<1x128xf32>
    %c1_200 = arith.constant 1 : index
    %c128_201 = arith.constant 128 : index
    %c5_202 = arith.constant 5 : index
    %244 = vector.load %arg3[%c1_200, %c128_201, %c5_202] : memref<2x256x8xf32, #tpu.memory_space<vmem>>, vector<1x128x1xf32>
    %245 = vector.shape_cast %244 : vector<1x128x1xf32> to vector<128x1xf32>
    %c128_203 = arith.constant 128 : index
    %c0_204 = arith.constant 0 : index
    %246 = vector.load %arg4[%c128_203, %c0_204] : memref<256x128xf32, #tpu.memory_space<vmem>>, vector<128x128xf32>
    %247 = vector.broadcast %245 : vector<128x1xf32> to vector<128x128xf32>
    %248 = arith.addf %246, %247 : vector<128x128xf32>
    %cst_205 = arith.constant dense<0x7F800000> : vector<128xf32>
    %249 = vector.multi_reduction <minimumf>, %248, %cst_205 [0] : vector<128x128xf32> to vector<128xf32>
    %250 = vector.shape_cast %249 : vector<128xf32> to vector<1x128xf32>
    %251 = arith.minimumf %243, %250 : vector<1x128xf32>
    %c13 = arith.constant 13 : index
    %c0_206 = arith.constant 0 : index
    %252 = vector.load %arg6[%c13, %c0_206] : memref<16x128xf32, #tpu.memory_space<vmem>>, vector<1x128xf32>
    %253 = arith.minimumf %252, %251 : vector<1x128xf32>
    %c13_207 = arith.constant 13 : index
    %c0_208 = arith.constant 0 : index
    %254 = vector.load %arg6[%c13_207, %c0_208] : memref<16x128xf32, #tpu.memory_space<vmem>>, vector<1x128xf32>
    tpu.vector_store %arg6[%c13_207, %c0_208], %253 {strides = array<i32>} : memref<16x128xf32, #tpu.memory_space<vmem>>, vector<1x128xf32>,
    %c1_209 = arith.constant 1 : index
    %c0_210 = arith.constant 0 : index
    %c6_211 = arith.constant 6 : index
    %255 = vector.load %arg3[%c1_209, %c0_210, %c6_211] : memref<2x256x8xf32, #tpu.memory_space<vmem>>, vector<1x128x1xf32>
    %256 = vector.shape_cast %255 : vector<1x128x1xf32> to vector<128x1xf32>
    %c0_212 = arith.constant 0 : index
    %c0_213 = arith.constant 0 : index
    %257 = vector.load %arg4[%c0_212, %c0_213] : memref<256x128xf32, #tpu.memory_space<vmem>>, vector<128x128xf32>
    %258 = vector.broadcast %256 : vector<128x1xf32> to vector<128x128xf32>
    %259 = arith.addf %257, %258 : vector<128x128xf32>
    %cst_214 = arith.constant dense<0x7F800000> : vector<128xf32>
    %260 = vector.multi_reduction <minimumf>, %259, %cst_214 [0] : vector<128x128xf32> to vector<128xf32>
    %261 = vector.shape_cast %260 : vector<128xf32> to vector<1x128xf32>
    %c1_215 = arith.constant 1 : index
    %c128_216 = arith.constant 128 : index
    %c6_217 = arith.constant 6 : index
    %262 = vector.load %arg3[%c1_215, %c128_216, %c6_217] : memref<2x256x8xf32, #tpu.memory_space<vmem>>, vector<1x128x1xf32>
    %263 = vector.shape_cast %262 : vector<1x128x1xf32> to vector<128x1xf32>
    %c128_218 = arith.constant 128 : index
    %c0_219 = arith.constant 0 : index
    %264 = vector.load %arg4[%c128_218, %c0_219] : memref<256x128xf32, #tpu.memory_space<vmem>>, vector<128x128xf32>
    %265 = vector.broadcast %263 : vector<128x1xf32> to vector<128x128xf32>
    %266 = arith.addf %264, %265 : vector<128x128xf32>
    %cst_220 = arith.constant dense<0x7F800000> : vector<128xf32>
    %267 = vector.multi_reduction <minimumf>, %266, %cst_220 [0] : vector<128x128xf32> to vector<128xf32>
    %268 = vector.shape_cast %267 : vector<128xf32> to vector<1x128xf32>
    %269 = arith.minimumf %261, %268 : vector<1x128xf32>
    %c14 = arith.constant 14 : index
    %c0_221 = arith.constant 0 : index
    %270 = vector.load %arg6[%c14, %c0_221] : memref<16x128xf32, #tpu.memory_space<vmem>>, vector<1x128xf32>
    %271 = arith.minimumf %270, %269 : vector<1x128xf32>
    %c14_222 = arith.constant 14 : index
    %c0_223 = arith.constant 0 : index
    %272 = vector.load %arg6[%c14_222, %c0_223] : memref<16x128xf32, #tpu.memory_space<vmem>>, vector<1x128xf32>
    tpu.vector_store %arg6[%c14_222, %c0_223], %271 {strides = array<i32>} : memref<16x128xf32, #tpu.memory_space<vmem>>, vector<1x128xf32>,
    %c1_224 = arith.constant 1 : index
    %c0_225 = arith.constant 0 : index
    %c7_226 = arith.constant 7 : index
    %273 = vector.load %arg3[%c1_224, %c0_225, %c7_226] : memref<2x256x8xf32, #tpu.memory_space<vmem>>, vector<1x128x1xf32>
    %274 = vector.shape_cast %273 : vector<1x128x1xf32> to vector<128x1xf32>
    %c0_227 = arith.constant 0 : index
    %c0_228 = arith.constant 0 : index
    %275 = vector.load %arg4[%c0_227, %c0_228] : memref<256x128xf32, #tpu.memory_space<vmem>>, vector<128x128xf32>
    %276 = vector.broadcast %274 : vector<128x1xf32> to vector<128x128xf32>
    %277 = arith.addf %275, %276 : vector<128x128xf32>
    %cst_229 = arith.constant dense<0x7F800000> : vector<128xf32>
    %278 = vector.multi_reduction <minimumf>, %277, %cst_229 [0] : vector<128x128xf32> to vector<128xf32>
    %279 = vector.shape_cast %278 : vector<128xf32> to vector<1x128xf32>
    %c1_230 = arith.constant 1 : index
    %c128_231 = arith.constant 128 : index
    %c7_232 = arith.constant 7 : index
    %280 = vector.load %arg3[%c1_230, %c128_231, %c7_232] : memref<2x256x8xf32, #tpu.memory_space<vmem>>, vector<1x128x1xf32>
    %281 = vector.shape_cast %280 : vector<1x128x1xf32> to vector<128x1xf32>
    %c128_233 = arith.constant 128 : index
    %c0_234 = arith.constant 0 : index
    %282 = vector.load %arg4[%c128_233, %c0_234] : memref<256x128xf32, #tpu.memory_space<vmem>>, vector<128x128xf32>
    %283 = vector.broadcast %281 : vector<128x1xf32> to vector<128x128xf32>
    %284 = arith.addf %282, %283 : vector<128x128xf32>
    %cst_235 = arith.constant dense<0x7F800000> : vector<128xf32>
    %285 = vector.multi_reduction <minimumf>, %284, %cst_235 [0] : vector<128x128xf32> to vector<128xf32>
    %286 = vector.shape_cast %285 : vector<128xf32> to vector<1x128xf32>
    %287 = arith.minimumf %279, %286 : vector<1x128xf32>
    %c15 = arith.constant 15 : index
    %c0_236 = arith.constant 0 : index
    %288 = vector.load %arg6[%c15, %c0_236] : memref<16x128xf32, #tpu.memory_space<vmem>>, vector<1x128xf32>
    %289 = arith.minimumf %288, %287 : vector<1x128xf32>
    %c15_237 = arith.constant 15 : index
    %c0_238 = arith.constant 0 : index
    %290 = vector.load %arg6[%c15_237, %c0_238] : memref<16x128xf32, #tpu.memory_space<vmem>>, vector<1x128xf32>
    tpu.vector_store %arg6[%c15_237, %c0_238], %289 {strides = array<i32>} : memref<16x128xf32, #tpu.memory_space<vmem>>, vector<1x128xf32>,
    %c1_i32 = arith.constant 1 : i32
    %291 = arith.cmpi eq, %arg2, %c1_i32 : i32
    %292 = arith.extui %291 : i1 to i32
    %c0_i32_239 = arith.constant 0 : i32
    %293 = arith.cmpi ne, %292, %c0_i32_239 : i32
    scf.if %293 {
      %c0_240 = arith.constant 0 : index
      %c0_241 = arith.constant 0 : index
      %294 = vector.load %arg6[%c0_240, %c0_241] : memref<16x128xf32, #tpu.memory_space<vmem>>, vector<16x128xf32>
      %c0_242 = arith.constant 0 : index
      %c0_243 = arith.constant 0 : index
      %295 = vector.load %arg5[%c0_242, %c0_243] : memref<16x128xf32, #tpu.memory_space<vmem>>, vector<16x128xf32>
      tpu.vector_store %arg5[%c0_242, %c0_243], %294 {strides = array<i32>} : memref<16x128xf32, #tpu.memory_space<vmem>>, vector<16x128xf32>,
    } else {
    }
    return
  }
  func.func @transform_0(%arg0: i32, %arg1: i32, %arg2: i32) -> (i32, i32, i32) {
    %c0_i32 = arith.constant 0 : i32
    %c0_i32_0 = arith.constant 0 : i32
    return %arg0, %arg2, %c0_i32 : i32, i32, i32
  }
  func.func @transform_1(%arg0: i32, %arg1: i32, %arg2: i32) -> (i32, i32) {
    %c0_i32 = arith.constant 0 : i32
    return %arg2, %arg1 : i32, i32
  }
  func.func @transform_2(%arg0: i32, %arg1: i32, %arg2: i32) -> (i32, i32) {
    %c0_i32 = arith.constant 0 : i32
    return %arg0, %arg1 : i32, i32
  }
}

</mosaic_0001>

<bundles_post_ra>
// kernel: tpu_custom_call.1
= control target key start
LH: loop header
LB: loop body
LE: loop exit
PB: predicated region body
PF: predicated region fallthrough
CT: control target
= control target key end

     0   :  { %s9537_s0 = inlined_call_operand.vmem [shape: f32[2,512,8], index: 0, kind: input, shape index: {}]   ;;  %s9538_s1 = inlined_call_operand.vmem [shape: f32[512,256], index: 1, kind: input, shape index: {}]   ;;  %s9539_s2 = inlined_call_operand.hbm [shape: f32[16,256], index: 2, kind: output, shape index: {}]  }
   0x1   :  { %9680 = sst [smem:[#allocation147_spill]] %s9537_s0 }
   0x2   :  { %7 = vsyncpa [#allocation6], 0 }
   0x3   :  { %9 = vsyncpa [#allocation6 + $0x1], 0  ;;  %s6269_s9 = smov 0   ;;  %s6271_s10 = smov 0  }
   0x4   :  { %s6273_s11 = smov 0   ;;  %s6275_s12 = smov 0  }
   0x5   :  { %s6277_s13 = smov 0   ;;  %s6279_s14 = smov 0  }
   0x6   :  { %s6281_s15 = smov 0   ;;  %s6283_s16 = smov 0  }
   0x7   :  { %s6285_s17 = smov 0   ;;  %s6287_s18 = smov 0  }
   0x8   :  { %s6289_s19 = smov 0   ;;  %s6291_s20 = smov 0  }
   0x9 LB: > { %s5614_s21 = sadd.s32 4294967295, %s6239_s20   ;;  %s5615_s22 = sadd.s32 4294967294, %s6239_s20   ;;  %s6239_s20 = sphi %s6291_s20, %s15_s20   ;;  %s6235_s19 = sphi %s6289_s19, %s10267_s19   ;;  %s6231_s18 = sphi %s6287_s18, %s10266_s18   ;;  %s6227_s17 = sphi %s6285_s17, %s10265_s17   ;;  %s6223_s16 = sphi %s6283_s16, %s10264_s16   ;;  %s6219_s15 = sphi %s6281_s15, %s10263_s15   ;;  %s6215_s14 = sphi %s6279_s14, %s10262_s14   ;;  %s6211_s13 = sphi %s6277_s13, %s10261_s13   ;;  %s6207_s12 = sphi %s6275_s12, %s10260_s12   ;;  %s6203_s11 = sphi %s6273_s11, %s10259_s11   ;;  %s6199_s10 = sphi %s6271_s10, %s10258_s10   ;;  %s6195_s9 = sphi %s6269_s9, %s10257_s9  }
   0xa   : > { %s27_s23 = sadd.s32 1, %s6231_s18  ;;  %s30_s24 = sadd.s32 1, %s6235_s19 }
   0xb   : > { %p28_p0 = scmp.ge.s32.totalorder %s27_s23, 2  ;;  %s43_s25 = sadd.s32 1, %s6219_s15 }
   0xc   : > { %p50_p1 = scmp.ne.s32.totalorder %s6219_s15, %s6215_s14  ;;  %p51_p2 = scmp.eq.s32.totalorder %s6239_s20, 0 }
   0xd   : > { %s10269_s23 = smov (%p28_p0, %s27_s23), 0  ;;  %s10271_s24 = smov (!%p28_p0, %s30_s24), %s6235_s19 }
   0xe   : > { %s39_s26 = ssub.s32 %s6231_s18, %s10269_s23  ;;  %p6342_p3 = por %p51_p2, %p50_p1 }
   0xf   : > { %p32_p4 = scmp.ge.s32.totalorder %s10271_s24, 2  ;;  %p41_p5 = scmp.eq.s32.totalorder %s39_s26, 0 }
  0x10   : > { %s71_s28 = sadd.s32 1, %s6211_s13  ;;  %p78_p6 = scmp.ne.s32.totalorder %s6211_s13, %s6207_s12 }
  0x11   : > { %s10273_s24 = smov (%p32_p4, %s10271_s24), 0  ;;  %s99_s5 = sadd.s32 1, %s6203_s11 }
  0x12   : > { %9682 = sst [smem:[#allocation8_spill]] %s10273_s24  ;;  %s67_s30 = ssub.s32 %s6235_s19, %s10273_s24 }
  0x13   : > { %s6352_s29 = scalar_select %p41_p5, %s6219_s15, %s43_s25  }
  0x14   : > { %p6356_p7 = por %p78_p6, %p51_p2  ;;  %s68_s4 = sor.u32 %s67_s30, %s39_s26 }
  0x15   : > { %p97_p8 = scmp.eq.s32.totalorder %s67_s30, 0  ;;  %p69_p9 = scmp.eq.s32.totalorder %s68_s4, 0 }
  0x16   : > { %p109_p10 = scmp.ne.s32.totalorder %s6203_s11, %s6199_s10  ;;  %p110_p11 = scmp.eq.s32.totalorder %s5614_s21, 3 }
  0x17   : > { %s6362_s6 = scalar_select %p97_p8, %s6203_s11, %s99_s5  }
  0x18   : > { %s6365_s7 = scalar_select %p69_p9, %s6211_s13, %s71_s28  }
  0x19   : > { %p115_p12 = scmp.ne.s32.totalorder %s6199_s10, %s6195_s9  ;;  %p116_p13 = scmp.eq.s32.totalorder %s5615_s22, 3 }
  0x1a   : > { %p6371_p0 = por %p110_p11, %p109_p10  ;;  %p5617_p2 = scmp.ge.s32.totalorder %s6239_s20, 4 }
  0x1b   : > { %p6375_p1 = por %p116_p13, %p115_p12 }
  0x1c   : > { %132 = sbr.rel (%p5617_p2) target bundleno = 97 (0x61), region = 16 }
  0x21   : > { %135 = sbr.rel (!%p6342_p3) target bundleno = 75 (0x4b), region = 20  ;;  %s137_s26 = sand.u32 (%p6342_p3), 1, %s6219_s15  }
  0x22   : > { %s5891_s21 = sshll.u32 (%p6342_p3), %s6231_s18, 8  ;;  %s5618_s28 = sshll.u32 (%p6342_p3), %s137_s26, 9 }
  0x23   : > { %s9686_s0 = sld [smem:[#allocation147_spill]] (%p6342_p3)  ;;  %s6392_s27 = scalar_lea.vmem (%p6342_p3), [#allocation3], %s5618_s28 }
  0x29   : > { %s6387_s4 = scalar_lea.vmem %s9686_s0, %s5891_s21 }
  0x2a   : > { %v300_v0 = vld [vmem:[%s6387_s4] sm:$0xff]  ;;  %v302_v1 = vld [vmem:[%s6387_s4 + $0x8] sm:$0xff]  ;;  %v304_v2 = vld [vmem:[%s6387_s4 + $0x10] sm:$0xff] }
  0x2b   : > { %301 = vst [vmem:[%s6392_s27] sm:$0xff] %v300_v0  ;;  %303 = vst [vmem:[%s6392_s27 + $0x8] sm:$0xff] %v302_v1  ;;  %v306_v3 = vld [vmem:[%s6387_s4 + $0x18] sm:$0xff]  ;;  %v308_v4 = vld [vmem:[%s6387_s4 + $0x20] sm:$0xff] }
  0x2c   : > { %305 = vst [vmem:[%s6392_s27 + $0x10] sm:$0xff] %v304_v2  ;;  %v310_v5 = vld [vmem:[%s6387_s4 + $0x28] sm:$0xff]  ;;  %307 = vst [vmem:[%s6392_s27 + $0x18] sm:$0xff] %v306_v3  ;;  %v312_v6 = vld [vmem:[%s6387_s4 + $0x30] sm:$0xff] }
  0x2d   : > { %309 = vst [vmem:[%s6392_s27 + $0x20] sm:$0xff] %v308_v4  ;;  %311 = vst [vmem:[%s6392_s27 + $0x28] sm:$0xff] %v310_v5  ;;  %v314_v7 = vld [vmem:[%s6387_s4 + $0x38] sm:$0xff]  ;;  %v316_v8 = vld [vmem:[%s6387_s4 + $0x40] sm:$0xff] }
  0x2e   : > { %313 = vst [vmem:[%s6392_s27 + $0x30] sm:$0xff] %v312_v6  ;;  %315 = vst [vmem:[%s6392_s27 + $0x38] sm:$0xff] %v314_v7  ;;  %v318_v9 = vld [vmem:[%s6387_s4 + $0x48] sm:$0xff]  ;;  %v320_v10 = vld [vmem:[%s6387_s4 + $0x50] sm:$0xff] }
  0x2f   : > { %317 = vst [vmem:[%s6392_s27 + $0x40] sm:$0xff] %v316_v8  ;;  %v322_v11 = vld [vmem:[%s6387_s4 + $0x58] sm:$0xff]  ;;  %319 = vst [vmem:[%s6392_s27 + $0x48] sm:$0xff] %v318_v9  ;;  %v324_v12 = vld [vmem:[%s6387_s4 + $0x60] sm:$0xff] }
  0x30   : > { %321 = vst [vmem:[%s6392_s27 + $0x50] sm:$0xff] %v320_v10  ;;  %323 = vst [vmem:[%s6392_s27 + $0x58] sm:$0xff] %v322_v11  ;;  %v326_v13 = vld [vmem:[%s6387_s4 + $0x68] sm:$0xff]  ;;  %v328_v14 = vld [vmem:[%s6387_s4 + $0x70] sm:$0xff] }
  0x31   : > { %325 = vst [vmem:[%s6392_s27 + $0x60] sm:$0xff] %v324_v12  ;;  %327 = vst [vmem:[%s6392_s27 + $0x68] sm:$0xff] %v326_v13  ;;  %v330_v15 = vld [vmem:[%s6387_s4 + $0x78] sm:$0xff]  ;;  %v332_v16 = vld [vmem:[%s6387_s4 + $0x80] sm:$0xff] }
  0x32   : > { %329 = vst [vmem:[%s6392_s27 + $0x70] sm:$0xff] %v328_v14  ;;  %v334_v17 = vld [vmem:[%s6387_s4 + $0x88] sm:$0xff]  ;;  %331 = vst [vmem:[%s6392_s27 + $0x78] sm:$0xff] %v330_v15  ;;  %v336_v18 = vld [vmem:[%s6387_s4 + $0x90] sm:$0xff] }
  0x33   : > { %333 = vst [vmem:[%s6392_s27 + $0x80] sm:$0xff] %v332_v16  ;;  %335 = vst [vmem:[%s6392_s27 + $0x88] sm:$0xff] %v334_v17  ;;  %v338_v19 = vld [vmem:[%s6387_s4 + $0x98] sm:$0xff]  ;;  %v340_v20 = vld [vmem:[%s6387_s4 + $0xa0] sm:$0xff] }
  0x34   : > { %337 = vst [vmem:[%s6392_s27 + $0x90] sm:$0xff] %v336_v18  ;;  %339 = vst [vmem:[%s6392_s27 + $0x98] sm:$0xff] %v338_v19  ;;  %v342_v21 = vld [vmem:[%s6387_s4 + $0xa8] sm:$0xff]  ;;  %v344_v22 = vld [vmem:[%s6387_s4 + $0xb0] sm:$0xff] }
  0x35   : > { %341 = vst [vmem:[%s6392_s27 + $0xa0] sm:$0xff] %v340_v20  ;;  %v346_v23 = vld [vmem:[%s6387_s4 + $0xb8] sm:$0xff]  ;;  %343 = vst [vmem:[%s6392_s27 + $0xa8] sm:$0xff] %v342_v21  ;;  %v348_v24 = vld [vmem:[%s6387_s4 + $0xc0] sm:$0xff] }
  0x36   : > { %345 = vst [vmem:[%s6392_s27 + $0xb0] sm:$0xff] %v344_v22  ;;  %347 = vst [vmem:[%s6392_s27 + $0xb8] sm:$0xff] %v346_v23  ;;  %v350_v25 = vld [vmem:[%s6387_s4 + $0xc8] sm:$0xff]  ;;  %v352_v26 = vld [vmem:[%s6387_s4 + $0xd0] sm:$0xff] }
  0x37   : > { %349 = vst [vmem:[%s6392_s27 + $0xc0] sm:$0xff] %v348_v24  ;;  %351 = vst [vmem:[%s6392_s27 + $0xc8] sm:$0xff] %v350_v25  ;;  %v354_v27 = vld [vmem:[%s6387_s4 + $0xd8] sm:$0xff]  ;;  %v356_v28 = vld [vmem:[%s6387_s4 + $0xe0] sm:$0xff] }
  0x38   : > { %353 = vst [vmem:[%s6392_s27 + $0xd0] sm:$0xff] %v352_v26  ;;  %v358_v29 = vld [vmem:[%s6387_s4 + $0xe8] sm:$0xff]  ;;  %355 = vst [vmem:[%s6392_s27 + $0xd8] sm:$0xff] %v354_v27  ;;  %v360_v30 = vld [vmem:[%s6387_s4 + $0xf0] sm:$0xff] }
  0x39   : > { %357 = vst [vmem:[%s6392_s27 + $0xe0] sm:$0xff] %v356_v28  ;;  %359 = vst [vmem:[%s6392_s27 + $0xe8] sm:$0xff] %v358_v29  ;;  %v362_v31 = vld [vmem:[%s6387_s4 + $0xf8] sm:$0xff]  ;;  %v364_v32 = vld [vmem:[%s6387_s4 + $0x200] sm:$0xff] }
  0x3a   : > { %361 = vst [vmem:[%s6392_s27 + $0xf0] sm:$0xff] %v360_v30  ;;  %363 = vst [vmem:[%s6392_s27 + $0xf8] sm:$0xff] %v362_v31  ;;  %v366_v33 = vld [vmem:[%s6387_s4 + $0x208] sm:$0xff]  ;;  %v368_v34 = vld [vmem:[%s6387_s4 + $0x210] sm:$0xff] }
  0x3b   : > { %365 = vst [vmem:[%s6392_s27 + $0x100] sm:$0xff] %v364_v32  ;;  %v370_v35 = vld [vmem:[%s6387_s4 + $0x218] sm:$0xff]  ;;  %367 = vst [vmem:[%s6392_s27 + $0x108] sm:$0xff] %v366_v33  ;;  %v372_v36 = vld [vmem:[%s6387_s4 + $0x220] sm:$0xff] }
  0x3c   : > { %369 = vst [vmem:[%s6392_s27 + $0x110] sm:$0xff] %v368_v34  ;;  %371 = vst [vmem:[%s6392_s27 + $0x118] sm:$0xff] %v370_v35  ;;  %v374_v37 = vld [vmem:[%s6387_s4 + $0x228] sm:$0xff]  ;;  %v376_v38 = vld [vmem:[%s6387_s4 + $0x230] sm:$0xff] }
  0x3d   : > { %373 = vst [vmem:[%s6392_s27 + $0x120] sm:$0xff] %v372_v36  ;;  %375 = vst [vmem:[%s6392_s27 + $0x128] sm:$0xff] %v374_v37  ;;  %v378_v39 = vld [vmem:[%s6387_s4 + $0x238] sm:$0xff]  ;;  %v380_v40 = vld [vmem:[%s6387_s4 + $0x240] sm:$0xff] }
  0x3e   : > { %377 = vst [vmem:[%s6392_s27 + $0x130] sm:$0xff] %v376_v38  ;;  %v382_v41 = vld [vmem:[%s6387_s4 + $0x248] sm:$0xff]  ;;  %379 = vst [vmem:[%s6392_s27 + $0x138] sm:$0xff] %v378_v39  ;;  %v384_v42 = vld [vmem:[%s6387_s4 + $0x250] sm:$0xff] }
  0x3f   : > { %381 = vst [vmem:[%s6392_s27 + $0x140] sm:$0xff] %v380_v40  ;;  %383 = vst [vmem:[%s6392_s27 + $0x148] sm:$0xff] %v382_v41  ;;  %v386_v43 = vld [vmem:[%s6387_s4 + $0x258] sm:$0xff]  ;;  %v388_v44 = vld [vmem:[%s6387_s4 + $0x260] sm:$0xff] }
  0x40   : > { %385 = vst [vmem:[%s6392_s27 + $0x150] sm:$0xff] %v384_v42  ;;  %387 = vst [vmem:[%s6392_s27 + $0x158] sm:$0xff] %v386_v43  ;;  %v390_v45 = vld [vmem:[%s6387_s4 + $0x268] sm:$0xff]  ;;  %v392_v46 = vld [vmem:[%s6387_s4 + $0x270] sm:$0xff] }
  0x41   : > { %389 = vst [vmem:[%s6392_s27 + $0x160] sm:$0xff] %v388_v44  ;;  %v394_v47 = vld [vmem:[%s6387_s4 + $0x278] sm:$0xff]  ;;  %391 = vst [vmem:[%s6392_s27 + $0x168] sm:$0xff] %v390_v45  ;;  %v396_v48 = vld [vmem:[%s6387_s4 + $0x280] sm:$0xff] }
  0x42   : > { %393 = vst [vmem:[%s6392_s27 + $0x170] sm:$0xff] %v392_v46  ;;  %395 = vst [vmem:[%s6392_s27 + $0x178] sm:$0xff] %v394_v47  ;;  %v398_v49 = vld [vmem:[%s6387_s4 + $0x288] sm:$0xff]  ;;  %v400_v50 = vld [vmem:[%s6387_s4 + $0x290] sm:$0xff] }
  0x43   : > { %397 = vst [vmem:[%s6392_s27 + $0x180] sm:$0xff] %v396_v48  ;;  %399 = vst [vmem:[%s6392_s27 + $0x188] sm:$0xff] %v398_v49  ;;  %v402_v51 = vld [vmem:[%s6387_s4 + $0x298] sm:$0xff]  ;;  %v404_v52 = vld [vmem:[%s6387_s4 + $0x2a0] sm:$0xff] }
  0x44   : > { %401 = vst [vmem:[%s6392_s27 + $0x190] sm:$0xff] %v400_v50  ;;  %v406_v53 = vld [vmem:[%s6387_s4 + $0x2a8] sm:$0xff]  ;;  %403 = vst [vmem:[%s6392_s27 + $0x198] sm:$0xff] %v402_v51  ;;  %v408_v54 = vld [vmem:[%s6387_s4 + $0x2b0] sm:$0xff] }
  0x45   : > { %405 = vst [vmem:[%s6392_s27 + $0x1a0] sm:$0xff] %v404_v52  ;;  %407 = vst [vmem:[%s6392_s27 + $0x1a8] sm:$0xff] %v406_v53  ;;  %v410_v55 = vld [vmem:[%s6387_s4 + $0x2b8] sm:$0xff]  ;;  %v412_v56 = vld [vmem:[%s6387_s4 + $0x2c0] sm:$0xff] }
  0x46   : > { %409 = vst [vmem:[%s6392_s27 + $0x1b0] sm:$0xff] %v408_v54  ;;  %411 = vst [vmem:[%s6392_s27 + $0x1b8] sm:$0xff] %v410_v55  ;;  %v414_v57 = vld [vmem:[%s6387_s4 + $0x2c8] sm:$0xff]  ;;  %v416_v58 = vld [vmem:[%s6387_s4 + $0x2d0] sm:$0xff] }
  0x47   : > { %413 = vst [vmem:[%s6392_s27 + $0x1c0] sm:$0xff] %v412_v56  ;;  %v418_v59 = vld [vmem:[%s6387_s4 + $0x2d8] sm:$0xff]  ;;  %415 = vst [vmem:[%s6392_s27 + $0x1c8] sm:$0xff] %v414_v57  ;;  %v420_v60 = vld [vmem:[%s6387_s4 + $0x2e0] sm:$0xff] }
  0x48   : > { %417 = vst [vmem:[%s6392_s27 + $0x1d0] sm:$0xff] %v416_v58  ;;  %419 = vst [vmem:[%s6392_s27 + $0x1d8] sm:$0xff] %v418_v59  ;;  %v422_v61 = vld [vmem:[%s6387_s4 + $0x2e8] sm:$0xff]  ;;  %v424_v62 = vld [vmem:[%s6387_s4 + $0x2f0] sm:$0xff] }
  0x49   : > { %421 = vst [vmem:[%s6392_s27 + $0x1e0] sm:$0xff] %v420_v60  ;;  %423 = vst [vmem:[%s6392_s27 + $0x1e8] sm:$0xff] %v422_v61  ;;  %v426_v63 = vld [vmem:[%s6387_s4 + $0x2f8] sm:$0xff] }
  0x4a   : > { %425 = vst [vmem:[%s6392_s27 + $0x1f0] sm:$0xff] %v424_v62  ;;  %427 = vst [vmem:[%s6392_s27 + $0x1f8] sm:$0xff] %v426_v63 }
  0x4b PF: > { %433 = sbr.rel (!%p6356_p7) target bundleno = 97 (0x61), region = 58  ;;  %s435_s5 = sand.u32 (%p6356_p7), 1, %s6211_s13  }
  0x4c   : > { %s5892_s26 = sshll.u32 (%p6356_p7), %s6231_s18, 6  ;;  %s5621_s21 = sshll.u32 (%p6356_p7), %s435_s5, 8 }
  0x4d   : > { %s440_s28 = sadd.s32 (%p6356_p7), %s6235_s19, %s5892_s26  ;;  %s6532_s3 = scalar_lea.vmem (%p6356_p7), [#allocation4], %s5621_s21 }
  0x4e   : > { %s5624_s22 = sshll.u32 (%p6356_p7), %s440_s28, 3 }
  0x4f   : > { %s6527_s24 = scalar_lea.vmem (%p6356_p7), %s9538_s1, %s5624_s22 }
  0x50   : > { %v533_v0 = vld [vmem:[%s6527_s24] sm:$0xff]  ;;  %v535_v1 = vld [vmem:[%s6527_s24 + $0x10] sm:$0xff] }
  0x51   : > { %v537_v2 = vld [vmem:[%s6527_s24 + $0x20] sm:$0xff]  ;;  %534 = vst [vmem:[%s6532_s3] sm:$0xff] %v533_v0  ;;  %536 = vst [vmem:[%s6532_s3 + $0x8] sm:$0xff] %v535_v1  ;;  %v539_v3 = vld [vmem:[%s6527_s24 + $0x30] sm:$0xff] }
  0x52   : > { %538 = vst [vmem:[%s6532_s3 + $0x10] sm:$0xff] %v537_v2  ;;  %v541_v4 = vld [vmem:[%s6527_s24 + $0x40] sm:$0xff]  ;;  %v543_v5 = vld [vmem:[%s6527_s24 + $0x50] sm:$0xff]  ;;  %540 = vst [vmem:[%s6532_s3 + $0x18] sm:$0xff] %v539_v3 }
  0x53   : > { %542 = vst [vmem:[%s6532_s3 + $0x20] sm:$0xff] %v541_v4  ;;  %544 = vst [vmem:[%s6532_s3 + $0x28] sm:$0xff] %v543_v5  ;;  %v545_v6 = vld [vmem:[%s6527_s24 + $0x60] sm:$0xff]  ;;  %v547_v7 = vld [vmem:[%s6527_s24 + $0x70] sm:$0xff] }
  0x54   : > { %v549_v8 = vld [vmem:[%s6527_s24 + $0x80] sm:$0xff]  ;;  %546 = vst [vmem:[%s6532_s3 + $0x30] sm:$0xff] %v545_v6  ;;  %548 = vst [vmem:[%s6532_s3 + $0x38] sm:$0xff] %v547_v7  ;;  %v551_v9 = vld [vmem:[%s6527_s24 + $0x90] sm:$0xff] }
  0x55   : > { %550 = vst [vmem:[%s6532_s3 + $0x40] sm:$0xff] %v549_v8  ;;  %v553_v10 = vld [vmem:[%s6527_s24 + $0xa0] sm:$0xff]  ;;  %v555_v11 = vld [vmem:[%s6527_s24 + $0xb0] sm:$0xff]  ;;  %552 = vst [vmem:[%s6532_s3 + $0x48] sm:$0xff] %v551_v9 }
  0x56   : > { %554 = vst [vmem:[%s6532_s3 + $0x50] sm:$0xff] %v553_v10  ;;  %556 = vst [vmem:[%s6532_s3 + $0x58] sm:$0xff] %v555_v11  ;;  %v557_v12 = vld [vmem:[%s6527_s24 + $0xc0] sm:$0xff]  ;;  %v559_v13 = vld [vmem:[%s6527_s24 + $0xd0] sm:$0xff] }
  0x57   : > { %v561_v14 = vld [vmem:[%s6527_s24 + $0xe0] sm:$0xff]  ;;  %558 = vst [vmem:[%s6532_s3 + $0x60] sm:$0xff] %v557_v12  ;;  %560 = vst [vmem:[%s6532_s3 + $0x68] sm:$0xff] %v559_v13  ;;  %v563_v15 = vld [vmem:[%s6527_s24 + $0xf0] sm:$0xff] }
  0x58   : > { %562 = vst [vmem:[%s6532_s3 + $0x70] sm:$0xff] %v561_v14  ;;  %v565_v16 = vld [vmem:[%s6527_s24 + $0x100] sm:$0xff]  ;;  %v567_v17 = vld [vmem:[%s6527_s24 + $0x110] sm:$0xff]  ;;  %564 = vst [vmem:[%s6532_s3 + $0x78] sm:$0xff] %v563_v15 }
  0x59   : > { %566 = vst [vmem:[%s6532_s3 + $0x80] sm:$0xff] %v565_v16  ;;  %568 = vst [vmem:[%s6532_s3 + $0x88] sm:$0xff] %v567_v17  ;;  %v569_v18 = vld [vmem:[%s6527_s24 + $0x120] sm:$0xff]  ;;  %v571_v19 = vld [vmem:[%s6527_s24 + $0x130] sm:$0xff] }
  0x5a   : > { %v573_v20 = vld [vmem:[%s6527_s24 + $0x140] sm:$0xff]  ;;  %570 = vst [vmem:[%s6532_s3 + $0x90] sm:$0xff] %v569_v18  ;;  %572 = vst [vmem:[%s6532_s3 + $0x98] sm:$0xff] %v571_v19  ;;  %v575_v21 = vld [vmem:[%s6527_s24 + $0x150] sm:$0xff] }
  0x5b   : > { %574 = vst [vmem:[%s6532_s3 + $0xa0] sm:$0xff] %v573_v20  ;;  %v577_v22 = vld [vmem:[%s6527_s24 + $0x160] sm:$0xff]  ;;  %v579_v23 = vld [vmem:[%s6527_s24 + $0x170] sm:$0xff]  ;;  %576 = vst [vmem:[%s6532_s3 + $0xa8] sm:$0xff] %v575_v21 }
  0x5c   : > { %578 = vst [vmem:[%s6532_s3 + $0xb0] sm:$0xff] %v577_v22  ;;  %580 = vst [vmem:[%s6532_s3 + $0xb8] sm:$0xff] %v579_v23  ;;  %v581_v24 = vld [vmem:[%s6527_s24 + $0x180] sm:$0xff]  ;;  %v583_v25 = vld [vmem:[%s6527_s24 + $0x190] sm:$0xff] }
  0x5d   : > { %v585_v26 = vld [vmem:[%s6527_s24 + $0x1a0] sm:$0xff]  ;;  %582 = vst [vmem:[%s6532_s3 + $0xc0] sm:$0xff] %v581_v24  ;;  %584 = vst [vmem:[%s6532_s3 + $0xc8] sm:$0xff] %v583_v25  ;;  %v587_v27 = vld [vmem:[%s6527_s24 + $0x1b0] sm:$0xff] }
  0x5e   : > { %586 = vst [vmem:[%s6532_s3 + $0xd0] sm:$0xff] %v585_v26  ;;  %v589_v28 = vld [vmem:[%s6527_s24 + $0x1c0] sm:$0xff]  ;;  %v591_v29 = vld [vmem:[%s6527_s24 + $0x1d0] sm:$0xff]  ;;  %588 = vst [vmem:[%s6532_s3 + $0xd8] sm:$0xff] %v587_v27 }
  0x5f   : > { %590 = vst [vmem:[%s6532_s3 + $0xe0] sm:$0xff] %v589_v28  ;;  %592 = vst [vmem:[%s6532_s3 + $0xe8] sm:$0xff] %v591_v29  ;;  %v593_v30 = vld [vmem:[%s6527_s24 + $0x1e0] sm:$0xff]  ;;  %v595_v31 = vld [vmem:[%s6527_s24 + $0x1f0] sm:$0xff] }
  0x60   : > { %594 = vst [vmem:[%s6532_s3 + $0xf0] sm:$0xff] %v593_v30  ;;  %596 = vst [vmem:[%s6532_s3 + $0xf8] sm:$0xff] %v595_v31 }
  0x61 PF: > { %p5625_p3 = scmp.ge.s32.totalorder %s6239_s20, 1  ;;  %p601_p4 = scmp.lt.s32.totalorder %s6239_s20, 5 }
  0x63   : > { %p602_p5 = pnand %p5625_p3, %p601_p4 }
  0x65   : > { %605 = sbr.rel (%p602_p5) target bundleno = 1366 (0x556), region = 96 }
  0x6a   : > { %s608_s0 = sand.u32 1, %s6215_s14   ;;  %s615_s4 = sand.u32 1, %s6207_s12  }
  0x6b   : > { %s5626_s27 = sshll.u32 %s608_s0, 9  ;;  %s5627_s5 = sshll.u32 %s615_s4, 8 }
  0x6c   : > { %s637_s26 = sand.u32 1, %s6199_s10   ;;  %s6602_s21 = scalar_lea.vmem [#allocation3], %s5626_s27 }
  0x6d   : > { %s5628_s24 = sshll.u32 %s637_s26, 4  ;;  %s6604_s28 = scalar_lea.vmem [#allocation4], %s5627_s5 }
  0x6e   : > { %s6606_s22 = scalar_lea.vmem [#allocation5], %s5628_s24  ;;  %p5629_p6 = scmp.ne.s32.totalorder %s6223_s16, 0 }
  0x70   : > { %647 = sbr.rel (%p5629_p6) target bundleno = 119 (0x77), region = 108 }
  0x75   : > { %v6241_v32 = vmov inf  }
  0x76   : > { %648 = vst [vmem:[#allocation2] sm:$0xff] %v6241_v32  ;;  %649 = vst [vmem:[#allocation2 + $0x8] sm:$0xff] %v6241_v32 }
  0x77 PF: > { %v6610_v33 = vld [vmem:[%s6602_s21 + $0x10] sm:$0xff]  ;;  %v6613_v34 = vld [vmem:[%s6602_s21] sm:$0xff]  ;;  %v9542_v35 = vmov 0   ;;  %v6620_v36 = vld [vmem:[%s6602_s21 + $0x18] sm:$0xff]  ;;  %v9541_v3 = vmov 1   ;;  %v9543_v22 = vmov 2  }
  0x78   : > { %6009 = vset.pattern.permute.xlu1 %v9542_v35  ;;  %6008 = vset.pattern.permute.xlu0 %v9542_v35  ;;  %v6623_v37 = vld [vmem:[%s6602_s21 + $0x8] sm:$0xff]  ;;  %v6631_v39 = vld [vmem:[%s6602_s21 + $0x20] sm:$0xff]  ;;  %v6636_v40 = vld [vmem:[%s6602_s21 + $0x38] sm:$0xff]  ;;  %p5886_p7 = scmp.ne.s32.totalorder %s6223_s16, 1 }
  0x79   : > { %694 = vperm.xlu1 %6009, %v6610_v33   ;;  %684 = vperm.xlu0 %6008, %v6613_v34   ;;  %v6628_v38 = vld [vmem:[%s6602_s21 + $0x28] sm:$0xff]  ;;  %v6639_v41 = vld [vmem:[%s6602_s21 + $0x30] sm:$0xff]  ;;  %v6647_v43 = vld [vmem:[%s6602_s21 + $0x40] sm:$0xff] }
  0x7a   : > { %v6644_v42 = vld [vmem:[%s6602_s21 + $0x48] sm:$0xff]  ;;  %v6652_v44 = vld [vmem:[%s6602_s21 + $0x58] sm:$0xff]  ;;  %v6655_v45 = vld [vmem:[%s6602_s21 + $0x50] sm:$0xff] }
  0x7b   : > { %v6660_v46 = vld [vmem:[%s6602_s21 + $0x68] sm:$0xff]  ;;  %v6663_v47 = vld [vmem:[%s6602_s21 + $0x60] sm:$0xff]  ;;  %v6668_v48 = vld [vmem:[%s6602_s21 + $0x78] sm:$0xff] }
  0x7c   : > { %v6671_v49 = vld [vmem:[%s6602_s21 + $0x70] sm:$0xff]  ;;  %v6676_v50 = vld [vmem:[%s6602_s21 + $0x88] sm:$0xff]  ;;  %v6679_v51 = vld [vmem:[%s6602_s21 + $0x80] sm:$0xff] }
  0x7d   : > { %699 = vperm.xlu1 %6009, %v6620_v36   ;;  %689 = vperm.xlu0 %6008, %v6623_v37   ;;  %v6684_v52 = vld [vmem:[%s6602_s21 + $0x98] sm:$0xff]  ;;  %v6687_v53 = vld [vmem:[%s6602_s21 + $0x90] sm:$0xff]  ;;  %v6692_v54 = vld [vmem:[%s6602_s21 + $0xa8] sm:$0xff] }
  0x7e   : > { %v6695_v55 = vld [vmem:[%s6602_s21 + $0xa0] sm:$0xff]  ;;  %v6700_v56 = vld [vmem:[%s6602_s21 + $0xb8] sm:$0xff]  ;;  %v6703_v57 = vld [vmem:[%s6602_s21 + $0xb0] sm:$0xff] }
  0x7f   : > { %v6708_v58 = vld [vmem:[%s6602_s21 + $0xc8] sm:$0xff]  ;;  %v6711_v59 = vld [vmem:[%s6602_s21 + $0xc0] sm:$0xff]  ;;  %v6716_v60 = vld [vmem:[%s6602_s21 + $0xd8] sm:$0xff] }
  0x80   : > { %v6719_v61 = vld [vmem:[%s6602_s21 + $0xd0] sm:$0xff]  ;;  %v6724_v62 = vld [vmem:[%s6602_s21 + $0xe8] sm:$0xff]  ;;  %v6727_v63 = vld [vmem:[%s6602_s21 + $0xe0] sm:$0xff] }
  0x81   : > { %709 = vperm.xlu1 %6009, %v6628_v38   ;;  %704 = vperm.xlu0 %6008, %v6631_v39   ;;  %v6732_v0 = vld [vmem:[%s6602_s21 + $0xf8] sm:$0xff]  ;;  %v6735_v1 = vld [vmem:[%s6602_s21 + $0xf0] sm:$0xff]  ;;  %v5631_v2 = vld [vmem:[%s6602_s21 + $0x108] sm:$0xff] }
  0x82   : > { %v5634_v4 = vld [vmem:[%s6602_s21 + $0x120] sm:$0xff]  ;;  %v5636_v5 = vld [vmem:[%s6602_s21 + $0x130] sm:$0xff] }
  0x83   : > { %v5638_v6 = vld [vmem:[%s6602_s21 + $0x140] sm:$0xff]  ;;  %v5640_v7 = vld [vmem:[%s6602_s21 + $0x150] sm:$0xff] }
  0x84   : > { %v5642_v8 = vld [vmem:[%s6602_s21 + $0x160] sm:$0xff]  ;;  %v5644_v9 = vld [vmem:[%s6602_s21 + $0x170] sm:$0xff] }
  0x85   : > { %719 = vperm.xlu1 %6009, %v6636_v40   ;;  %714 = vperm.xlu0 %6008, %v6639_v41   ;;  %v5646_v10 = vld [vmem:[%s6602_s21 + $0x180] sm:$0xff]  ;;  %v5648_v11 = vld [vmem:[%s6602_s21 + $0x190] sm:$0xff] }
  0x86   : > { %v5650_v12 = vld [vmem:[%s6602_s21 + $0x1a0] sm:$0xff]  ;;  %v5652_v13 = vld [vmem:[%s6602_s21 + $0x1b0] sm:$0xff] }
  0x87   : > { %v5654_v14 = vld [vmem:[%s6602_s21 + $0x1c0] sm:$0xff]  ;;  %v5656_v15 = vld [vmem:[%s6602_s21 + $0x1d0] sm:$0xff] }
  0x88   : > { %v5658_v16 = vld [vmem:[%s6602_s21 + $0x1e0] sm:$0xff]  ;;  %v5660_v17 = vld [vmem:[%s6602_s21 + $0x1f0] sm:$0xff] }
  0x89   : > { %729 = vperm.xlu1 %6009, %v6644_v42   ;;  %724 = vperm.xlu0 %6008, %v6647_v43  }
  0x8d   : > { %739 = vperm.xlu1 %6009, %v6652_v44   ;;  %734 = vperm.xlu0 %6008, %v6655_v45  }
  0x91   : > { %749 = vperm.xlu1 %6009, %v6660_v46   ;;  %744 = vperm.xlu0 %6008, %v6663_v47  }
  0x95   : > { %759 = vperm.xlu1 %6009, %v6668_v48   ;;  %754 = vperm.xlu0 %6008, %v6671_v49  }
  0x99   : > { %838 = vperm.xlu1 %6009, %v6676_v50   ;;  %833 = vperm.xlu0 %6008, %v6679_v51  }
  0x9d   : > { %848 = vperm.xlu1 %6009, %v6684_v52   ;;  %843 = vperm.xlu0 %6008, %v6687_v53  }
  0xa1   : > { %858 = vperm.xlu1 %6009, %v6692_v54   ;;  %853 = vperm.xlu0 %6008, %v6695_v55  }
  0xa5   : > { %868 = vperm.xlu1 %6009, %v6700_v56   ;;  %863 = vperm.xlu0 %6008, %v6703_v57  }
  0xa9   : > { %878 = vperm.xlu1 %6009, %v6708_v58   ;;  %873 = vperm.xlu0 %6008, %v6711_v59  }
  0xad   : > { %888 = vperm.xlu1 %6009, %v6716_v60   ;;  %883 = vperm.xlu0 %6008, %v6719_v61  }
  0xb1   : > { %898 = vperm.xlu1 %6009, %v6724_v62   ;;  %893 = vperm.xlu0 %6008, %v6727_v63  }
  0xb5   : > { %908 = vperm.xlu1 %6009, %v6732_v0   ;;  %903 = vperm.xlu0 %6008, %v6735_v1  }
  0xb9   : > { %6010 = vset.pattern.permute.xlu1 %v9541_v3  ;;  %3106 = vperm.xlu0 %6008, %v5631_v2   ;;  %v6795_v2 = vld [vmem:[%s6604_s28] sm:$0xff] }
  0xba   : > { %991 = vperm.xlu1 %6010, %v6623_v37   ;;  %9687 = vst [vmem:[#allocation9_spill] sm:$0xff] %v6795_v2 }
  0xbd   : > { %3121 = vperm.xlu0 %6008, %v5634_v4   ;;  %v6798_v4 = vld [vmem:[%s6604_s28 + $0x20] sm:$0xff] }
  0xbe   : > { %996 = vperm.xlu1 %6010, %v6610_v33   ;;  %9688 = vst [vmem:[#allocation10_spill] sm:$0xff] %v6798_v4 }
  0xc1   : > { %3131 = vperm.xlu0 %6008, %v5636_v5   ;;  %v6807_v5 = vld [vmem:[%s6604_s28 + $0x18] sm:$0xff] }
  0xc2   : > { %1006 = vperm.xlu1 %6010, %v6631_v39  }
  0xc5   : > { %3141 = vperm.xlu0 %6008, %v5638_v6  }
  0xc6   : > { %1016 = vperm.xlu1 %6010, %v6639_v41  }
  0xc9   : > { %3151 = vperm.xlu0 %6008, %v5640_v7   ;;  %v6811_v7 = vld [vmem:[%s6604_s28 + $0x30] sm:$0xff] }
  0xca   : > { %1026 = vperm.xlu1 %6010, %v6647_v43  }
  0xcd   : > { %3161 = vperm.xlu0 %6008, %v5642_v8  }
  0xce   : > { %1036 = vperm.xlu1 %6010, %v6655_v45  }
  0xd1   : > { %3171 = vperm.xlu0 %6008, %v5644_v9  }
  0xd2   : > { %1046 = vperm.xlu1 %6010, %v6663_v47  }
  0xd5   : > { %3250 = vperm.xlu0 %6008, %v5646_v10   ;;  %v6816_v10 = vld [vmem:[%s6604_s28 + $0x8] sm:$0xff] }
  0xd6   : > { %1056 = vperm.xlu1 %6010, %v6671_v49   ;;  %9689 = vst [vmem:[#allocation11_spill] sm:$0xff] %v6816_v10 }
  0xd9   : > { %3260 = vperm.xlu0 %6008, %v5648_v11   ;;  %v6819_v11 = vld [vmem:[%s6604_s28 + $0x28] sm:$0xff] }
  0xda   : > { %1135 = vperm.xlu1 %6010, %v6679_v51   ;;  %9690 = vst [vmem:[#allocation12_spill] sm:$0xff] %v6819_v11 }
  0xdd   : > { %3270 = vperm.xlu0 %6008, %v5650_v12   ;;  %v6822_v12 = vld [vmem:[%s6604_s28 + $0x40] sm:$0xff] }
  0xde   : > { %1145 = vperm.xlu1 %6010, %v6687_v53   ;;  %9691 = vst [vmem:[#allocation13_spill] sm:$0xff] %v6822_v12 }
  0xe1   : > { %3280 = vperm.xlu0 %6008, %v5652_v13  }
  0xe2   : > { %1155 = vperm.xlu1 %6010, %v6695_v55  }
  0xe5   : > { %3290 = vperm.xlu0 %6008, %v5654_v14   ;;  %v6829_v14 = vld [vmem:[%s6604_s28 + $0x58] sm:$0xff] }
  0xe6   : > { %1165 = vperm.xlu1 %6010, %v6703_v57  }
  0xe9   : > { %3300 = vperm.xlu0 %6008, %v5656_v15   ;;  %v6832_v15 = vld [vmem:[%s6604_s28 + $0x50] sm:$0xff] }
  0xea   : > { %1175 = vperm.xlu1 %6010, %v6711_v59   ;;  %9693 = vst [vmem:[#allocation15_spill] sm:$0xff] %v6832_v15 }
  0xed   : > { %3310 = vperm.xlu0 %6008, %v5658_v16  }
  0xee   : > { %1185 = vperm.xlu1 %6010, %v6719_v61  }
  0xf1   : > { %3320 = vperm.xlu0 %6008, %v5660_v17  }
  0xf2   : > { %1195 = vperm.xlu1 %6010, %v6727_v63  }
  0xf4   : > { %v6770_v18 = vpop.permute.xlu1 %694  ;;  %v685_v19 = vpop.permute.xlu0 %684 }
  0xf5   : > { %6018 = vset.pattern.permute.xlu0 %v9541_v3 }
  0xf6   : > { %1205 = vperm.xlu1 %6010, %v6735_v1   ;;  %986 = vperm.xlu0 %6018, %v6613_v34  }
  0xf8   : > { %v700_v20 = vpop.permute.xlu1 %699  ;;  %v690_v21 = vpop.permute.xlu0 %689 }
  0xf9   : > { %v765_v16 = vadd.f32 %v700_v20, %v6807_v5 }
  0xfa   : > { %6011 = vset.pattern.permute.xlu1 %v9543_v22  ;;  %1001 = vperm.xlu0 %6018, %v6620_v36   ;;  %v6845_v22 = vld [vmem:[%s6604_s28 + $0x78] sm:$0xff] }
  0xfb   : > { %1288 = vperm.xlu1 %6011, %v6613_v34  }
  0xfc   : > { %v710_v23 = vpop.permute.xlu1 %709  ;;  %v705_v24 = vpop.permute.xlu0 %704 }
  0xfd   : > { %v766_v6 = vadd.f32 %v705_v24, %v6798_v4  ;;  %v767_v24 = vadd.f32 %v710_v23, %v6819_v11  ;;  %v6848_v4 = vld [vmem:[%s6604_s28 + $0x70] sm:$0xff]  ;;  %v6855_v23 = vld [vmem:[%s6604_s28 + $0x68] sm:$0xff] }
  0xfe   : > { %1011 = vperm.xlu0 %6018, %v6628_v38  }
  0xff   : > { %1298 = vperm.xlu1 %6011, %v6610_v33  }
 0x100   : > { %v720_v25 = vpop.permute.xlu1 %719  ;;  %v715_v26 = vpop.permute.xlu0 %714 }
 0x101   : > { %v768_v17 = vadd.f32 %v715_v26, %v6811_v7 }
 0x102   : > { %1021 = vperm.xlu0 %6018, %v6636_v40  }
 0x103   : > { %1303 = vperm.xlu1 %6011, %v6620_v36  }
 0x104   : > { %v730_v27 = vpop.permute.xlu1 %729  ;;  %v725_v28 = vpop.permute.xlu0 %724 }
 0x105   : > { %v770_v35 = vadd.f32 %v725_v28, %v6822_v12 }
 0x106   : > { %1031 = vperm.xlu0 %6018, %v6644_v42  }
 0x107   : > { %1313 = vperm.xlu1 %6011, %v6628_v38  }
 0x108   : > { %v740_v29 = vpop.permute.xlu1 %739  ;;  %v735_v30 = vpop.permute.xlu0 %734 }
 0x10a   : > { %1041 = vperm.xlu0 %6018, %v6652_v44  }
 0x10b   : > { %1323 = vperm.xlu1 %6011, %v6636_v40  }
 0x10c   : > { %v750_v31 = vpop.permute.xlu1 %749  ;;  %v745_v32 = vpop.permute.xlu0 %744 }
 0x10d   : > { %v775_v11 = vadd.f32 %v750_v31, %v6855_v23  ;;  %v6879_v31 = vld [vmem:[%s6604_s28 + $0xb0] sm:$0xff] }
 0x10e   : > { %1051 = vperm.xlu0 %6018, %v6660_v46   ;;  %9696 = vst [vmem:[#allocation18_spill] sm:$0xff] %v6879_v31 }
 0x10f   : > { %1333 = vperm.xlu1 %6011, %v6644_v42   ;;  %v6802_v42 = vld [vmem:[%s6604_s28 + $0x38] sm:$0xff] }
 0x110   : > { %v760_v34 = vpop.permute.xlu1 %759  ;;  %v755_v36 = vpop.permute.xlu0 %754  ;;  %v769_v13 = vadd.f32 %v720_v25, %v6802_v42  ;;  %v6841_v25 = vld [vmem:[%s6604_s28 + $0x48] sm:$0xff] }
 0x111   : > { %v777_v12 = vadd.f32 %v760_v34, %v6845_v22  ;;  %v6871_v34 = vld [vmem:[%s6604_s28 + $0xa0] sm:$0xff] }
 0x112   : > { %1061 = vperm.xlu0 %6018, %v6668_v48  }
 0x113   : > { %1343 = vperm.xlu1 %6011, %v6652_v44   ;;  %v762_v44 = vadd.f32 %v685_v19, %v6795_v2  ;;  %v763_v19 = vadd.f32 %v690_v21, %v6816_v10  ;;  %v772_v21 = vadd.f32 %v735_v30, %v6832_v15  ;;  %v781_v10 = vmin.f32 %v765_v16, %v769_v13 }
 0x114   : > { %v6790_v38 = vpop.permute.xlu1 %838  ;;  %v6792_v40 = vpop.permute.xlu0 %833 }
 0x115   : > { %v778_v3 = vmin.f32 %v762_v44, %v766_v6  ;;  %v6858_v44 = vld [vmem:[%s6604_s28 + $0x60] sm:$0xff]  ;;  %v771_v6 = vadd.f32 %v730_v27, %v6841_v25 }
 0x116   : > { %1140 = vperm.xlu0 %6018, %v6676_v50   ;;  %v6868_v27 = vld [vmem:[%s6604_s28 + $0x80] sm:$0xff] }
 0x117   : > { %1353 = vperm.xlu1 %6011, %v6660_v46   ;;  %v6825_v46 = vld [vmem:[%s6604_s28 + $0x10] sm:$0xff]  ;;  %v782_v30 = vmin.f32 %v778_v3, %v770_v35  ;;  %9694 = vst [vmem:[#allocation16_spill] sm:$0xff] %v6868_v27 }
 0x118   : > { %v6813_v8 = vpop.permute.xlu1 %848  ;;  %v844_v9 = vpop.permute.xlu0 %843  ;;  %9692 = vst [vmem:[#allocation14_spill] sm:$0xff] %v6825_v46  ;;  %v764_v26 = vadd.f32 %v6770_v18, %v6825_v46  ;;  %v776_v18 = vadd.f32 %v755_v36, %v6848_v4  ;;  %v6876_v3 = vld [vmem:[%s6604_s28 + $0x90] sm:$0xff] }
 0x119   : > { %9695 = vst [vmem:[#allocation17_spill] sm:$0xff] %v6876_v3 }
 0x11a   : > { %1150 = vperm.xlu0 %6018, %v6684_v52   ;;  %v780_v28 = vmin.f32 %v764_v26, %v768_v17  ;;  %v774_v17 = vadd.f32 %v745_v32, %v6858_v44  ;;  %v911_v26 = vadd.f32 %v6792_v40, %v6868_v27 }
 0x11b   : > { %1363 = vperm.xlu1 %6011, %v6668_v48   ;;  %v773_v48 = vadd.f32 %v740_v29, %v6829_v14  ;;  %v779_v29 = vmin.f32 %v763_v19, %v767_v24 }
 0x11c   : > { %v859_v20 = vpop.permute.xlu1 %858  ;;  %v854_v2 = vpop.permute.xlu0 %853  ;;  %v784_v46 = vmin.f32 %v780_v28, %v772_v21  ;;  %v786_v24 = vmin.f32 %v782_v30, %v774_v17  ;;  %v913_v21 = vadd.f32 %v844_v9, %v6876_v3  ;;  %v6907_v30 = vld [vmem:[%s6604_s28 + $0x98] sm:$0xff]  ;;  %v6922_v3 = vld [vmem:[%s6604_s28 + $0xe0] sm:$0xff] }
 0x11d   : > { %v785_v15 = vmin.f32 %v781_v10, %v773_v48  ;;  %v6892_v48 = vld [vmem:[%s6604_s28 + $0x88] sm:$0xff] }
 0x11e   : > { %1160 = vperm.xlu0 %6018, %v6692_v54   ;;  %v788_v35 = vmin.f32 %v784_v46, %v776_v18  ;;  %v6885_v46 = vld [vmem:[%s6604_s28 + $0xa8] sm:$0xff] }
 0x11f   : > { %1442 = vperm.xlu1 %6011, %v6676_v50   ;;  %v783_v50 = vmin.f32 %v779_v29, %v771_v6  ;;  %v789_v36 = vmin.f32 %v785_v15, %v777_v12  ;;  %v915_v12 = vadd.f32 %v854_v2, %v6871_v34  ;;  %v6888_v15 = vld [vmem:[%s6604_s28 + $0xc0] sm:$0xff]  ;;  %v6901_v2 = vld [vmem:[%s6604_s28 + $0xc8] sm:$0xff]  ;;  %v6904_v6 = vld [vmem:[%s6604_s28 + $0xd0] sm:$0xff]  ;;  %v916_v17 = vadd.f32 %v859_v20, %v6885_v46 }
 0x120   : > { %v869_v13 = vpop.permute.xlu1 %868  ;;  %v864_v16 = vpop.permute.xlu0 %863  ;;  %9697 = vst [vmem:[#allocation19_spill] sm:$0xff] %v6888_v15 }
 0x121   : > { %v787_v19 = vmin.f32 %v783_v50, %v775_v11  ;;  %v6896_v11 = vld [vmem:[%s6604_s28 + $0xb8] sm:$0xff]  ;;  %v917_v40 = vadd.f32 %v864_v16, %v6879_v31  ;;  %v927_v9 = vmin.f32 %v911_v26, %v915_v12  ;;  %v912_v16 = vadd.f32 %v6790_v38, %v6892_v48 }
 0x122   : > { %1170 = vperm.xlu0 %6018, %v6700_v56   ;;  %v914_v38 = vadd.f32 %v6813_v8, %v6907_v30 }
 0x123   : > { %1452 = vperm.xlu1 %6011, %v6684_v52   ;;  %v791_v52 = vmin.f32 %v788_v35, %v789_v36  ;;  %v790_v29 = vmin.f32 %v786_v24, %v787_v19  ;;  %v6912_v36 = vld [vmem:[%s6604_s28 + $0xd8] sm:$0xff]  ;;  %v6919_v35 = vld [vmem:[%s6604_s28 + $0xe8] sm:$0xff]  ;;  %v929_v20 = vmin.f32 %v913_v21, %v917_v40  ;;  %v6937_v40 = vld [vmem:[%s6604_s28 + $0xf0] sm:$0xff] }
 0x124   : > { %v879_v32 = vpop.permute.xlu1 %878  ;;  %v874_v10 = vpop.permute.xlu0 %873 }
 0x125   : > { %v919_v50 = vadd.f32 %v874_v10, %v6888_v15  ;;  %v792_v19 = vmin.f32 %v790_v29, %v791_v52  ;;  %v920_v24 = vadd.f32 %v879_v32, %v6901_v2  ;;  %v928_v15 = vmin.f32 %v912_v16, %v916_v17  ;;  %v6934_v32 = vld [vmem:[%s6604_s28 + $0xf8] sm:$0xff] }
 0x126   : > { %1180 = vperm.xlu0 %6018, %v6708_v58  }
 0x127   : > { %1462 = vperm.xlu1 %6011, %v6692_v54   ;;  %v918_v54 = vadd.f32 %v869_v13, %v6896_v11  ;;  %v931_v27 = vmin.f32 %v927_v9, %v919_v50  ;;  %v932_v8 = vmin.f32 %v928_v15, %v920_v24  ;;  %v5662_v15 = vld [vmem:[%s6602_s21 + $0x100] sm:$0xff] }
 0x128   : > { %v889_v28 = vpop.permute.xlu1 %888  ;;  %v884_v18 = vpop.permute.xlu0 %883 }
 0x129   : > { %v921_v10 = vadd.f32 %v884_v18, %v6904_v6  ;;  %v922_v13 = vadd.f32 %v889_v28, %v6912_v36  ;;  %v930_v21 = vmin.f32 %v914_v38, %v918_v54 }
 0x12a   : > { %1190 = vperm.xlu0 %6018, %v6716_v60  }
 0x12b   : > { %1472 = vperm.xlu1 %6011, %v6700_v56   ;;  %v793_v56 = vrot.slane %v792_v19, 4  ;;  %v933_v18 = vmin.f32 %v929_v20, %v921_v10  ;;  %v934_v28 = vmin.f32 %v930_v21, %v922_v13  ;;  %v5665_v13 = vld [vmem:[%s6602_s21 + $0x118] sm:$0xff] }
 0x12c   : > { %v899_v26 = vpop.permute.xlu1 %898  ;;  %v894_v12 = vpop.permute.xlu0 %893 }
 0x12d   : > { %v924_v31 = vadd.f32 %v899_v26, %v6919_v35  ;;  %v923_v52 = vadd.f32 %v894_v12, %v6922_v3  ;;  %v794_v38 = vmin.f32 %v792_v19, %v793_v56 }
 0x12e   : > { %1200 = vperm.xlu0 %6018, %v6724_v62  }
 0x12f   : > { %1482 = vperm.xlu1 %6011, %v6708_v58   ;;  %v936_v9 = vmin.f32 %v932_v8, %v924_v31  ;;  %v935_v50 = vmin.f32 %v931_v27, %v923_v52  ;;  %v795_v27 = vrot.slane %v794_v38, 2  ;;  %v5667_v8 = vld [vmem:[%s6602_s21 + $0x128] sm:$0xff] }
 0x130   : > { %v909_v29 = vpop.permute.xlu1 %908  ;;  %v904_v17 = vpop.permute.xlu0 %903 }
 0x131   : > { %v926_v16 = vadd.f32 %v909_v29, %v6934_v32  ;;  %v925_v54 = vadd.f32 %v904_v17, %v6937_v40  ;;  %v939_v58 = vmin.f32 %v935_v50, %v936_v9  ;;  %v9558_v9 = vmov 3   ;;  %v5669_v50 = vld [vmem:[%s6602_s21 + $0x138] sm:$0xff] }
 0x132   : > { %1210 = vperm.xlu0 %6018, %v6732_v0  }
 0x133   : > { %v938_v26 = vmin.f32 %v934_v28, %v926_v16  ;;  %v937_v12 = vmin.f32 %v933_v18, %v925_v54  ;;  %1492 = vperm.xlu1 %6011, %v6716_v60   ;;  %v796_v60 = vmin.f32 %v794_v38, %v795_v27 }
 0x134   : > { %v6945_v20 = vpop.permute.xlu0 %3106 }
 0x135   : > { %9698 = vst [vmem:[#allocation20_spill] sm:$0xff] %v6945_v20  ;;  %v940_v24 = vmin.f32 %v937_v12, %v938_v26  ;;  %v6947_v31 = vpop.permute.xlu1 %991  ;;  %v5671_v12 = vld [vmem:[%s6602_s21 + $0x148] sm:$0xff]  ;;  %v7095_v20 = vld [vmem:[%s6602_s21 + $0x70] sm:$0xff] }
 0x136   : > { %3403 = vperm.xlu0 %6018, %v5662_v15   ;;  %v949_v15 = vld [vmem:[#allocation2] sm:$0x1]  ;;  %9724 = vst [vmem:[#allocation45_spill] sm:$0xff] %v7095_v20 }
 0x137   : > { %v941_v10 = vmin.f32 %v939_v58, %v940_v24  ;;  %1502 = vperm.xlu1 %6011, %v6724_v62   ;;  %v797_v62 = vrot.slane %v796_v60, 1 }
 0x138   : > { %v6951_v52 = vpop.permute.xlu0 %3121 }
 0x139   : > { %9699 = vst [vmem:[#allocation21_spill] sm:$0xff] %v6951_v52  ;;  %v942_v19 = vrot.slane %v941_v10, 4  ;;  %v6953_v21 = vpop.permute.xlu1 %996  ;;  %v798_v38 = vmin.f32 %v796_v60, %v797_v62  ;;  %v5679_v62 = vld [vmem:[%s6602_s21 + $0x188] sm:$0xff] }
 0x13a   : > { %3418 = vperm.xlu0 %6018, %v5665_v13  }
 0x13b   : > { %v943_v56 = vmin.f32 %v941_v10, %v942_v19  ;;  %1512 = vperm.xlu1 %6011, %v6732_v0   ;;  %v5673_v10 = vld [vmem:[%s6602_s21 + $0x158] sm:$0xff] }
 0x13c   : > { %v6957_v18 = vpop.permute.xlu0 %3131 }
 0x13d   : > { %9700 = vst [vmem:[#allocation22_spill] sm:$0xff] %v6957_v18  ;;  %v944_v28 = vrot.slane %v943_v56, 2  ;;  %v6959_v29 = vpop.permute.xlu1 %1006 }
 0x13e   : > { %3428 = vperm.xlu0 %6018, %v5667_v8   ;;  %v5677_v8 = vld [vmem:[%s6602_s21 + $0x178] sm:$0xff] }
 0x13f   : > { %v945_v17 = vmin.f32 %v943_v56, %v944_v28  ;;  %6012 = vset.pattern.permute.xlu1 %v9558_v9 }
 0x140   : > { %1595 = vperm.xlu1 %6012, %v6623_v37   ;;  %v6964_v16 = vpop.permute.xlu0 %3141 }
 0x141   : > { %9701 = vst [vmem:[#allocation23_spill] sm:$0xff] %v6964_v16  ;;  %v946_v0 = vrot.slane %v945_v17, 1  ;;  %v6966_v54 = vpop.permute.xlu1 %1016 }
 0x142   : > { %3438 = vperm.xlu0 %6018, %v5669_v50   ;;  %v5681_v50 = vld [vmem:[%s6602_s21 + $0x198] sm:$0xff] }
 0x143   : > { %v947_v26 = vmin.f32 %v945_v17, %v946_v0 }
 0x144   : > { %1600 = vperm.xlu1 %6012, %v6610_v33   ;;  %v6970_v58 = vpop.permute.xlu0 %3151  ;;  %v5675_v33 = vld [vmem:[%s6602_s21 + $0x168] sm:$0xff] }
 0x145   : > { %9702 = vst [vmem:[#allocation24_spill] sm:$0xff] %v6970_v58  ;;  %v948_v24 = vmin.f32 %v798_v38, %v947_v26  ;;  %v6972_v27 = vpop.permute.xlu1 %1026  ;;  %v5683_v38 = vld [vmem:[%s6602_s21 + $0x1a8] sm:$0xff] }
 0x146   : > { %3448 = vperm.xlu0 %6018, %v5671_v12   ;;  %v5685_v12 = vld [vmem:[%s6602_s21 + $0x1b8] sm:$0xff]  ;;  %v7091_v58 = vld [vmem:[%s6602_s21 + $0x28] sm:$0xff] }
 0x147   : > { %v950_v37 = vmin.f32 %v949_v15, %v948_v24  ;;  %v5687_v24 = vld [vmem:[%s6602_s21 + $0x1c8] sm:$0xff]  ;;  %9723 = vst [vmem:[#allocation44_spill] sm:$0xff] %v7091_v58 }
 0x148   : > { %1610 = vperm.xlu1 %6012, %v6631_v39   ;;  %v6976_v13 = vpop.permute.xlu0 %3161 }
 0x149   : > { %9703 = vst [vmem:[#allocation25_spill] sm:$0xff] %v6976_v13  ;;  %951 = vst [vmem:[#allocation2] sm:$0x1] %v950_v37  ;;  %v6978_v19 = vpop.permute.xlu1 %1036  ;;  %v7085_v13 = vld [vmem:[%s6602_s21 + $0x60] sm:$0xff] }
 0x14a   : > { %3458 = vperm.xlu0 %6018, %v5673_v10   ;;  %v5689_v10 = vld [vmem:[%s6602_s21 + $0x1d8] sm:$0xff]  ;;  %9721 = vst [vmem:[#allocation42_spill] sm:$0xff] %v7085_v13 }
 0x14c   : > { %1620 = vperm.xlu1 %6012, %v6639_v41   ;;  %v6982_v60 = vpop.permute.xlu0 %3171 }
 0x14d   : > { %9704 = vst [vmem:[#allocation26_spill] sm:$0xff] %v6982_v60  ;;  %v6984_v56 = vpop.permute.xlu1 %1046 }
 0x14e   : > { %3468 = vperm.xlu0 %6018, %v5675_v33  }
 0x150   : > { %1630 = vperm.xlu1 %6012, %v6647_v43   ;;  %v6988_v39 = vpop.permute.xlu0 %3250 }
 0x151   : > { %9705 = vst [vmem:[#allocation27_spill] sm:$0xff] %v6988_v39  ;;  %v6990_v28 = vpop.permute.xlu1 %1056  ;;  %v7075_v39 = vld [vmem:[%s6602_s21 + $0x50] sm:$0xff] }
 0x152   : > { %3478 = vperm.xlu0 %6018, %v5677_v8   ;;  %v5691_v8 = vld [vmem:[%s6602_s21 + $0x1e8] sm:$0xff] }
 0x154   : > { %1640 = vperm.xlu1 %6012, %v6655_v45   ;;  %v6994_v17 = vpop.permute.xlu0 %3260 }
 0x155   : > { %9706 = vst [vmem:[#allocation28_spill] sm:$0xff] %v6994_v17  ;;  %v6996_v41 = vpop.permute.xlu1 %1135  ;;  %v7071_v17 = vld [vmem:[%s6602_s21 + $0x10] sm:$0xff] }
 0x156   : > { %3557 = vperm.xlu0 %6018, %v5679_v62  }
 0x158   : > { %1650 = vperm.xlu1 %6012, %v6663_v47   ;;  %v7000_v0 = vpop.permute.xlu0 %3270 }
 0x159   : > { %9707 = vst [vmem:[#allocation29_spill] sm:$0xff] %v7000_v0  ;;  %v7002_v43 = vpop.permute.xlu1 %1145  ;;  %v7081_v0 = vld [vmem:[%s6602_s21 + $0x18] sm:$0xff] }
 0x15a   : > { %3567 = vperm.xlu0 %6018, %v5681_v50   ;;  %v5693_v50 = vld [vmem:[%s6602_s21 + $0x1f8] sm:$0xff]  ;;  %9720 = vst [vmem:[#allocation41_spill] sm:$0xff] %v7081_v0 }
 0x15c   : > { %1660 = vperm.xlu1 %6012, %v6671_v49   ;;  %v7006_v26 = vpop.permute.xlu0 %3280 }
 0x15d   : > { %9708 = vst [vmem:[#allocation30_spill] sm:$0xff] %v7006_v26  ;;  %v7008_v45 = vpop.permute.xlu1 %1155 }
 0x15e   : > { %3577 = vperm.xlu0 %6018, %v5683_v38  }
 0x160   : > { %1739 = vperm.xlu1 %6012, %v6679_v51   ;;  %v7012_v15 = vpop.permute.xlu0 %3290 }
 0x161   : > { %9709 = vst [vmem:[#allocation31_spill] sm:$0xff] %v7012_v15  ;;  %v7014_v47 = vpop.permute.xlu1 %1165 }
 0x162   : > { %3587 = vperm.xlu0 %6018, %v5685_v12   ;;  %v7040_v12 = vld [vmem:[%s6602_s21 + $0x8] sm:$0xff] }
 0x164   : > { %1749 = vperm.xlu1 %6012, %v6687_v53   ;;  %v7018_v37 = vpop.permute.xlu0 %3300 }
 0x165   : > { %9710 = vst [vmem:[#allocation32_spill] sm:$0xff] %v7018_v37  ;;  %v7020_v49 = vpop.permute.xlu1 %1175  ;;  %v7065_v37 = vld [vmem:[%s6602_s21 + $0x40] sm:$0xff] }
 0x166   : > { %3597 = vperm.xlu0 %6018, %v5687_v24  }
 0x168   : > { %1759 = vperm.xlu1 %6012, %v6695_v55   ;;  %v7024_v33 = vpop.permute.xlu0 %3310 }
 0x169   : > { %9711 = vst [vmem:[#allocation33_spill] sm:$0xff] %v7024_v33  ;;  %v7026_v51 = vpop.permute.xlu1 %1185  ;;  %v7060_v33 = vld [vmem:[%s6602_s21] sm:$0xff] }
 0x16a   : > { %3607 = vperm.xlu0 %6018, %v5689_v10   ;;  %v9714_v10 = vmov 2   ;;  %9717 = vst [vmem:[#allocation38_spill] sm:$0xff] %v7060_v33 }
 0x16c   : > { %1769 = vperm.xlu1 %6012, %v6703_v57   ;;  %v7030_v62 = vpop.permute.xlu0 %3320 }
 0x16d   : > { %9712 = vst [vmem:[#allocation34_spill] sm:$0xff] %v7030_v62  ;;  %v7032_v53 = vpop.permute.xlu1 %1195 }
 0x16e   : > { %3617 = vperm.xlu0 %6018, %v5691_v8  }
 0x170   : > { %1779 = vperm.xlu1 %6012, %v6711_v59   ;;  %v7048_v59 = vld [vmem:[%s6602_s21 + $0x20] sm:$0xff] }
 0x171   : > { %v7036_v38 = vpop.permute.xlu1 %1205  ;;  %v987_v55 = vpop.permute.xlu0 %986 }
 0x172   : > { %3627 = vperm.xlu0 %6018, %v5693_v50  }
 0x174   : > { %1789 = vperm.xlu1 %6012, %v6719_v61   ;;  %v7055_v61 = vld [vmem:[%s6602_s21 + $0x30] sm:$0xff] }
 0x175   : > { %v1002_v57 = vpop.permute.xlu0 %1001 }
 0x176   : > { %v7042_v24 = vpop.permute.xlu1 %1288  ;;  %6020 = vset.pattern.permute.xlu0 %v9714_v10  ;;  %v7101_v10 = vld [vmem:[%s6602_s21 + $0x38] sm:$0xff] }
 0x177   : > { %9713 = vst [vmem:[#allocation35_spill] sm:$0xff] %v7042_v24  ;;  %1293 = vperm.xlu0 %6020, %v7040_v12   ;;  %9726 = vst [vmem:[#allocation47_spill] sm:$0xff] %v7101_v10 }
 0x178   : > { %1799 = vperm.xlu1 %6012, %v6727_v63   ;;  %v9560_v63 = vmov 4  }
 0x179   : > { %v1012_v8 = vpop.permute.xlu0 %1011 }
 0x17a   : > { %v7050_v50 = vpop.permute.xlu1 %1298 }
 0x17b   : > { %9715 = vst [vmem:[#allocation36_spill] sm:$0xff] %v7050_v50  ;;  %1308 = vperm.xlu0 %6020, %v7048_v59   ;;  %v1067_v50 = vadd.f32 %v1002_v57, %v6807_v5  ;;  %v7129_v5 = vld [vmem:[%s6602_s21 + $0xa0] sm:$0xff]  ;;  %v9733_v57 = vld [vmem:[#allocation10_spill] sm:$0xff] }
 0x17c   : > { %1809 = vperm.xlu1 %6012, %v6735_v1  }
 0x17d   : > { %v1022_v9 = vpop.permute.xlu0 %1021 }
 0x17e   : > { %v7057_v62 = vpop.permute.xlu1 %1303 }
 0x17f   : > { %9716 = vst [vmem:[#allocation37_spill] sm:$0xff] %v7057_v62  ;;  %1318 = vperm.xlu0 %6020, %v7055_v61   ;;  %v7105_v62 = vld [vmem:[%s6602_s21 + $0x80] sm:$0xff] }
 0x180   : > { %6013 = vset.pattern.permute.xlu1 %v9560_v63  ;;  %9727 = vst [vmem:[#allocation48_spill] sm:$0xff] %v7105_v62 }
 0x181   : > { %1892 = vperm.xlu1 %6013, %v7060_v33   ;;  %v1032_v1 = vpop.permute.xlu0 %1031 }
 0x182   : > { %v7068_v15 = vpop.permute.xlu1 %1313 }
 0x183   : > { %9718 = vst [vmem:[#allocation39_spill] sm:$0xff] %v7068_v15  ;;  %1328 = vperm.xlu0 %6020, %v7065_v37   ;;  %v7111_v15 = vld [vmem:[%s6602_s21 + $0x48] sm:$0xff] }
 0x184   : > { %9729 = vst [vmem:[#allocation50_spill] sm:$0xff] %v7111_v15 }
 0x185   : > { %1902 = vperm.xlu1 %6013, %v7071_v17   ;;  %v1042_v26 = vpop.permute.xlu0 %1041 }
 0x186   : > { %v7078_v63 = vpop.permute.xlu1 %1323 }
 0x187   : > { %9719 = vst [vmem:[#allocation40_spill] sm:$0xff] %v7078_v63  ;;  %1338 = vperm.xlu0 %6020, %v7075_v39   ;;  %v7117_v63 = vld [vmem:[%s6602_s21 + $0x90] sm:$0xff] }
 0x188   : > { %9730 = vst [vmem:[#allocation51_spill] sm:$0xff] %v7117_v63 }
 0x189   : > { %1907 = vperm.xlu1 %6013, %v7081_v0   ;;  %v1052_v60 = vpop.permute.xlu0 %1051 }
 0x18a   : > { %v7088_v16 = vpop.permute.xlu1 %1333 }
 0x18b   : > { %9722 = vst [vmem:[#allocation43_spill] sm:$0xff] %v7088_v16  ;;  %1348 = vperm.xlu0 %6020, %v7085_v13  }
 0x18d   : > { %1917 = vperm.xlu1 %6013, %v7091_v58   ;;  %v1062_v52 = vpop.permute.xlu0 %1061 }
 0x18e   : > { %v7098_v18 = vpop.permute.xlu1 %1343 }
 0x18f   : > { %9725 = vst [vmem:[#allocation46_spill] sm:$0xff] %v7098_v18  ;;  %1358 = vperm.xlu0 %6020, %v7095_v20   ;;  %v1071_v18 = vadd.f32 %v1022_v9, %v6802_v42  ;;  %v1070_v42 = vadd.f32 %v6966_v54, %v6811_v7 }
 0x191   : > { %1927 = vperm.xlu1 %6013, %v7101_v10   ;;  %v1141_v16 = vpop.permute.xlu0 %1140  ;;  %v7123_v10 = vld [vmem:[%s6602_s21 + $0x58] sm:$0xff]  ;;  %v1083_v20 = vmin.f32 %v1067_v50, %v1071_v18  ;;  %v9736_v18 = vld [vmem:[#allocation11_spill] sm:$0xff] }
 0x192   : > { %v7108_v24 = vpop.permute.xlu1 %1353  ;;  %v9738_v50 = vld [vmem:[#allocation15_spill] sm:$0xff] }
 0x193   : > { %9728 = vst [vmem:[#allocation49_spill] sm:$0xff] %v7108_v24  ;;  %1437 = vperm.xlu0 %6020, %v7105_v62   ;;  %v9732_v24 = vld [vmem:[#allocation9_spill] sm:$0xff]  ;;  %v1075_v62 = vadd.f32 %v1042_v26, %v6829_v14  ;;  %v1065_v14 = vadd.f32 %v6947_v31, %v9736_v18  ;;  %v9737_v26 = vld [vmem:[#allocation14_spill] sm:$0xff]  ;;  %v1074_v7 = vadd.f32 %v6978_v19, %v9738_v50 }
 0x194   : > { %v1064_v33 = vadd.f32 %v987_v55, %v9732_v24  ;;  %v7140_v55 = vld [vmem:[%s6602_s21 + $0x68] sm:$0xff]  ;;  %v1066_v24 = vadd.f32 %v6953_v21, %v9737_v26  ;;  %v9739_v21 = vld [vmem:[#allocation13_spill] sm:$0xff]  ;;  %v1078_v19 = vadd.f32 %v6990_v28, %v6848_v4  ;;  %v1076_v4 = vadd.f32 %v6984_v56, %v6858_v44 }
 0x195   : > { %1937 = vperm.xlu1 %6013, %v7111_v15   ;;  %v1151_v58 = vpop.permute.xlu0 %1150  ;;  %v9734_v15 = vld [vmem:[#allocation12_spill] sm:$0xff]  ;;  %v1072_v18 = vadd.f32 %v6972_v27, %v9739_v21 }
 0x196   : > { %v7120_v0 = vpop.permute.xlu1 %1363  ;;  %v1069_v13 = vadd.f32 %v1012_v8, %v9734_v15  ;;  %v1087_v8 = vmin.f32 %v1083_v20, %v1075_v62  ;;  %v1082_v15 = vmin.f32 %v1066_v24, %v1070_v42  ;;  %v7177_v42 = vld [vmem:[%s6602_s21 + $0x88] sm:$0xff]  ;;  %v1216_v44 = vadd.f32 %v1151_v58, %v6907_v30 }
 0x197   : > { %9731 = vst [vmem:[#allocation52_spill] sm:$0xff] %v7120_v0  ;;  %1447 = vperm.xlu0 %6020, %v7117_v63   ;;  %v1068_v0 = vadd.f32 %v6959_v29, %v9733_v57  ;;  %v1073_v29 = vadd.f32 %v1032_v1, %v6841_v25  ;;  %v1079_v57 = vadd.f32 %v1062_v52, %v6845_v22  ;;  %v7163_v22 = vld [vmem:[%s6602_s21 + $0x78] sm:$0xff]  ;;  %v7167_v1 = vld [vmem:[%s6602_s21 + $0xc0] sm:$0xff]  ;;  %v9740_v58 = vld [vmem:[#allocation18_spill] sm:$0xff] }
 0x198   : > { %v1081_v50 = vmin.f32 %v1065_v14, %v1069_v13  ;;  %v1086_v20 = vmin.f32 %v1082_v15, %v1074_v7  ;;  %v7183_v7 = vld [vmem:[%s6602_s21 + $0xd0] sm:$0xff] }
 0x199   : > { %1947 = vperm.xlu1 %6013, %v7123_v10   ;;  %v1161_v9 = vpop.permute.xlu0 %1160  ;;  %v1080_v54 = vmin.f32 %v1064_v33, %v1068_v0  ;;  %v1077_v0 = vadd.f32 %v1052_v60, %v6855_v23  ;;  %v1091_v62 = vmin.f32 %v1087_v8, %v1079_v57  ;;  %v1214_v60 = vadd.f32 %v1141_v16, %v6892_v48  ;;  %v7190_v8 = vld [vmem:[%s6602_s21 + $0x98] sm:$0xff] }
 0x19a   : > { %v7137_v63 = vpop.permute.xlu1 %1442  ;;  %v1085_v33 = vmin.f32 %v1081_v50, %v1073_v29  ;;  %v1090_v27 = vmin.f32 %v1086_v20, %v1078_v19  ;;  %v1218_v28 = vadd.f32 %v1161_v9, %v6885_v46  ;;  %v1217_v57 = vadd.f32 %v7008_v45, %v6871_v34  ;;  %v7199_v50 = vld [vmem:[%s6602_s21 + $0xe0] sm:$0xff]  ;;  %v9743_v45 = vld [vmem:[#allocation19_spill] sm:$0xff] }
 0x19b   : > { %9735 = vst [vmem:[#allocation9_spill] sm:$0xff] %v7137_v63  ;;  %1457 = vperm.xlu0 %6020, %v7129_v5   ;;  %v7152_v63 = vld [vmem:[%s6602_s21 + $0xb0] sm:$0xff]  ;;  %v1084_v52 = vmin.f32 %v1080_v54, %v1072_v18  ;;  %v9742_v20 = vld [vmem:[#allocation17_spill] sm:$0xff] }
 0x19c   : > { %v1089_v13 = vmin.f32 %v1085_v33, %v1077_v0  ;;  %v1093_v24 = vmin.f32 %v1090_v27, %v1091_v62  ;;  %v1230_v9 = vmin.f32 %v1214_v60, %v1218_v28  ;;  %v1223_v33 = vadd.f32 %v7026_v51, %v6904_v6  ;;  %v7214_v27 = vld [vmem:[%s6602_s21 + $0xa8] sm:$0xff]  ;;  %v7222_v51 = vld [vmem:[%s6602_s21 + $0xf0] sm:$0xff] }
 0x19d   : > { %1957 = vperm.xlu1 %6013, %v7140_v55   ;;  %v1171_v31 = vpop.permute.xlu0 %1170  ;;  %v1088_v14 = vmin.f32 %v1084_v52, %v1076_v4  ;;  %v1215_v52 = vadd.f32 %v7002_v43, %v9742_v20 }
 0x19e   : > { %v7160_v25 = vpop.permute.xlu1 %1452  ;;  %v1220_v56 = vadd.f32 %v1171_v31, %v6896_v11  ;;  %v1219_v31 = vadd.f32 %v7014_v47, %v9740_v58  ;;  %v1221_v47 = vadd.f32 %v7020_v49, %v9743_v45  ;;  %v1227_v49 = vadd.f32 %v7036_v38, %v6937_v40 }
 0x19f   : > { %1467 = vperm.xlu0 %6020, %v7152_v63   ;;  %v1092_v16 = vmin.f32 %v1088_v14, %v1089_v13  ;;  %v1225_v13 = vadd.f32 %v7032_v53, %v6922_v3  ;;  %v7229_v3 = vld [vmem:[%s6602_s21 + $0xb8] sm:$0xff] }
 0x1a0   : > { %v1232_v18 = vmin.f32 %v1216_v44, %v1220_v56  ;;  %v1231_v43 = vmin.f32 %v1215_v52, %v1219_v31 }
 0x1a1   : > { %1967 = vperm.xlu1 %6013, %v7163_v22   ;;  %v1181_v23 = vpop.permute.xlu0 %1180  ;;  %v1094_v21 = vmin.f32 %v1092_v16, %v1093_v24 }
 0x1a2   : > { %v7174_v15 = vpop.permute.xlu1 %1462  ;;  %v1222_v54 = vadd.f32 %v1181_v23, %v6901_v2  ;;  %v9741_v2 = vld [vmem:[#allocation16_spill] sm:$0xff]  ;;  %v1235_v24 = vmin.f32 %v1231_v43, %v1223_v33  ;;  %v5700_v33 = vld [vmem:[%s6602_s21 + $0x130] sm:$0xff] }
 0x1a3   : > { %1477 = vperm.xlu0 %6020, %v7167_v1   ;;  %v1213_v0 = vadd.f32 %v6996_v41, %v9741_v2  ;;  %v1095_v60 = vrot.slane %v1094_v21, 4 }
 0x1a4   : > { %v1234_v62 = vmin.f32 %v1230_v9, %v1222_v54  ;;  %v1239_v53 = vmin.f32 %v1235_v24, %v1227_v49  ;;  %v5695_v9 = vld [vmem:[%s6602_s21 + $0x108] sm:$0xff] }
 0x1a5   : > { %2046 = vperm.xlu1 %6013, %v7177_v42   ;;  %v1191_v48 = vpop.permute.xlu0 %1190  ;;  %v1229_v41 = vmin.f32 %v1213_v0, %v1217_v57  ;;  %v1096_v38 = vmin.f32 %v1094_v21, %v1095_v60  ;;  %v5698_v0 = vld [vmem:[%s6602_s21 + $0x120] sm:$0xff] }
 0x1a6   : > { %v7187_v29 = vpop.permute.xlu1 %1472  ;;  %v1224_v19 = vadd.f32 %v1191_v48, %v6912_v36  ;;  %v5702_v60 = vld [vmem:[%s6602_s21 + $0x140] sm:$0xff] }
 0x1a7   : > { %1487 = vperm.xlu0 %6020, %v7183_v7   ;;  %v1233_v14 = vmin.f32 %v1229_v41, %v1221_v47  ;;  %v7255_v41 = vld [vmem:[%s6602_s21 + $0xe8] sm:$0xff] }
 0x1a8   : > { %v1236_v6 = vmin.f32 %v1232_v18, %v1224_v19  ;;  %v7239_v18 = vld [vmem:[%s6602_s21 + $0xc8] sm:$0xff]  ;;  %v1097_v19 = vrot.slane %v1096_v38, 2 }
 0x1a9   : > { %2056 = vperm.xlu1 %6013, %v7190_v8   ;;  %v1201_v34 = vpop.permute.xlu0 %1200  ;;  %v1237_v40 = vmin.f32 %v1233_v14, %v1225_v13  ;;  %v7264_v14 = vld [vmem:[%s6602_s21 + $0xf8] sm:$0xff] }
 0x1aa   : > { %v1226_v4 = vadd.f32 %v1201_v34, %v6919_v35  ;;  %v7211_v23 = vpop.permute.xlu1 %1482  ;;  %v7248_v34 = vld [vmem:[%s6602_s21 + $0xd8] sm:$0xff]  ;;  %v1098_v45 = vmin.f32 %v1096_v38, %v1097_v19  ;;  %v9576_v19 = vmov 5  }
 0x1ab   : > { %1497 = vperm.xlu0 %6020, %v7199_v50  }
 0x1ac   : > { %v1238_v44 = vmin.f32 %v1234_v62, %v1226_v4  ;;  %v1099_v13 = vrot.slane %v1098_v45, 1 }
 0x1ad   : > { %2066 = vperm.xlu1 %6013, %v7214_v27   ;;  %v1211_v28 = vpop.permute.xlu0 %1210 }
 0x1ae   : > { %v1228_v56 = vadd.f32 %v1211_v28, %v6934_v32  ;;  %v7226_v48 = vpop.permute.xlu1 %1492  ;;  %v1241_v57 = vmin.f32 %v1237_v40, %v1238_v44  ;;  %v1100_v44 = vmin.f32 %v1098_v45, %v1099_v13  ;;  %v5704_v40 = vld [vmem:[%s6602_s21 + $0x150] sm:$0xff] }
 0x1af   : > { %1507 = vperm.xlu0 %6020, %v7222_v51  }
 0x1b0   : > { %v1240_v16 = vmin.f32 %v1236_v6, %v1228_v56 }
 0x1b1   : > { %2076 = vperm.xlu1 %6013, %v7229_v3   ;;  %v7234_v54 = vpop.permute.xlu0 %3403 }
 0x1b2   : > { %9744 = vst [vmem:[#allocation10_spill] sm:$0xff] %v7234_v54  ;;  %v1242_v58 = vmin.f32 %v1239_v53, %v1240_v16  ;;  %v7236_v31 = vpop.permute.xlu1 %1502  ;;  %v1251_v53 = vld [vmem:[#allocation2 + $0x1] sm:$0x1] }
 0x1b3   : > { %3710 = vperm.xlu0 %6020, %v5695_v9  }
 0x1b4   : > { %v1243_v2 = vmin.f32 %v1241_v57, %v1242_v58  ;;  %v5706_v58 = vld [vmem:[%s6602_s21 + $0x160] sm:$0xff] }
 0x1b5   : > { %2086 = vperm.xlu1 %6013, %v7239_v18   ;;  %v7243_v21 = vpop.permute.xlu0 %3418 }
 0x1b6   : > { %9745 = vst [vmem:[#allocation11_spill] sm:$0xff] %v7243_v21  ;;  %v1244_v20 = vrot.slane %v1243_v2, 4  ;;  %v7245_v52 = vpop.permute.xlu1 %1512 }
 0x1b7   : > { %3725 = vperm.xlu0 %6020, %v5698_v0  }
 0x1b8   : > { %v1245_v47 = vmin.f32 %v1243_v2, %v1244_v20  ;;  %v5708_v20 = vld [vmem:[%s6602_s21 + $0x170] sm:$0xff] }
 0x1b9   : > { %2096 = vperm.xlu1 %6013, %v7248_v34   ;;  %v7252_v62 = vpop.permute.xlu0 %3428 }
 0x1ba   : > { %9746 = vst [vmem:[#allocation14_spill] sm:$0xff] %v7252_v62  ;;  %v1246_v4 = vrot.slane %v1245_v47, 2  ;;  %v7379_v62 = vld [vmem:[%s6604_s28 + $0x8] sm:$0xff] }
 0x1bb   : > { %v7257_v43 = vpop.permute.xlu1 %1595  ;;  %3735 = vperm.xlu0 %6020, %v5700_v33   ;;  %v5710_v33 = vld [vmem:[%s6602_s21 + $0x180] sm:$0xff] }
 0x1bc   : > { %v1247_v49 = vmin.f32 %v1245_v47, %v1246_v4 }
 0x1bd   : > { %2106 = vperm.xlu1 %6013, %v7255_v41   ;;  %v7261_v6 = vpop.permute.xlu0 %3438 }
 0x1be   : > { %9747 = vst [vmem:[#allocation15_spill] sm:$0xff] %v7261_v6  ;;  %v1248_v28 = vrot.slane %v1247_v49, 1 }
 0x1bf   : > { %v7266_v24 = vpop.permute.xlu1 %1600  ;;  %3745 = vperm.xlu0 %6020, %v5702_v60  }
 0x1c0   : > { %v1249_v56 = vmin.f32 %v1247_v49, %v1248_v28  ;;  %v5714_v28 = vld [vmem:[%s6602_s21 + $0x1a0] sm:$0xff] }
 0x1c1   : > { %2116 = vperm.xlu1 %6013, %v7264_v14   ;;  %v7270_v38 = vpop.permute.xlu0 %3448 }
 0x1c2   : > { %9748 = vst [vmem:[#allocation13_spill] sm:$0xff] %v7270_v38  ;;  %v1250_v16 = vmin.f32 %v1100_v44, %v1249_v56 }
 0x1c3   : > { %v7272_v9 = vpop.permute.xlu1 %1610  ;;  %3755 = vperm.xlu0 %6020, %v5704_v40  }
 0x1c4   : > { %v1252_v57 = vmin.f32 %v1251_v53, %v1250_v16 }
 0x1c5   : > { %6014 = vset.pattern.permute.xlu1 %v9576_v19  ;;  %v7276_v2 = vpop.permute.xlu0 %3458 }
 0x1c6   : > { %9749 = vst [vmem:[#allocation18_spill] sm:$0xff] %v7276_v2  ;;  %1253 = vst [vmem:[#allocation2 + $0x1] sm:$0x1] %v1252_v57  ;;  %2199 = vperm.xlu1 %6014, %v7040_v12   ;;  %v5712_v12 = vld [vmem:[%s6602_s21 + $0x190] sm:$0xff]  ;;  %v9761_v57 = vld [vmem:[#allocation42_spill] sm:$0xff] }
 0x1c7   : > { %v7279_v0 = vpop.permute.xlu1 %1620  ;;  %3765 = vperm.xlu0 %6020, %v5706_v58  }
 0x1c9   : > { %v7282_v45 = vpop.permute.xlu0 %3468 }
 0x1ca   : > { %9750 = vst [vmem:[#allocation16_spill] sm:$0xff] %v7282_v45  ;;  %2204 = vperm.xlu1 %6014, %v7071_v17  }
 0x1cb   : > { %v7285_v47 = vpop.permute.xlu1 %1630  ;;  %3775 = vperm.xlu0 %6020, %v5708_v20  }
 0x1cc   : > { %9751 = vst [vmem:[#allocation17_spill] sm:$0xff] %v7285_v47  ;;  %v6037_v47 = vld [vmem:[%s6604_s28 + $0x78] sm:$0xff] }
 0x1cd   : > { %v7288_v4 = vpop.permute.xlu0 %3478 }
 0x1ce   : > { %9752 = vst [vmem:[#allocation19_spill] sm:$0xff] %v7288_v4  ;;  %2214 = vperm.xlu1 %6014, %v7048_v59   ;;  %v5716_v59 = vld [vmem:[%s6602_s21 + $0x1b0] sm:$0xff]  ;;  %v9783_v4 = vld [vmem:[#allocation50_spill] sm:$0xff] }
 0x1cf   : > { %v7291_v13 = vpop.permute.xlu1 %1640  ;;  %3854 = vperm.xlu0 %6020, %v5710_v33   ;;  %v9764_v33 = vld [vmem:[#allocation45_spill] sm:$0xff] }
 0x1d0   : > { %9753 = vst [vmem:[#allocation53_spill] sm:$0xff] %v7291_v13 }
 0x1d1   : > { %v7294_v49 = vpop.permute.xlu0 %3557 }
 0x1d2   : > { %9754 = vst [vmem:[#allocation54_spill] sm:$0xff] %v7294_v49  ;;  %2224 = vperm.xlu1 %6014, %v7055_v61   ;;  %v5718_v61 = vld [vmem:[%s6602_s21 + $0x1c0] sm:$0xff] }
 0x1d3   : > { %v7297_v60 = vpop.permute.xlu1 %1650  ;;  %3864 = vperm.xlu0 %6020, %v5712_v12  }
 0x1d4   : > { %9755 = vst [vmem:[#allocation55_spill] sm:$0xff] %v7297_v60  ;;  %v7411_v60 = vld [vmem:[%s6604_s28 + $0x40] sm:$0xff] }
 0x1d5   : > { %v7300_v44 = vpop.permute.xlu0 %3567 }
 0x1d6   : > { %9756 = vst [vmem:[#allocation56_spill] sm:$0xff] %v7300_v44  ;;  %2234 = vperm.xlu1 %6014, %v7065_v37   ;;  %v5720_v37 = vld [vmem:[%s6602_s21 + $0x1d0] sm:$0xff] }
 0x1d7   : > { %v7303_v56 = vpop.permute.xlu1 %1660  ;;  %3874 = vperm.xlu0 %6020, %v5714_v28  }
 0x1d8   : > { %9757 = vst [vmem:[#allocation57_spill] sm:$0xff] %v7303_v56 }
 0x1d9   : > { %v7306_v40 = vpop.permute.xlu0 %3577 }
 0x1da   : > { %9758 = vst [vmem:[#allocation58_spill] sm:$0xff] %v7306_v40  ;;  %2244 = vperm.xlu1 %6014, %v7075_v39   ;;  %v5722_v39 = vld [vmem:[%s6602_s21 + $0x1e0] sm:$0xff]  ;;  %v9781_v40 = vld [vmem:[#allocation47_spill] sm:$0xff] }
 0x1db   : > { %v7309_v53 = vpop.permute.xlu1 %1739  ;;  %3884 = vperm.xlu0 %6020, %v5716_v59   ;;  %v9767_v59 = vld [vmem:[#allocation48_spill] sm:$0xff] }
 0x1dc   : > { %9759 = vst [vmem:[#allocation59_spill] sm:$0xff] %v7309_v53  ;;  %v9795_v53 = vld [vmem:[#allocation37_spill] sm:$0xff] }
 0x1dd   : > { %v7312_v16 = vpop.permute.xlu0 %3587 }
 0x1de   : > { %9760 = vst [vmem:[#allocation60_spill] sm:$0xff] %v7312_v16  ;;  %2254 = vperm.xlu1 %6014, %v9761_v57   ;;  %v5724_v57 = vld [vmem:[%s6602_s21 + $0x1f0] sm:$0xff] }
 0x1df   : > { %v7315_v58 = vpop.permute.xlu1 %1749  ;;  %3894 = vperm.xlu0 %6020, %v5718_v61   ;;  %v9770_v61 = vld [vmem:[#allocation51_spill] sm:$0xff] }
 0x1e0   : > { %9762 = vst [vmem:[#allocation42_spill] sm:$0xff] %v7315_v58  ;;  %v6034_v58 = vld [vmem:[%s6604_s28 + $0x18] sm:$0xff] }
 0x1e1   : > { %v7318_v20 = vpop.permute.xlu0 %3597 }
 0x1e2   : > { %9763 = vst [vmem:[#allocation61_spill] sm:$0xff] %v7318_v20  ;;  %2264 = vperm.xlu1 %6014, %v9764_v33  }
 0x1e3   : > { %v7321_v12 = vpop.permute.xlu1 %1759  ;;  %3904 = vperm.xlu0 %6020, %v5720_v37  }
 0x1e4   : > { %9765 = vst [vmem:[#allocation45_spill] sm:$0xff] %v7321_v12  ;;  %v6035_v12 = vld [vmem:[%s6604_s28 + $0x58] sm:$0xff] }
 0x1e5   : > { %v7324_v28 = vpop.permute.xlu0 %3607 }
 0x1e6   : > { %9766 = vst [vmem:[#allocation62_spill] sm:$0xff] %v7324_v28  ;;  %2343 = vperm.xlu1 %6014, %v9767_v59   ;;  %v9774_v28 = vmov 3   ;;  %v9775_v59 = vld [vmem:[#allocation38_spill] sm:$0xff] }
 0x1e7   : > { %v7327_v19 = vpop.permute.xlu1 %1769  ;;  %3914 = vperm.xlu0 %6020, %v5722_v39  }
 0x1e8   : > { %9768 = vst [vmem:[#allocation48_spill] sm:$0xff] %v7327_v19  ;;  %v1369_v19 = vadd.f32 %v6034_v58, %v9795_v53  ;;  %v6036_v53 = vld [vmem:[%s6604_s28 + $0x48] sm:$0xff]  ;;  %v9798_v58 = vld [vmem:[#allocation43_spill] sm:$0xff] }
 0x1e9   : > { %v7330_v44 = vpop.permute.xlu0 %3617  ;;  %v1375_v56 = vadd.f32 %v6036_v53, %v9798_v58  ;;  %v9801_v53 = vld [vmem:[#allocation49_spill] sm:$0xff] }
 0x1ea   : > { %9769 = vst [vmem:[#allocation63_spill] sm:$0xff] %v7330_v44  ;;  %2353 = vperm.xlu1 %6014, %v9770_v61   ;;  %v9777_v44 = vld [vmem:[#allocation41_spill] sm:$0xff] }
 0x1eb   : > { %v7333_v16 = vpop.permute.xlu1 %1779  ;;  %3924 = vperm.xlu0 %6020, %v5724_v57  }
 0x1ec   : > { %9771 = vst [vmem:[#allocation51_spill] sm:$0xff] %v7333_v16 }
 0x1ed   : > { %v7335_v33 = vpop.permute.xlu0 %3627 }
 0x1ee   : > { %9772 = vst [vmem:[#allocation64_spill] sm:$0xff] %v7335_v33  ;;  %2363 = vperm.xlu1 %6014, %v7129_v5   ;;  %v9779_v33 = vld [vmem:[#allocation44_spill] sm:$0xff] }
 0x1ef   : > { %v7338_v37 = vpop.permute.xlu1 %1789  ;;  %6022 = vset.pattern.permute.xlu0 %v9774_v28 }
 0x1f0   : > { %9773 = vst [vmem:[#allocation65_spill] sm:$0xff] %v7338_v37  ;;  %1590 = vperm.xlu0 %6022, %v9775_v59  }
 0x1f2   : > { %2373 = vperm.xlu1 %6014, %v7152_v63   ;;  %v1294_v39 = vpop.permute.xlu0 %1293 }
 0x1f3   : > { %v7343_v20 = vpop.permute.xlu1 %1799 }
 0x1f4   : > { %9776 = vst [vmem:[#allocation38_spill] sm:$0xff] %v7343_v20  ;;  %1605 = vperm.xlu0 %6022, %v9777_v44   ;;  %v9793_v20 = vld [vmem:[#allocation39_spill] sm:$0xff] }
 0x1f6   : > { %2383 = vperm.xlu1 %6014, %v7167_v1   ;;  %v1309_v57 = vpop.permute.xlu0 %1308 }
 0x1f7   : > { %v7347_v61 = vpop.permute.xlu1 %1809 }
 0x1f8   : > { %9778 = vst [vmem:[#allocation41_spill] sm:$0xff] %v7347_v61  ;;  %1615 = vperm.xlu0 %6022, %v9779_v33   ;;  %v9792_v61 = vld [vmem:[#allocation12_spill] sm:$0xff] }
 0x1f9   : > { %v1371_v37 = vadd.f32 %v9793_v20, %v9792_v61  ;;  %v7414_v20 = vld [vmem:[%s6604_s28 + $0x70] sm:$0xff] }
 0x1fa   : > { %2393 = vperm.xlu1 %6014, %v7183_v7   ;;  %v1319_v5 = vpop.permute.xlu0 %1318  ;;  %v9578_v7 = vmov 6  }
 0x1fc   : > { %v7351_v49 = vpop.permute.xlu1 %1892  ;;  %1625 = vperm.xlu0 %6022, %v9781_v40  }
 0x1fd   : > { %9780 = vst [vmem:[#allocation44_spill] sm:$0xff] %v7351_v49 }
 0x1fe   : > { %2403 = vperm.xlu1 %6014, %v7199_v50   ;;  %v1329_v63 = vpop.permute.xlu0 %1328 }
 0x200   : > { %v7355_v45 = vpop.permute.xlu1 %1902  ;;  %1635 = vperm.xlu0 %6022, %v9783_v4  }
 0x201   : > { %9782 = vst [vmem:[#allocation47_spill] sm:$0xff] %v7355_v45  ;;  %v7395_v45 = vld [vmem:[%s6604_s28 + $0x50] sm:$0xff] }
 0x202   : > { %2413 = vperm.xlu1 %6014, %v7222_v51   ;;  %v1339_v1 = vpop.permute.xlu0 %1338 }
 0x204   : > { %v7359_v38 = vpop.permute.xlu1 %1907  ;;  %1645 = vperm.xlu0 %6022, %v7123_v10  }
 0x205   : > { %9784 = vst [vmem:[#allocation50_spill] sm:$0xff] %v7359_v38  ;;  %v9789_v38 = vld [vmem:[#allocation40_spill] sm:$0xff] }
 0x206   : > { %6015 = vset.pattern.permute.xlu1 %v9578_v7  ;;  %v1349_v2 = vpop.permute.xlu0 %1348  ;;  %9790 = vst [vmem:[#allocation40_spill] sm:$0xff] %v7395_v45 }
 0x207   : > { %2496 = vperm.xlu1 %6015, %v9775_v59  }
 0x208   : > { %v7364_v50 = vpop.permute.xlu1 %1917  ;;  %1655 = vperm.xlu0 %6022, %v7140_v55  }
 0x209   : > { %9785 = vst [vmem:[#allocation66_spill] sm:$0xff] %v7364_v50 }
 0x20a   : > { %v1359_v21 = vpop.permute.xlu0 %1358 }
 0x20b   : > { %2506 = vperm.xlu1 %6015, %v7071_v17   ;;  %v7382_v17 = vld [vmem:[%s6604_s28 + $0x30] sm:$0xff] }
 0x20c   : > { %v7368_v51 = vpop.permute.xlu1 %1927  ;;  %1665 = vperm.xlu0 %6022, %v7163_v22   ;;  %v1372_v28 = vadd.f32 %v7382_v17, %v1319_v5  ;;  %v1376_v5 = vadd.f32 %v7395_v45, %v1339_v1  ;;  %v1374_v1 = vadd.f32 %v7411_v60, %v1329_v63 }
 0x20d   : > { %9786 = vst [vmem:[#allocation67_spill] sm:$0xff] %v7368_v51 }
 0x20e   : > { %v1438_v54 = vpop.permute.xlu0 %1437 }
 0x20f   : > { %2511 = vperm.xlu1 %6015, %v9777_v44   ;;  %v1367_v44 = vadd.f32 %v7379_v62, %v1294_v39 }
 0x210   : > { %v7372_v7 = vpop.permute.xlu1 %1937  ;;  %1744 = vperm.xlu0 %6022, %v7177_v42  }
 0x211   : > { %9787 = vst [vmem:[#allocation68_spill] sm:$0xff] %v7372_v7  ;;  %v6032_v7 = vld [vmem:[%s6604_s28 + $0x38] sm:$0xff] }
 0x212   : > { %v7375_v59 = vpop.permute.xlu0 %1447  ;;  %v1373_v49 = vadd.f32 %v6032_v7, %v9789_v38  ;;  %v6033_v38 = vld [vmem:[%s6604_s28] sm:$0xff]  ;;  %v9794_v7 = vld [vmem:[#allocation35_spill] sm:$0xff] }
 0x213   : > { %2521 = vperm.xlu1 %6015, %v9779_v33   ;;  %v7392_v33 = vld [vmem:[%s6604_s28 + $0x20] sm:$0xff]  ;;  %v1366_v16 = vadd.f32 %v6033_v38, %v9794_v7  ;;  %v1380_v38 = vadd.f32 %v7414_v20, %v1359_v21 }
 0x214   : > { %v7384_v6 = vpop.permute.xlu1 %1947  ;;  %1754 = vperm.xlu0 %6022, %v7190_v8   ;;  %v1370_v39 = vadd.f32 %v7392_v33, %v1309_v57  ;;  %v1385_v7 = vmin.f32 %v1369_v19, %v1373_v49 }
 0x215   : > { %9788 = vst [vmem:[#allocation69_spill] sm:$0xff] %v7384_v6  ;;  %v9791_v6 = vld [vmem:[#allocation36_spill] sm:$0xff] }
 0x216   : > { %v1458_v51 = vpop.permute.xlu0 %1457  ;;  %v1368_v50 = vadd.f32 %v9791_v6, %v9737_v26  ;;  %v9796_v26 = vld [vmem:[#allocation46_spill] sm:$0xff]  ;;  %v1382_v45 = vmin.f32 %v1366_v16, %v1370_v39  ;;  %v7439_v16 = vld [vmem:[%s6604_s28 + $0xa0] sm:$0xff] }
 0x217   : > { %2531 = vperm.xlu1 %6015, %v9781_v40   ;;  %v1377_v6 = vadd.f32 %v6035_v12, %v9796_v26  ;;  %v1383_v40 = vmin.f32 %v1367_v44, %v1371_v37  ;;  %v7424_v12 = vld [vmem:[%s6604_s28 + $0x60] sm:$0xff]  ;;  %v6038_v44 = vld [vmem:[%s6604_s28 + $0x68] sm:$0xff] }
 0x218   : > { %v7416_v57 = vpop.permute.xlu1 %1957  ;;  %1764 = vperm.xlu0 %6022, %v7214_v27   ;;  %v1384_v61 = vmin.f32 %v1368_v50, %v1372_v28  ;;  %v1378_v28 = vadd.f32 %v7424_v12, %v1349_v2  ;;  %v1386_v63 = vmin.f32 %v1382_v45, %v1374_v1  ;;  %v1379_v58 = vadd.f32 %v6038_v44, %v9801_v53  ;;  %v7448_v45 = vld [vmem:[%s6604_s28 + $0xb0] sm:$0xff]  ;;  %v9804_v44 = vld [vmem:[#allocation9_spill] sm:$0xff] }
 0x219   : > { %9797 = vst [vmem:[#allocation36_spill] sm:$0xff] %v7416_v57  ;;  %v9799_v57 = vld [vmem:[#allocation52_spill] sm:$0xff]  ;;  %v1389_v19 = vmin.f32 %v1385_v7, %v1377_v6  ;;  %v1387_v49 = vmin.f32 %v1383_v40, %v1375_v56  ;;  %v7445_v56 = vld [vmem:[%s6604_s28 + $0x90] sm:$0xff] }
 0x21a   : > { %v1468_v26 = vpop.permute.xlu0 %1467  ;;  %v1381_v13 = vadd.f32 %v6037_v47, %v9799_v57  ;;  %v1388_v37 = vmin.f32 %v1384_v61, %v1376_v5  ;;  %v7436_v47 = vld [vmem:[%s6604_s28 + $0x80] sm:$0xff]  ;;  %v1390_v39 = vmin.f32 %v1386_v63, %v1378_v28  ;;  %v1519_v57 = vadd.f32 %v7439_v16, %v1458_v51  ;;  %v7466_v28 = vld [vmem:[%s6604_s28 + $0xd0] sm:$0xff] }
 0x21b   : > { %2541 = vperm.xlu1 %6015, %v9783_v4   ;;  %v1515_v5 = vadd.f32 %v7436_v47, %v1438_v54  ;;  %v1391_v40 = vmin.f32 %v1387_v49, %v1379_v58  ;;  %v1521_v54 = vadd.f32 %v7448_v45, %v1468_v26  ;;  %v7457_v51 = vld [vmem:[%s6604_s28 + $0xc0] sm:$0xff]  ;;  %v1526_v58 = vadd.f32 %v7226_v48, %v6912_v36  ;;  %v7493_v48 = vld [vmem:[%s6604_s28 + $0xf0] sm:$0xff] }
 0x21c   : > { %v7430_v21 = vpop.permute.xlu1 %1967  ;;  %1774 = vperm.xlu0 %6022, %v7229_v3   ;;  %v1392_v50 = vmin.f32 %v1388_v37, %v1380_v38  ;;  %v1393_v4 = vmin.f32 %v1389_v19, %v1381_v13  ;;  %v1517_v13 = vadd.f32 %v7445_v56, %v7375_v59  ;;  %v1520_v37 = vadd.f32 %v7174_v15, %v6885_v46  ;;  %v7477_v46 = vld [vmem:[%s6604_s28 + $0xe0] sm:$0xff]  ;;  %v6040_v15 = vld [vmem:[%s6604_s28 + $0xc8] sm:$0xff] }
 0x21d   : > { %9800 = vst [vmem:[#allocation12_spill] sm:$0xff] %v7430_v21  ;;  %v1394_v1 = vmin.f32 %v1390_v39, %v1391_v40  ;;  %v1531_v38 = vmin.f32 %v1515_v5, %v1519_v57  ;;  %v1522_v59 = vadd.f32 %v7187_v29, %v6896_v11  ;;  %v1524_v29 = vadd.f32 %v6040_v15, %v7211_v23 }
 0x21e   : > { %v1478_v2 = vpop.permute.xlu0 %1477  ;;  %v1395_v61 = vmin.f32 %v1392_v50, %v1393_v4  ;;  %v1533_v49 = vmin.f32 %v1517_v13, %v1521_v54  ;;  %v6039_v50 = vld [vmem:[%s6604_s28 + $0x88] sm:$0xff] }
 0x21f   : > { %2551 = vperm.xlu1 %6015, %v7123_v10   ;;  %v1523_v7 = vadd.f32 %v7457_v51, %v1478_v2  ;;  %v1516_v53 = vadd.f32 %v6039_v50, %v9804_v44 }
 0x220   : > { %v7450_v6 = vpop.permute.xlu1 %2046  ;;  %1784 = vperm.xlu0 %6022, %v7239_v18   ;;  %v1396_v19 = vmin.f32 %v1394_v1, %v1395_v61  ;;  %v7501_v1 = vld [vmem:[%s6602_s21 + $0x100] sm:$0xff] }
 0x221   : > { %9802 = vst [vmem:[#allocation39_spill] sm:$0xff] %v7450_v6  ;;  %v1535_v2 = vmin.f32 %v1531_v38, %v1523_v7  ;;  %v1532_v39 = vmin.f32 %v1516_v53, %v1520_v37 }
 0x222   : > { %v1488_v10 = vpop.permute.xlu0 %1487  ;;  %v1397_v23 = vrot.slane %v1396_v19, 4 }
 0x223   : > { %2561 = vperm.xlu1 %6015, %v7140_v55   ;;  %v1525_v63 = vadd.f32 %v7466_v28, %v1488_v10  ;;  %v1518_v55 = vadd.f32 %v7160_v25, %v6907_v30  ;;  %v1528_v30 = vadd.f32 %v7236_v31, %v6919_v35  ;;  %v1530_v25 = vadd.f32 %v7245_v52, %v6934_v32 }
 0x224   : > { %v7468_v26 = vpop.permute.xlu1 %2056  ;;  %1794 = vperm.xlu0 %6022, %v7248_v34   ;;  %v1536_v61 = vmin.f32 %v1532_v39, %v1524_v29  ;;  %v1398_v31 = vmin.f32 %v1396_v19, %v1397_v23  ;;  %v1553_v23 = vld [vmem:[#allocation2 + $0x2] sm:$0x1] }
 0x225   : > { %9803 = vst [vmem:[#allocation35_spill] sm:$0xff] %v7468_v26  ;;  %v1534_v5 = vmin.f32 %v1518_v55, %v1522_v59  ;;  %v1537_v36 = vmin.f32 %v1533_v49, %v1525_v63  ;;  %v7510_v63 = vld [vmem:[%s6602_s21 + $0x118] sm:$0xff]  ;;  %v7519_v55 = vld [vmem:[%s6602_s21 + $0x128] sm:$0xff] }
 0x226   : > { %v1498_v11 = vpop.permute.xlu0 %1497  ;;  %v1540_v35 = vmin.f32 %v1536_v61, %v1528_v30  ;;  %v7699_v26 = vld [vmem:[%s6604_s28 + $0x58] sm:$0xff] }
 0x227   : > { %v1527_v4 = vadd.f32 %v7477_v46, %v1498_v11  ;;  %2571 = vperm.xlu1 %6015, %v7163_v22   ;;  %v1538_v22 = vmin.f32 %v1534_v5, %v1526_v58  ;;  %9850 = vst [vmem:[#allocation107_spill] sm:$0xff] %v7699_v26 }
 0x228   : > { %v7485_v57 = vpop.permute.xlu1 %2066  ;;  %1804 = vperm.xlu0 %6022, %v7255_v41  }
 0x229   : > { %9805 = vst [vmem:[#allocation37_spill] sm:$0xff] %v7485_v57  ;;  %v1539_v13 = vmin.f32 %v1535_v2, %v1527_v4  ;;  %v1542_v32 = vmin.f32 %v1538_v22, %v1530_v25  ;;  %v7528_v2 = vld [vmem:[%s6602_s21 + $0x138] sm:$0xff]  ;;  %v7537_v25 = vld [vmem:[%s6602_s21 + $0x148] sm:$0xff] }
 0x22a   : > { %v1508_v40 = vpop.permute.xlu0 %1507  ;;  %v7546_v22 = vld [vmem:[%s6602_s21 + $0x158] sm:$0xff] }
 0x22b   : > { %v1529_v54 = vadd.f32 %v7493_v48, %v1508_v40  ;;  %2650 = vperm.xlu1 %6015, %v7177_v42   ;;  %v1543_v7 = vmin.f32 %v1539_v13, %v1540_v35  ;;  %v1399_v42 = vrot.slane %v1398_v31, 2 }
 0x22c   : > { %v7497_v10 = vpop.permute.xlu1 %2076  ;;  %1814 = vperm.xlu0 %6022, %v7264_v14  }
 0x22d   : > { %9806 = vst [vmem:[#allocation46_spill] sm:$0xff] %v7497_v10  ;;  %v1541_v52 = vmin.f32 %v1537_v36, %v1529_v54  ;;  %v1400_v53 = vmin.f32 %v1398_v31, %v1399_v42  ;;  %v2765_v31 = vld [vmem:[%s6602_s21 + $0x8] sm:$0xff] }
 0x22e   : > { %v7503_v38 = vpop.permute.xlu0 %3710  ;;  %v7575_v42 = vld [vmem:[%s6602_s21 + $0x188] sm:$0xff] }
 0x22f   : > { %9807 = vst [vmem:[#allocation43_spill] sm:$0xff] %v7503_v38  ;;  %v1544_v37 = vmin.f32 %v1541_v52, %v1542_v32  ;;  %2660 = vperm.xlu1 %6015, %v7190_v8   ;;  %v1401_v58 = vrot.slane %v1400_v53, 1  ;;  %v7702_v10 = vld [vmem:[%s6604_s28 + $0x28] sm:$0xff] }
 0x230   : > { %v7506_v59 = vpop.permute.xlu1 %2086  ;;  %4007 = vperm.xlu0 %6022, %v7501_v1   ;;  %9851 = vst [vmem:[#allocation108_spill] sm:$0xff] %v7702_v10 }
 0x231   : > { %9808 = vst [vmem:[#allocation52_spill] sm:$0xff] %v7506_v59  ;;  %v1545_v49 = vmin.f32 %v1543_v7, %v1544_v37  ;;  %v1402_v30 = vmin.f32 %v1400_v53, %v1401_v58  ;;  %v9581_v7 = vmov 7   ;;  %v2766_v37 = vld [vmem:[%s6602_s21 + $0x10] sm:$0xff]  ;;  %v2768_v53 = vld [vmem:[%s6602_s21 + $0x20] sm:$0xff] }
 0x232   : > { %v7512_v19 = vpop.permute.xlu0 %3725  ;;  %v7696_v59 = vld [vmem:[%s6604_s28] sm:$0xff] }
 0x233   : > { %9809 = vst [vmem:[#allocation49_spill] sm:$0xff] %v7512_v19  ;;  %v1546_v50 = vrot.slane %v1545_v49, 4  ;;  %2670 = vperm.xlu1 %6015, %v7214_v27   ;;  %v2913_v19 = vld [vmem:[%s6602_s21 + $0x80] sm:$0xff] }
 0x234   : > { %v7515_v44 = vpop.permute.xlu1 %2096  ;;  %4022 = vperm.xlu0 %6022, %v7510_v63  }
 0x235   : > { %9810 = vst [vmem:[#allocation9_spill] sm:$0xff] %v7515_v44  ;;  %v1547_v8 = vmin.f32 %v1545_v49, %v1546_v50 }
 0x236   : > { %v7521_v11 = vpop.permute.xlu0 %3735 }
 0x237   : > { %9811 = vst [vmem:[#allocation70_spill] sm:$0xff] %v7521_v11  ;;  %v1548_v15 = vrot.slane %v1547_v8, 2  ;;  %2680 = vperm.xlu1 %6015, %v7229_v3   ;;  %v7638_v11 = vld [vmem:[%s6602_s21 + $0x1f8] sm:$0xff] }
 0x238   : > { %v7524_v29 = vpop.permute.xlu1 %2106  ;;  %4032 = vperm.xlu0 %6022, %v7519_v55  }
 0x239   : > { %9812 = vst [vmem:[#allocation71_spill] sm:$0xff] %v7524_v29  ;;  %v1549_v27 = vmin.f32 %v1547_v8, %v1548_v15  ;;  %v7584_v8 = vld [vmem:[%s6602_s21 + $0x198] sm:$0xff]  ;;  %v9848_v29 = vmov 0  }
 0x23a   : > { %v7530_v4 = vpop.permute.xlu0 %3745 }
 0x23b   : > { %9813 = vst [vmem:[#allocation72_spill] sm:$0xff] %v7530_v4  ;;  %v1550_v39 = vrot.slane %v1549_v27, 1  ;;  %2690 = vperm.xlu1 %6015, %v7239_v18   ;;  %v2778_v4 = vld [vmem:[%s6602_s21 + $0x70] sm:$0xff] }
 0x23c   : > { %v7533_v5 = vpop.permute.xlu1 %2116  ;;  %4042 = vperm.xlu0 %6022, %v7528_v2  }
 0x23d   : > { %9814 = vst [vmem:[#allocation73_spill] sm:$0xff] %v7533_v5  ;;  %v1551_v3 = vmin.f32 %v1549_v27, %v1550_v39  ;;  %v2770_v27 = vld [vmem:[%s6602_s21 + $0x30] sm:$0xff]  ;;  %v7593_v39 = vld [vmem:[%s6602_s21 + $0x1a8] sm:$0xff]  ;;  %v7681_v5 = vld [vmem:[%s6604_s28 + $0x18] sm:$0xff] }
 0x23e   : > { %v7539_v36 = vpop.permute.xlu0 %3755  ;;  %9846 = vst [vmem:[#allocation104_spill] sm:$0xff] %v7681_v5 }
 0x23f   : > { %9815 = vst [vmem:[#allocation74_spill] sm:$0xff] %v7539_v36  ;;  %v1552_v40 = vmin.f32 %v1402_v30, %v1551_v3  ;;  %2700 = vperm.xlu1 %6015, %v7248_v34   ;;  %v7555_v34 = vld [vmem:[%s6602_s21 + $0x168] sm:$0xff] }
 0x240   : > { %4052 = vperm.xlu0 %6022, %v7537_v25  }
 0x241   : > { %v1554_v18 = vmin.f32 %v1553_v23, %v1552_v40  ;;  %v7543_v61 = vpop.permute.xlu1 %2199  ;;  %v2772_v23 = vld [vmem:[%s6602_s21 + $0x40] sm:$0xff]  ;;  %v7602_v40 = vld [vmem:[%s6602_s21 + $0x1b8] sm:$0xff] }
 0x242   : > { %9816 = vst [vmem:[#allocation75_spill] sm:$0xff] %v7543_v61  ;;  %v7548_v13 = vpop.permute.xlu0 %3765 }
 0x243   : > { %9817 = vst [vmem:[#allocation76_spill] sm:$0xff] %v7548_v13  ;;  %1555 = vst [vmem:[#allocation2 + $0x2] sm:$0x1] %v1554_v18  ;;  %2710 = vperm.xlu1 %6015, %v7255_v41   ;;  %v7565_v41 = vld [vmem:[%s6602_s21 + $0x178] sm:$0xff] }
 0x244   : > { %4062 = vperm.xlu0 %6022, %v7546_v22  }
 0x245   : > { %v7552_v54 = vpop.permute.xlu1 %2204 }
 0x246   : > { %9818 = vst [vmem:[#allocation77_spill] sm:$0xff] %v7552_v54  ;;  %v7557_v35 = vpop.permute.xlu0 %3775  ;;  %v7651_v54 = vld [vmem:[%s6602_s21 + $0xb0] sm:$0xff] }
 0x247   : > { %9819 = vst [vmem:[#allocation78_spill] sm:$0xff] %v7557_v35  ;;  %2720 = vperm.xlu1 %6015, %v7264_v14  }
 0x248   : > { %4072 = vperm.xlu0 %6022, %v7555_v34  }
 0x249   : > { %v7561_v32 = vpop.permute.xlu1 %2214 }
 0x24a   : > { %9820 = vst [vmem:[#allocation79_spill] sm:$0xff] %v7561_v32  ;;  %v7567_v52 = vpop.permute.xlu0 %3854  ;;  %v7673_v32 = vld [vmem:[%s6602_s21 + $0xf0] sm:$0xff] }
 0x24b   : > { %9821 = vst [vmem:[#allocation80_spill] sm:$0xff] %v7567_v52  ;;  %6016 = vset.pattern.permute.xlu1 %v9581_v7  ;;  %v2774_v7 = vld [vmem:[%s6602_s21 + $0x50] sm:$0xff] }
 0x24c   : > { %2803 = vperm.xlu1 %6016, %v2765_v31   ;;  %4082 = vperm.xlu0 %6022, %v7565_v41  }
 0x24d   : > { %v7571_v14 = vpop.permute.xlu1 %2224 }
 0x24e   : > { %9822 = vst [vmem:[#allocation81_spill] sm:$0xff] %v7571_v14  ;;  %v7577_v49 = vpop.permute.xlu0 %3864  ;;  %v7667_v14 = vld [vmem:[%s6602_s21 + $0xe0] sm:$0xff] }
 0x24f   : > { %9823 = vst [vmem:[#allocation82_spill] sm:$0xff] %v7577_v49  ;;  %v7611_v49 = vld [vmem:[%s6602_s21 + $0x1c8] sm:$0xff] }
 0x250   : > { %2808 = vperm.xlu1 %6016, %v2766_v37   ;;  %4161 = vperm.xlu0 %6022, %v7575_v42  }
 0x251   : > { %v7580_v50 = vpop.permute.xlu1 %2234 }
 0x252   : > { %9824 = vst [vmem:[#allocation83_spill] sm:$0xff] %v7580_v50  ;;  %v7586_v15 = vpop.permute.xlu0 %3874 }
 0x253   : > { %9825 = vst [vmem:[#allocation84_spill] sm:$0xff] %v7586_v15  ;;  %v7620_v15 = vld [vmem:[%s6602_s21 + $0x1d8] sm:$0xff] }
 0x254   : > { %2818 = vperm.xlu1 %6016, %v2768_v53   ;;  %4171 = vperm.xlu0 %6022, %v7584_v8  }
 0x255   : > { %v7589_v58 = vpop.permute.xlu1 %2244 }
 0x256   : > { %9826 = vst [vmem:[#allocation85_spill] sm:$0xff] %v7589_v58  ;;  %v7595_v30 = vpop.permute.xlu0 %3884 }
 0x257   : > { %9827 = vst [vmem:[#allocation86_spill] sm:$0xff] %v7595_v30 }
 0x258   : > { %2828 = vperm.xlu1 %6016, %v2770_v27   ;;  %4181 = vperm.xlu0 %6022, %v7593_v39  }
 0x259   : > { %v7598_v3 = vpop.permute.xlu1 %2254 }
 0x25a   : > { %9828 = vst [vmem:[#allocation87_spill] sm:$0xff] %v7598_v3  ;;  %v7604_v18 = vpop.permute.xlu0 %3894 }
 0x25b   : > { %9829 = vst [vmem:[#allocation88_spill] sm:$0xff] %v7604_v18  ;;  %v2776_v18 = vld [vmem:[%s6602_s21 + $0x60] sm:$0xff] }
 0x25c   : > { %2838 = vperm.xlu1 %6016, %v2772_v23   ;;  %4191 = vperm.xlu0 %6022, %v7602_v40  }
 0x25d   : > { %v7607_v37 = vpop.permute.xlu1 %2264 }
 0x25e   : > { %9830 = vst [vmem:[#allocation89_spill] sm:$0xff] %v7607_v37  ;;  %v7613_v52 = vpop.permute.xlu0 %3904 }
 0x25f   : > { %9831 = vst [vmem:[#allocation90_spill] sm:$0xff] %v7613_v52  ;;  %v7629_v52 = vld [vmem:[%s6602_s21 + $0x1e8] sm:$0xff] }
 0x260   : > { %2848 = vperm.xlu1 %6016, %v2774_v7   ;;  %4201 = vperm.xlu0 %6022, %v7611_v49  }
 0x261   : > { %v7616_v30 = vpop.permute.xlu1 %2343 }
 0x262   : > { %9832 = vst [vmem:[#allocation91_spill] sm:$0xff] %v7616_v30  ;;  %v7622_v13 = vpop.permute.xlu0 %3914  ;;  %v2915_v30 = vld [vmem:[%s6602_s21 + $0x90] sm:$0xff] }
 0x263   : > { %9833 = vst [vmem:[#allocation92_spill] sm:$0xff] %v7622_v13 }
 0x264   : > { %2858 = vperm.xlu1 %6016, %v2776_v18   ;;  %4211 = vperm.xlu0 %6022, %v7620_v15  }
 0x265   : > { %v7625_v35 = vpop.permute.xlu1 %2353 }
 0x266   : > { %9834 = vst [vmem:[#allocation93_spill] sm:$0xff] %v7625_v35  ;;  %v7631_v36 = vpop.permute.xlu0 %3924 }
 0x267   : > { %9835 = vst [vmem:[#allocation94_spill] sm:$0xff] %v7631_v36  ;;  %v9838_v36 = vmov 4  }
 0x268   : > { %2868 = vperm.xlu1 %6016, %v2778_v4   ;;  %4221 = vperm.xlu0 %6022, %v7629_v52  }
 0x269   : > { %v7634_v38 = vpop.permute.xlu1 %2363 }
 0x26a   : > { %9836 = vst [vmem:[#allocation95_spill] sm:$0xff] %v7634_v38  ;;  %v2917_v38 = vld [vmem:[%s6602_s21 + $0xa0] sm:$0xff] }
 0x26b   : > { %v1591_v13 = vpop.permute.xlu0 %1590 }
 0x26c   : > { %2947 = vperm.xlu1 %6016, %v2913_v19   ;;  %4231 = vperm.xlu0 %6022, %v7638_v11  }
 0x26d   : > { %v7641_v35 = vpop.permute.xlu1 %2373 }
 0x26e   : > { %9837 = vst [vmem:[#allocation96_spill] sm:$0xff] %v7641_v35 }
 0x26f   : > { %v1606_v3 = vpop.permute.xlu0 %1605 }
 0x270   : > { %2957 = vperm.xlu1 %6016, %v2915_v30   ;;  %6024 = vset.pattern.permute.xlu0 %v9838_v36  ;;  %v7657_v36 = vld [vmem:[%s6602_s21 + $0xc0] sm:$0xff] }
 0x271   : > { %v7645_v37 = vpop.permute.xlu1 %2383  ;;  %1897 = vperm.xlu0 %6024, %v2765_v31  }
 0x272   : > { %9839 = vst [vmem:[#allocation97_spill] sm:$0xff] %v7645_v37 }
 0x273   : > { %v1616_v50 = vpop.permute.xlu0 %1615 }
 0x274   : > { %2967 = vperm.xlu1 %6016, %v2917_v38   ;;  %v1673_v21 = vadd.f32 %v1616_v50, %v7702_v10 }
 0x275   : > { %v7648_v58 = vpop.permute.xlu1 %2393  ;;  %1912 = vperm.xlu0 %6024, %v2768_v53  }
 0x276   : > { %9840 = vst [vmem:[#allocation98_spill] sm:$0xff] %v7648_v58  ;;  %v7663_v58 = vld [vmem:[%s6602_s21 + $0xd0] sm:$0xff] }
 0x277   : > { %v1626_v35 = vpop.permute.xlu0 %1625 }
 0x278   : > { %2977 = vperm.xlu1 %6016, %v7651_v54  }
 0x279   : > { %v7654_v61 = vpop.permute.xlu1 %2403  ;;  %1922 = vperm.xlu0 %6024, %v2770_v27  }
 0x27a   : > { %9841 = vst [vmem:[#allocation99_spill] sm:$0xff] %v7654_v61 }
 0x27b   : > { %v1636_v31 = vpop.permute.xlu0 %1635 }
 0x27c   : > { %2987 = vperm.xlu1 %6016, %v7657_v36  }
 0x27d   : > { %v7660_v37 = vpop.permute.xlu1 %2413  ;;  %1932 = vperm.xlu0 %6024, %v2772_v23  }
 0x27e   : > { %9842 = vst [vmem:[#allocation100_spill] sm:$0xff] %v7660_v37 }
 0x27f   : > { %v1646_v53 = vpop.permute.xlu0 %1645 }
 0x280   : > { %2997 = vperm.xlu1 %6016, %v7663_v58  }
 0x281   : > { %1942 = vperm.xlu0 %6024, %v2774_v7  }
 0x282   : > { %v7669_v61 = vpop.permute.xlu1 %2496 }
 0x283   : > { %9843 = vst [vmem:[#allocation101_spill] sm:$0xff] %v7669_v61  ;;  %v1656_v27 = vpop.permute.xlu0 %1655  ;;  %v7684_v61 = vld [vmem:[%s6604_s28 + $0x38] sm:$0xff] }
 0x284   : > { %3007 = vperm.xlu1 %6016, %v7667_v14   ;;  %9847 = vst [vmem:[#allocation105_spill] sm:$0xff] %v7684_v61  ;;  %v1675_v44 = vadd.f32 %v1626_v35, %v7684_v61  ;;  %v1679_v35 = vadd.f32 %v1646_v53, %v7699_v26  ;;  %v7718_v61 = vld [vmem:[%s6604_s28 + $0x78] sm:$0xff]  ;;  %v9856_v26 = vld [vmem:[#allocation17_spill] sm:$0xff] }
 0x285   : > { %1952 = vperm.xlu0 %6024, %v2776_v18   ;;  %v9853_v53 = vld [vmem:[#allocation40_spill] sm:$0xff] }
 0x286   : > { %v7675_v23 = vpop.permute.xlu1 %2506 }
 0x287   : > { %9844 = vst [vmem:[#allocation102_spill] sm:$0xff] %v7675_v23  ;;  %v1666_v37 = vpop.permute.xlu0 %1665  ;;  %v1671_v23 = vadd.f32 %v1606_v3, %v7681_v5  ;;  %v7715_v5 = vld [vmem:[%s6604_s28 + $0x48] sm:$0xff] }
 0x288   : > { %3017 = vperm.xlu1 %6016, %v7673_v32   ;;  %v1683_v50 = vadd.f32 %v1666_v37, %v7718_v61 }
 0x289   : > { %1962 = vperm.xlu0 %6024, %v2778_v4  }
 0x28a   : > { %v7678_v7 = vpop.permute.xlu1 %2511 }
 0x28b   : > { %9845 = vst [vmem:[#allocation103_spill] sm:$0xff] %v7678_v7  ;;  %v1745_v18 = vpop.permute.xlu0 %1744  ;;  %v7693_v7 = vld [vmem:[%s6602_s21 + $0x110] sm:$0xff] }
 0x28c   : > { %6017 = vset.pattern.permute.xlu1 %v9848_v29  ;;  %v1687_v29 = vmin.f32 %v1671_v23, %v1675_v44  ;;  %v1669_v44 = vadd.f32 %v7257_v43, %v7379_v62  ;;  %v9854_v23 = vld [vmem:[#allocation53_spill] sm:$0xff] }
 0x28d   : > { %3101 = vperm.xlu1 %6017, %v7501_v1   ;;  %2041 = vperm.xlu0 %6024, %v2913_v19   ;;  %v7706_v1 = vld [vmem:[%s6604_s28 + $0x10] sm:$0xff]  ;;  %v1668_v19 = vadd.f32 %v1591_v13, %v7696_v59 }
 0x28e   : > { %v7690_v4 = vpop.permute.xlu1 %2521  ;;  %v1670_v13 = vadd.f32 %v7266_v24, %v7706_v1 }
 0x28f   : > { %9849 = vst [vmem:[#allocation106_spill] sm:$0xff] %v7690_v4  ;;  %v1755_v6 = vpop.permute.xlu0 %1754  ;;  %v1674_v4 = vadd.f32 %v7279_v0, %v7382_v17  ;;  %v1678_v0 = vadd.f32 %v9854_v23, %v9853_v53  ;;  %v7730_v17 = vld [vmem:[%s6604_s28 + $0x68] sm:$0xff]  ;;  %v1676_v53 = vadd.f32 %v9856_v26, %v7411_v60  ;;  %v9857_v23 = vld [vmem:[#allocation57_spill] sm:$0xff]  ;;  %v7755_v26 = vld [vmem:[%s6604_s28 + $0x98] sm:$0xff] }
 0x290   : > { %v1682_v10 = vadd.f32 %v9857_v23, %v7414_v20  ;;  %v9859_v20 = vld [vmem:[#allocation55_spill] sm:$0xff] }
 0x291   : > { %3111 = vperm.xlu1 %6017, %v7693_v7   ;;  %2051 = vperm.xlu0 %6024, %v2915_v30   ;;  %v1672_v30 = vadd.f32 %v7272_v9, %v7392_v33  ;;  %v1677_v9 = vadd.f32 %v1636_v31, %v7715_v5  ;;  %v1691_v33 = vmin.f32 %v1687_v29, %v1679_v35  ;;  %v7746_v31 = vld [vmem:[%s6604_s28 + $0xa8] sm:$0xff] }
 0x292   : > { %v7710_v3 = vpop.permute.xlu1 %2531  ;;  %v1686_v43 = vmin.f32 %v1670_v13, %v1674_v4 }
 0x293   : > { %9852 = vst [vmem:[#allocation109_spill] sm:$0xff] %v7710_v3  ;;  %v1765_v57 = vpop.permute.xlu0 %1764  ;;  %v1684_v3 = vmin.f32 %v1668_v19, %v1672_v30  ;;  %v7743_v19 = vld [vmem:[%s6604_s28 + $0x88] sm:$0xff]  ;;  %v1695_v35 = vmin.f32 %v1691_v33, %v1683_v50 }
 0x294   : > { %v1690_v37 = vmin.f32 %v1686_v43, %v1678_v0 }
 0x295   : > { %3116 = vperm.xlu1 %6017, %v7510_v63   ;;  %2061 = vperm.xlu0 %6024, %v2917_v38   ;;  %v1685_v63 = vmin.f32 %v1669_v44, %v1673_v21  ;;  %v1681_v38 = vadd.f32 %v1656_v27, %v7730_v17  ;;  %v1688_v4 = vmin.f32 %v1684_v3, %v1676_v53  ;;  %v7758_v27 = vld [vmem:[%s6604_s28 + $0xb8] sm:$0xff]  ;;  %v7763_v3 = vld [vmem:[%s6604_s28 + $0xc8] sm:$0xff] }
 0x296   : > { %v7735_v62 = vpop.permute.xlu1 %2541  ;;  %v1680_v21 = vadd.f32 %v9859_v20, %v7424_v12  ;;  %v1694_v44 = vmin.f32 %v1690_v37, %v1682_v10  ;;  %v7772_v10 = vld [vmem:[%s6604_s28 + $0xd8] sm:$0xff] }
 0x297   : > { %9855 = vst [vmem:[#allocation40_spill] sm:$0xff] %v7735_v62  ;;  %v1775_v24 = vpop.permute.xlu0 %1774  ;;  %v1689_v29 = vmin.f32 %v1685_v63, %v1677_v9  ;;  %v1820_v9 = vadd.f32 %v1755_v6, %v7755_v26  ;;  %v7782_v6 = vld [vmem:[%s6604_s28 + $0xe8] sm:$0xff] }
 0x298   : > { %v1692_v12 = vmin.f32 %v1688_v4, %v1680_v21  ;;  %v1697_v0 = vmin.f32 %v1694_v44, %v1695_v35  ;;  %v1824_v33 = vadd.f32 %v1775_v24, %v7758_v27 }
 0x299   : > { %3126 = vperm.xlu1 %6017, %v7519_v55   ;;  %2071 = vperm.xlu0 %6024, %v7651_v54   ;;  %v1693_v13 = vmin.f32 %v1689_v29, %v1681_v38  ;;  %v1818_v55 = vadd.f32 %v1745_v18, %v7743_v19  ;;  %v1822_v54 = vadd.f32 %v1765_v57, %v7746_v31  ;;  %v9864_v29 = vld [vmem:[#allocation59_spill] sm:$0xff] }
 0x29a   : > { %v7750_v60 = vpop.permute.xlu1 %2551  ;;  %v1836_v38 = vmin.f32 %v1820_v9, %v1824_v33  ;;  %v1817_v35 = vadd.f32 %v9864_v29, %v7436_v47  ;;  %v7799_v47 = vld [vmem:[%s6604_s28 + $0xf8] sm:$0xff] }
 0x29b   : > { %9858 = vst [vmem:[#allocation53_spill] sm:$0xff] %v7750_v60  ;;  %v1785_v30 = vpop.permute.xlu0 %1784  ;;  %v1696_v43 = vmin.f32 %v1692_v12, %v1693_v13  ;;  %v1834_v57 = vmin.f32 %v1818_v55, %v1822_v54  ;;  %v8012_v60 = vld [vmem:[%s6604_s28 + $0x60] sm:$0xff] }
 0x29c   : > { %v1826_v53 = vadd.f32 %v1785_v30, %v7763_v3 }
 0x29d   : > { %3136 = vperm.xlu1 %6017, %v7528_v2   ;;  %2081 = vperm.xlu0 %6024, %v7657_v36   ;;  %v9861_v2 = vld [vmem:[#allocation45_spill] sm:$0xff]  ;;  %v9862_v36 = vld [vmem:[#allocation48_spill] sm:$0xff]  ;;  %v1698_v24 = vmin.f32 %v1696_v43, %v1697_v0 }
 0x29e   : > { %v7769_v50 = vpop.permute.xlu1 %2561  ;;  %v1821_v23 = vadd.f32 %v9861_v2, %v7439_v16  ;;  %v1823_v63 = vadd.f32 %v9862_v36, %v7448_v45  ;;  %v9865_v16 = vld [vmem:[#allocation42_spill] sm:$0xff]  ;;  %v1838_v44 = vmin.f32 %v1834_v57, %v1826_v53  ;;  %v9869_v0 = vld [vmem:[#allocation41_spill] sm:$0xff] }
 0x29f   : > { %9860 = vst [vmem:[#allocation17_spill] sm:$0xff] %v7769_v50  ;;  %v1795_v18 = vpop.permute.xlu0 %1794  ;;  %v1819_v20 = vadd.f32 %v9865_v16, %v7445_v56  ;;  %v9868_v56 = vld [vmem:[#allocation38_spill] sm:$0xff]  ;;  %v1699_v9 = vrot.slane %v1698_v24, 4  ;;  %v7986_v50 = vld [vmem:[%s6602_s21 + $0x100] sm:$0xff] }
 0x2a0   : > { %v1828_v37 = vadd.f32 %v1795_v18, %v7772_v10  ;;  %v1833_v55 = vmin.f32 %v1817_v35, %v1821_v23  ;;  %v1829_v12 = vadd.f32 %v9868_v56, %v7477_v46  ;;  %v7813_v36 = vld [vmem:[%s6602_s21 + $0x108] sm:$0xff]  ;;  %v7822_v35 = vld [vmem:[%s6602_s21 + $0x120] sm:$0xff] }
 0x2a1   : > { %3146 = vperm.xlu1 %6017, %v7537_v25   ;;  %2091 = vperm.xlu0 %6024, %v7663_v58   ;;  %v9866_v25 = vld [vmem:[#allocation51_spill] sm:$0xff]  ;;  %v9867_v58 = vld [vmem:[#allocation65_spill] sm:$0xff]  ;;  %v1835_v54 = vmin.f32 %v1819_v20, %v1823_v63  ;;  %v1700_v2 = vmin.f32 %v1698_v24, %v1699_v9 }
 0x2a2   : > { %v7785_v4 = vpop.permute.xlu1 %2571  ;;  %v1825_v21 = vadd.f32 %v9866_v25, %v7457_v51  ;;  %v1827_v30 = vadd.f32 %v9867_v58, %v7466_v28  ;;  %v1831_v51 = vadd.f32 %v9869_v0, %v7493_v48  ;;  %v1840_v28 = vmin.f32 %v1836_v38, %v1828_v37 }
 0x2a3   : > { %9863 = vst [vmem:[#allocation57_spill] sm:$0xff] %v7785_v4  ;;  %v1805_v45 = vpop.permute.xlu0 %1804  ;;  %v9917_v4 = vld [vmem:[#allocation69_spill] sm:$0xff] }
 0x2a4   : > { %v1830_v13 = vadd.f32 %v1805_v45, %v7782_v6  ;;  %v1837_v43 = vmin.f32 %v1833_v55, %v1825_v21  ;;  %v1839_v57 = vmin.f32 %v1835_v54, %v1827_v30 }
 0x2a5   : > { %3156 = vperm.xlu1 %6017, %v7546_v22   ;;  %2101 = vperm.xlu0 %6024, %v7667_v14  }
 0x2a6   : > { %v7805_v33 = vpop.permute.xlu1 %2650  ;;  %v1842_v53 = vmin.f32 %v1838_v44, %v1830_v13  ;;  %v1841_v46 = vmin.f32 %v1837_v43, %v1829_v12  ;;  %v1843_v14 = vmin.f32 %v1839_v57, %v1831_v51  ;;  %v1855_v51 = vld [vmem:[#allocation2 + $0x3] sm:$0x1] }
 0x2a7   : > { %9870 = vst [vmem:[#allocation55_spill] sm:$0xff] %v7805_v33  ;;  %v1815_v18 = vpop.permute.xlu0 %1814  ;;  %v7974_v33 = vld [vmem:[%s6604_s28 + $0x18] sm:$0xff] }
 0x2a8   : > { %v1832_v22 = vadd.f32 %v1815_v18, %v7799_v47  ;;  %v1845_v38 = vmin.f32 %v1841_v46, %v1842_v53 }
 0x2a9   : > { %3166 = vperm.xlu1 %6017, %v7555_v34   ;;  %2111 = vperm.xlu0 %6024, %v7673_v32   ;;  %v1701_v34 = vrot.slane %v1700_v2, 2 }
 0x2aa   : > { %v1844_v48 = vmin.f32 %v1840_v28, %v1832_v22  ;;  %v7810_v23 = vpop.permute.xlu1 %2660  ;;  %v5772_v22 = vld [vmem:[%s6602_s21 + $0x170] sm:$0xff] }
 0x2ab   : > { %9871 = vst [vmem:[#allocation45_spill] sm:$0xff] %v7810_v23  ;;  %v7815_v63 = vpop.permute.xlu0 %4007  ;;  %v1702_v20 = vmin.f32 %v1700_v2, %v1701_v34  ;;  %v2314_v23 = vld [vmem:[%s6602_s21 + $0xa8] sm:$0xff] }
 0x2ac   : > { %9872 = vst [vmem:[#allocation48_spill] sm:$0xff] %v7815_v63  ;;  %v1846_v37 = vmin.f32 %v1843_v14, %v1844_v48  ;;  %v8080_v63 = vld [vmem:[%s6604_s28 + $0xc8] sm:$0xff] }
 0x2ad   : > { %3176 = vperm.xlu1 %6017, %v7565_v41   ;;  %4314 = vperm.xlu0 %6024, %v7813_v36   ;;  %v7831_v41 = vld [vmem:[%s6602_s21 + $0x130] sm:$0xff]  ;;  %v1703_v30 = vrot.slane %v1702_v20, 1  ;;  %9937 = vst [vmem:[#allocation145_spill] sm:$0xff] %v8080_v63 }
 0x2ae   : > { %v1847_v29 = vmin.f32 %v1845_v38, %v1846_v37  ;;  %v7819_v32 = vpop.permute.xlu1 %2670 }
 0x2af   : > { %9873 = vst [vmem:[#allocation59_spill] sm:$0xff] %v7819_v32  ;;  %v7824_v24 = vpop.permute.xlu0 %4022  ;;  %v1704_v56 = vmin.f32 %v1702_v20, %v1703_v30  ;;  %v5784_v30 = vld [vmem:[%s6602_s21 + $0x1d0] sm:$0xff] }
 0x2b0   : > { %9874 = vst [vmem:[#allocation42_spill] sm:$0xff] %v7824_v24  ;;  %v1848_v16 = vrot.slane %v1847_v29, 4  ;;  %v8077_v24 = vld [vmem:[%s6604_s28 + $0x98] sm:$0xff] }
 0x2b1   : > { %3255 = vperm.xlu1 %6017, %v7575_v42   ;;  %4329 = vperm.xlu0 %6024, %v7822_v35   ;;  %v5766_v42 = vld [vmem:[%s6602_s21 + $0x140] sm:$0xff]  ;;  %9936 = vst [vmem:[#allocation144_spill] sm:$0xff] %v8077_v24 }
 0x2b2   : > { %v1849_v45 = vmin.f32 %v1847_v29, %v1848_v16  ;;  %v7828_v25 = vpop.permute.xlu1 %2680  ;;  %v9891_v29 = vmov 1  }
 0x2b3   : > { %9875 = vst [vmem:[#allocation51_spill] sm:$0xff] %v7828_v25  ;;  %v7833_v21 = vpop.permute.xlu0 %4032  ;;  %v7977_v25 = vld [vmem:[%s6604_s28 + $0x58] sm:$0xff] }
 0x2b4   : > { %9876 = vst [vmem:[#allocation65_spill] sm:$0xff] %v7833_v21  ;;  %v1850_v58 = vrot.slane %v1849_v45, 2 }
 0x2b5   : > { %3265 = vperm.xlu1 %6017, %v7584_v8   ;;  %4339 = vperm.xlu0 %6024, %v7831_v41   ;;  %v5768_v8 = vld [vmem:[%s6602_s21 + $0x150] sm:$0xff] }
 0x2b6   : > { %v1851_v44 = vmin.f32 %v1849_v45, %v1850_v58  ;;  %v7837_v13 = vpop.permute.xlu1 %2690 }
 0x2b7   : > { %9877 = vst [vmem:[#allocation38_spill] sm:$0xff] %v7837_v13  ;;  %v7840_v55 = vpop.permute.xlu0 %4042  ;;  %v7970_v13 = vld [vmem:[%s6604_s28 + $0x50] sm:$0xff] }
 0x2b8   : > { %9878 = vst [vmem:[#allocation41_spill] sm:$0xff] %v7840_v55  ;;  %v1852_v54 = vrot.slane %v1851_v44, 1  ;;  %v8088_v55 = vld [vmem:[%s6604_s28 + $0xd8] sm:$0xff] }
 0x2b9   : > { %3275 = vperm.xlu1 %6017, %v7593_v39   ;;  %4349 = vperm.xlu0 %6024, %v5766_v42   ;;  %v5770_v39 = vld [vmem:[%s6602_s21 + $0x160] sm:$0xff] }
 0x2ba   : > { %v1853_v12 = vmin.f32 %v1851_v44, %v1852_v54  ;;  %v7843_v0 = vpop.permute.xlu1 %2700  ;;  %v5786_v54 = vld [vmem:[%s6602_s21 + $0x1e0] sm:$0xff] }
 0x2bb   : > { %9879 = vst [vmem:[#allocation110_spill] sm:$0xff] %v7843_v0  ;;  %v7846_v9 = vpop.permute.xlu0 %4052 }
 0x2bc   : > { %9880 = vst [vmem:[#allocation111_spill] sm:$0xff] %v7846_v9  ;;  %v1854_v28 = vmin.f32 %v1704_v56, %v1853_v12  ;;  %v8022_v9 = vld [vmem:[%s6604_s28 + $0x68] sm:$0xff] }
 0x2bd   : > { %3285 = vperm.xlu1 %6017, %v7602_v40   ;;  %4359 = vperm.xlu0 %6024, %v5768_v8   ;;  %v5774_v40 = vld [vmem:[%s6602_s21 + $0x180] sm:$0xff] }
 0x2be   : > { %v1856_v18 = vmin.f32 %v1855_v51, %v1854_v28  ;;  %v7849_v43 = vpop.permute.xlu1 %2710  ;;  %v5788_v51 = vld [vmem:[%s6602_s21 + $0x1f0] sm:$0xff] }
 0x2bf   : > { %9881 = vst [vmem:[#allocation112_spill] sm:$0xff] %v7849_v43  ;;  %v7852_v57 = vpop.permute.xlu0 %4062  ;;  %v9913_v43 = vld [vmem:[#allocation67_spill] sm:$0xff] }
 0x2c0   : > { %9882 = vst [vmem:[#allocation113_spill] sm:$0xff] %v7852_v57  ;;  %1857 = vst [vmem:[#allocation2 + $0x3] sm:$0x1] %v1856_v18 }
 0x2c1   : > { %3295 = vperm.xlu1 %6017, %v7611_v49   ;;  %4369 = vperm.xlu0 %6024, %v5770_v39   ;;  %v5776_v49 = vld [vmem:[%s6602_s21 + $0x190] sm:$0xff]  ;;  %9922 = vst [vmem:[#allocation67_spill] sm:$0xff] %v8022_v9 }
 0x2c2   : > { %v7855_v53 = vpop.permute.xlu1 %2720 }
 0x2c3   : > { %9883 = vst [vmem:[#allocation114_spill] sm:$0xff] %v7855_v53  ;;  %v7858_v46 = vpop.permute.xlu0 %4072 }
 0x2c4   : > { %9884 = vst [vmem:[#allocation115_spill] sm:$0xff] %v7858_v46  ;;  %v9919_v46 = vld [vmem:[#allocation68_spill] sm:$0xff] }
 0x2c5   : > { %3305 = vperm.xlu1 %6017, %v7620_v15   ;;  %4379 = vperm.xlu0 %6024, %v5772_v22   ;;  %v5778_v15 = vld [vmem:[%s6602_s21 + $0x1a0] sm:$0xff] }
 0x2c7   : > { %v7862_v14 = vpop.permute.xlu1 %2803  ;;  %v7864_v2 = vpop.permute.xlu0 %4082 }
 0x2c8   : > { %9885 = vst [vmem:[#allocation116_spill] sm:$0xff] %v7862_v14  ;;  %9886 = vst [vmem:[#allocation117_spill] sm:$0xff] %v7864_v2  ;;  %v2167_v14 = vld [vmem:[%s6602_s21 + $0x38] sm:$0xff] }
 0x2c9   : > { %3315 = vperm.xlu1 %6017, %v7629_v52   ;;  %4458 = vperm.xlu0 %6024, %v5774_v40   ;;  %v5780_v52 = vld [vmem:[%s6602_s21 + $0x1b0] sm:$0xff] }
 0x2cb   : > { %v7868_v48 = vpop.permute.xlu1 %2808  ;;  %v7870_v38 = vpop.permute.xlu0 %4161 }
 0x2cc   : > { %9887 = vst [vmem:[#allocation118_spill] sm:$0xff] %v7868_v48  ;;  %9888 = vst [vmem:[#allocation119_spill] sm:$0xff] %v7870_v38 }
 0x2cd   : > { %3325 = vperm.xlu1 %6017, %v7638_v11   ;;  %4468 = vperm.xlu0 %6024, %v5776_v49   ;;  %v5782_v11 = vld [vmem:[%s6602_s21 + $0x1c0] sm:$0xff] }
 0x2cf   : > { %v7874_v37 = vpop.permute.xlu1 %2818  ;;  %v7876_v34 = vpop.permute.xlu0 %4171 }
 0x2d0   : > { %9889 = vst [vmem:[#allocation120_spill] sm:$0xff] %v7874_v37  ;;  %9890 = vst [vmem:[#allocation121_spill] sm:$0xff] %v7876_v34  ;;  %v8001_v34 = vld [vmem:[%s6604_s28 + $0x48] sm:$0xff] }
 0x2d1   : > { %6019 = vset.pattern.permute.xlu1 %v9891_v29  ;;  %4478 = vperm.xlu0 %6024, %v5778_v15  }
 0x2d2   : > { %3408 = vperm.xlu1 %6019, %v7813_v36  }
 0x2d3   : > { %v7881_v16 = vpop.permute.xlu1 %2828  ;;  %v7883_v20 = vpop.permute.xlu0 %4181 }
 0x2d4   : > { %9892 = vst [vmem:[#allocation122_spill] sm:$0xff] %v7881_v16  ;;  %9893 = vst [vmem:[#allocation123_spill] sm:$0xff] %v7883_v20  ;;  %v9912_v16 = vld [vmem:[#allocation66_spill] sm:$0xff] }
 0x2d5   : > { %4488 = vperm.xlu0 %6024, %v5780_v52   ;;  %9920 = vst [vmem:[#allocation66_spill] sm:$0xff] %v8012_v60 }
 0x2d6   : > { %3413 = vperm.xlu1 %6019, %v7693_v7  }
 0x2d7   : > { %v7887_v45 = vpop.permute.xlu1 %2838  ;;  %v7889_v58 = vpop.permute.xlu0 %4191 }
 0x2d8   : > { %9894 = vst [vmem:[#allocation124_spill] sm:$0xff] %v7887_v45  ;;  %9895 = vst [vmem:[#allocation125_spill] sm:$0xff] %v7889_v58 }
 0x2d9   : > { %4498 = vperm.xlu0 %6024, %v5782_v11  }
 0x2da   : > { %3423 = vperm.xlu1 %6019, %v7822_v35  }
 0x2db   : > { %v7893_v36 = vpop.permute.xlu1 %2848  ;;  %v7895_v44 = vpop.permute.xlu0 %4201 }
 0x2dc   : > { %9896 = vst [vmem:[#allocation126_spill] sm:$0xff] %v7893_v36  ;;  %9897 = vst [vmem:[#allocation127_spill] sm:$0xff] %v7895_v44 }
 0x2dd   : > { %4508 = vperm.xlu0 %6024, %v5784_v30  }
 0x2de   : > { %3433 = vperm.xlu1 %6019, %v7831_v41   ;;  %v2160_v41 = vld [vmem:[%s6602_s21] sm:$0xff] }
 0x2df   : > { %v7899_v56 = vpop.permute.xlu1 %2858  ;;  %v7901_v12 = vpop.permute.xlu0 %4211 }
 0x2e0   : > { %9898 = vst [vmem:[#allocation128_spill] sm:$0xff] %v7899_v56  ;;  %9899 = vst [vmem:[#allocation129_spill] sm:$0xff] %v7901_v12  ;;  %v9904_v56 = vmov 5   ;;  %v9916_v12 = vld [vmem:[#allocation50_spill] sm:$0xff] }
 0x2e1   : > { %4518 = vperm.xlu0 %6024, %v5786_v54   ;;  %v1973_v44 = vadd.f32 %v7974_v33, %v9916_v12  ;;  %v8007_v12 = vld [vmem:[%s6604_s28 + $0x78] sm:$0xff] }
 0x2e2   : > { %3443 = vperm.xlu1 %6019, %v5766_v42   ;;  %v2163_v42 = vld [vmem:[%s6602_s21 + $0x18] sm:$0xff] }
 0x2e3   : > { %v7904_v28 = vpop.permute.xlu1 %2868  ;;  %v7906_v35 = vpop.permute.xlu0 %4221 }
 0x2e4   : > { %9900 = vst [vmem:[#allocation130_spill] sm:$0xff] %v7904_v28  ;;  %9901 = vst [vmem:[#allocation131_spill] sm:$0xff] %v7906_v35 }
 0x2e5   : > { %4528 = vperm.xlu0 %6024, %v5788_v51  }
 0x2e6   : > { %3453 = vperm.xlu1 %6019, %v5768_v8   ;;  %v2165_v8 = vld [vmem:[%s6602_s21 + $0x28] sm:$0xff] }
 0x2e7   : > { %v7908_v18 = vpop.permute.xlu1 %2947  ;;  %v7910_v29 = vpop.permute.xlu0 %4231 }
 0x2e8   : > { %9902 = vst [vmem:[#allocation132_spill] sm:$0xff] %v7908_v18  ;;  %9903 = vst [vmem:[#allocation133_spill] sm:$0xff] %v7910_v29  ;;  %v9915_v29 = vld [vmem:[#allocation44_spill] sm:$0xff] }
 0x2e9   : > { %6026 = vset.pattern.permute.xlu0 %v9904_v56  ;;  %v9940_v56 = vld [vmem:[#allocation39_spill] sm:$0xff] }
 0x2ea   : > { %3463 = vperm.xlu1 %6019, %v5770_v39   ;;  %2194 = vperm.xlu0 %6026, %v2160_v41  }
 0x2eb   : > { %v7914_v45 = vpop.permute.xlu1 %2957 }
 0x2ec   : > { %9905 = vst [vmem:[#allocation134_spill] sm:$0xff] %v7914_v45  ;;  %v1898_v28 = vpop.permute.xlu0 %1897  ;;  %v2169_v45 = vld [vmem:[%s6602_s21 + $0x48] sm:$0xff] }
 0x2ee   : > { %3473 = vperm.xlu1 %6019, %v5772_v22   ;;  %2209 = vperm.xlu0 %6026, %v2163_v42  }
 0x2ef   : > { %v7917_v36 = vpop.permute.xlu1 %2967 }
 0x2f0   : > { %9906 = vst [vmem:[#allocation135_spill] sm:$0xff] %v7917_v36  ;;  %v1913_v18 = vpop.permute.xlu0 %1912  ;;  %v2171_v36 = vld [vmem:[%s6602_s21 + $0x58] sm:$0xff] }
 0x2f2   : > { %3552 = vperm.xlu1 %6019, %v5774_v40   ;;  %2219 = vperm.xlu0 %6026, %v2165_v8  }
 0x2f3   : > { %v7920_v48 = vpop.permute.xlu1 %2977 }
 0x2f4   : > { %9907 = vst [vmem:[#allocation136_spill] sm:$0xff] %v7920_v48  ;;  %v1923_v39 = vpop.permute.xlu0 %1922  ;;  %v7953_v48 = vld [vmem:[%s6604_s28] sm:$0xff] }
 0x2f5   : > { %v1970_v35 = vadd.f32 %v7953_v48, %v9915_v29  ;;  %v9918_v29 = vmov 2  }
 0x2f6   : > { %3562 = vperm.xlu1 %6019, %v5776_v49   ;;  %2229 = vperm.xlu0 %6026, %v2167_v14   ;;  %v2173_v49 = vld [vmem:[%s6602_s21 + $0x68] sm:$0xff] }
 0x2f7   : > { %v7923_v41 = vpop.permute.xlu1 %2987 }
 0x2f8   : > { %9908 = vst [vmem:[#allocation137_spill] sm:$0xff] %v7923_v41  ;;  %v1933_v22 = vpop.permute.xlu0 %1932 }
 0x2fa   : > { %3572 = vperm.xlu1 %6019, %v5778_v15   ;;  %2239 = vperm.xlu0 %6026, %v2169_v45   ;;  %v2175_v15 = vld [vmem:[%s6602_s21 + $0x78] sm:$0xff] }
 0x2fb   : > { %v7926_v42 = vpop.permute.xlu1 %2997 }
 0x2fc   : > { %9909 = vst [vmem:[#allocation138_spill] sm:$0xff] %v7926_v42  ;;  %v1943_v40 = vpop.permute.xlu0 %1942 }
 0x2fe   : > { %3582 = vperm.xlu1 %6019, %v5780_v52   ;;  %2249 = vperm.xlu0 %6026, %v2171_v36   ;;  %v2310_v52 = vld [vmem:[%s6602_s21 + $0x88] sm:$0xff] }
 0x2ff   : > { %v7929_v8 = vpop.permute.xlu1 %3007 }
 0x300   : > { %9910 = vst [vmem:[#allocation139_spill] sm:$0xff] %v7929_v8  ;;  %v1953_v14 = vpop.permute.xlu0 %1952 }
 0x302   : > { %3592 = vperm.xlu1 %6019, %v5782_v11   ;;  %2259 = vperm.xlu0 %6026, %v2173_v49   ;;  %v2312_v11 = vld [vmem:[%s6602_s21 + $0x98] sm:$0xff]  ;;  %v7942_v49 = vld [vmem:[%s6604_s28 + $0x8] sm:$0xff] }
 0x303   : > { %v7932_v41 = vpop.permute.xlu1 %3017 }
 0x304   : > { %9911 = vst [vmem:[#allocation140_spill] sm:$0xff] %v7932_v41  ;;  %v1963_v45 = vpop.permute.xlu0 %1962 }
 0x306   : > { %3602 = vperm.xlu1 %6019, %v5784_v30   ;;  %2269 = vperm.xlu0 %6026, %v2175_v15   ;;  %v7949_v30 = vld [vmem:[%s6604_s28 + $0x30] sm:$0xff]  ;;  %v1971_v15 = vadd.f32 %v7942_v49, %v1898_v28  ;;  %v7967_v28 = vld [vmem:[%s6604_s28 + $0x20] sm:$0xff] }
 0x307   : > { %v1976_v37 = vadd.f32 %v7949_v30, %v1923_v39 }
 0x308   : > { %v7936_v36 = vpop.permute.xlu1 %3101  ;;  %v7938_v42 = vpop.permute.xlu0 %2041 }
 0x30a   : > { %3612 = vperm.xlu1 %6019, %v5786_v54   ;;  %2348 = vperm.xlu0 %6026, %v2310_v52   ;;  %v7956_v54 = vld [vmem:[%s6604_s28 + $0x28] sm:$0xff]  ;;  %v7959_v52 = vld [vmem:[%s6604_s28 + $0x38] sm:$0xff] }
 0x30b   : > { %v1975_v53 = vadd.f32 %v7956_v54, %v9912_v16  ;;  %v1977_v0 = vadd.f32 %v7959_v52, %v9913_v43  ;;  %v1974_v16 = vadd.f32 %v7967_v28, %v1913_v18  ;;  %v7995_v18 = vld [vmem:[%s6604_s28 + $0x40] sm:$0xff] }
 0x30c   : > { %v7944_v41 = vpop.permute.xlu1 %3111  ;;  %v7946_v8 = vpop.permute.xlu0 %2051  ;;  %v1978_v38 = vadd.f32 %v7995_v18, %v1933_v22 }
 0x30d   : > { %v1989_v20 = vmin.f32 %v1973_v44, %v1977_v0 }
 0x30e   : > { %3622 = vperm.xlu1 %6019, %v5788_v51   ;;  %2358 = vperm.xlu0 %6026, %v2312_v11   ;;  %v9914_v51 = vld [vmem:[#allocation47_spill] sm:$0xff]  ;;  %v1980_v11 = vadd.f32 %v7970_v13, %v1943_v40 }
 0x30f   : > { %v1972_v39 = vadd.f32 %v9914_v51, %v7706_v1  ;;  %v1981_v1 = vadd.f32 %v7977_v25, %v9917_v4  ;;  %v7998_v40 = vld [vmem:[%s6604_s28 + $0x70] sm:$0xff]  ;;  %v1987_v51 = vmin.f32 %v1971_v15, %v1975_v53  ;;  %v1979_v4 = vadd.f32 %v8001_v34, %v9919_v46  ;;  %v2316_v53 = vld [vmem:[%s6602_s21 + $0xb8] sm:$0xff] }
 0x310   : > { %v7983_v43 = vpop.permute.xlu1 %3116  ;;  %v2062_v32 = vpop.permute.xlu0 %2061  ;;  %v1984_v58 = vadd.f32 %v7998_v40, %v1963_v45  ;;  %v1986_v45 = vmin.f32 %v1970_v35, %v1974_v16  ;;  %v1982_v15 = vadd.f32 %v8012_v60, %v1953_v14  ;;  %v2318_v35 = vld [vmem:[%s6602_s21 + $0xc8] sm:$0xff]  ;;  %v9923_v16 = vld [vmem:[#allocation36_spill] sm:$0xff]  ;;  %v9948_v60 = vld [vmem:[#allocation73_spill] sm:$0xff] }
 0x311   : > { %v1988_v62 = vmin.f32 %v1972_v39, %v1976_v37  ;;  %v9921_v37 = vld [vmem:[#allocation12_spill] sm:$0xff]  ;;  %v1993_v46 = vmin.f32 %v1989_v20, %v1981_v1  ;;  %v1991_v39 = vmin.f32 %v1987_v51, %v1979_v4  ;;  %v8043_v4 = vld [vmem:[%s6604_s28 + $0x90] sm:$0xff] }
 0x312   : > { %6021 = vset.pattern.permute.xlu1 %v9918_v29  ;;  %2368 = vperm.xlu0 %6026, %v2314_v23   ;;  %v1985_v22 = vadd.f32 %v8007_v12, %v9921_v37  ;;  %v1990_v29 = vmin.f32 %v1986_v45, %v1978_v38  ;;  %v8032_v37 = vld [vmem:[%s6604_s28 + $0xa0] sm:$0xff]  ;;  %v8037_v1 = vld [vmem:[%s6602_s21 + $0x118] sm:$0xff]  ;;  %9927 = vst [vmem:[#allocation69_spill] sm:$0xff] %v8043_v4 }
 0x313   : > { %3705 = vperm.xlu1 %6021, %v7986_v50   ;;  %v1992_v23 = vmin.f32 %v1988_v62, %v1980_v11  ;;  %v1983_v62 = vadd.f32 %v8022_v9, %v9923_v16  ;;  %v8029_v11 = vld [vmem:[%s6604_s28 + $0x80] sm:$0xff]  ;;  %9925 = vst [vmem:[#allocation44_spill] sm:$0xff] %v8032_v37  ;;  %9926 = vst [vmem:[#allocation50_spill] sm:$0xff] %v8037_v1  ;;  %v2123_v51 = vadd.f32 %v8032_v37, %v2062_v32  ;;  %v8059_v16 = vld [vmem:[%s6602_s21 + $0x128] sm:$0xff] }
 0x314   : > { %v8019_v0 = vpop.permute.xlu1 %3126  ;;  %v2072_v44 = vpop.permute.xlu0 %2071  ;;  %v1997_v14 = vmin.f32 %v1993_v46, %v1985_v22  ;;  %9924 = vst [vmem:[#allocation47_spill] sm:$0xff] %v8029_v11  ;;  %v1994_v38 = vmin.f32 %v1990_v29, %v1982_v15  ;;  %v8054_v32 = vld [vmem:[%s6604_s28 + $0xc0] sm:$0xff]  ;;  %9930 = vst [vmem:[#allocation36_spill] sm:$0xff] %v8059_v16 }
 0x315   : > { %v1996_v2 = vmin.f32 %v1992_v23, %v1984_v58  ;;  %v1995_v22 = vmin.f32 %v1991_v39, %v1983_v62  ;;  %v2121_v23 = vadd.f32 %v8043_v4, %v7946_v8  ;;  %9929 = vst [vmem:[#allocation12_spill] sm:$0xff] %v8054_v32  ;;  %v8069_v62 = vld [vmem:[%s6604_s28 + $0xb8] sm:$0xff]  ;;  %v8095_v4 = vld [vmem:[%s6604_s28 + $0xe0] sm:$0xff] }
 0x316   : > { %2378 = vperm.xlu0 %6026, %v2316_v53   ;;  %v8046_v53 = vld [vmem:[%s6604_s28 + $0xb0] sm:$0xff]  ;;  %9933 = vst [vmem:[#allocation143_spill] sm:$0xff] %v8069_v62  ;;  %9942 = vst [vmem:[#allocation39_spill] sm:$0xff] %v8095_v4 }
 0x317   : > { %3715 = vperm.xlu1 %6021, %v7693_v7   ;;  %v2119_v7 = vadd.f32 %v8029_v11, %v7938_v42  ;;  %9928 = vst [vmem:[#allocation68_spill] sm:$0xff] %v8046_v53  ;;  %v1999_v45 = vmin.f32 %v1996_v2, %v1997_v14  ;;  %v2125_v15 = vadd.f32 %v8046_v53, %v2072_v44  ;;  %v2320_v42 = vld [vmem:[%s6602_s21 + $0xd8] sm:$0xff]  ;;  %v8062_v2 = vld [vmem:[%s6604_s28 + $0xa8] sm:$0xff]  ;;  %v9934_v14 = vld [vmem:[#allocation37_spill] sm:$0xff] }
 0x318   : > { %v8034_v20 = vpop.permute.xlu1 %3136  ;;  %v2082_v58 = vpop.permute.xlu0 %2081  ;;  %v1998_v46 = vmin.f32 %v1994_v38, %v1995_v22  ;;  %9931 = vst [vmem:[#allocation141_spill] sm:$0xff] %v8062_v2  ;;  %v2124_v38 = vadd.f32 %v8062_v2, %v9934_v14  ;;  %v8074_v22 = vld [vmem:[%s6604_s28 + $0xd0] sm:$0xff]  ;;  %v2322_v14 = vld [vmem:[%s6602_s21 + $0xe8] sm:$0xff] }
 0x319   : > { %v2135_v8 = vmin.f32 %v2119_v7, %v2123_v51  ;;  %v2127_v44 = vadd.f32 %v8054_v32, %v2082_v58  ;;  %9935 = vst [vmem:[#allocation37_spill] sm:$0xff] %v8074_v22  ;;  %v9938_v7 = vld [vmem:[#allocation46_spill] sm:$0xff]  ;;  %v2137_v51 = vmin.f32 %v2121_v23, %v2125_v15  ;;  %v8100_v23 = vld [vmem:[%s6602_s21 + $0x138] sm:$0xff]  ;;  %v9947_v2 = vld [vmem:[#allocation71_spill] sm:$0xff] }
 0x31a   : > { %2388 = vperm.xlu0 %6026, %v2318_v35   ;;  %v8066_v35 = vld [vmem:[%s6604_s28 + $0x88] sm:$0xff]  ;;  %v2000_v57 = vmin.f32 %v1998_v46, %v1999_v45  ;;  %v2126_v58 = vadd.f32 %v8069_v62, %v9938_v7  ;;  %9939 = vst [vmem:[#allocation46_spill] sm:$0xff] %v8088_v55  ;;  %v9943_v15 = vld [vmem:[#allocation52_spill] sm:$0xff] }
 0x31b   : > { %3720 = vperm.xlu1 %6021, %v8037_v1   ;;  %9932 = vst [vmem:[#allocation142_spill] sm:$0xff] %v8066_v35  ;;  %v2120_v45 = vadd.f32 %v8066_v35, %v9940_v56  ;;  %v2139_v11 = vmin.f32 %v2135_v8, %v2127_v44  ;;  %v2324_v8 = vld [vmem:[%s6602_s21 + $0xf8] sm:$0xff]  ;;  %v8120_v44 = vld [vmem:[%s6604_s28 + $0xf0] sm:$0xff] }
 0x31c   : > { %v8056_v29 = vpop.permute.xlu1 %3146  ;;  %v2092_v39 = vpop.permute.xlu0 %2091  ;;  %v2001_v35 = vrot.slane %v2000_v57, 4 }
 0x31d   : > { %v2129_v21 = vadd.f32 %v8074_v22, %v2092_v39  ;;  %v2128_v39 = vadd.f32 %v8080_v63, %v9943_v15  ;;  %v9944_v22 = vld [vmem:[#allocation9_spill] sm:$0xff]  ;;  %v2136_v62 = vmin.f32 %v2120_v45, %v2124_v38  ;;  %v8125_v38 = vld [vmem:[%s6602_s21 + $0x148] sm:$0xff] }
 0x31e   : > { %2398 = vperm.xlu0 %6026, %v2320_v42   ;;  %v9941_v42 = vld [vmem:[#allocation35_spill] sm:$0xff]  ;;  %v2130_v53 = vadd.f32 %v8088_v55, %v9944_v22 }
 0x31f   : > { %3730 = vperm.xlu1 %6021, %v8059_v16   ;;  %v2122_v46 = vadd.f32 %v8077_v24, %v9941_v42  ;;  %v8108_v42 = vld [vmem:[%s6604_s28 + $0xe8] sm:$0xff]  ;;  %v8111_v24 = vld [vmem:[%s6604_s28 + $0xf8] sm:$0xff]  ;;  %v2141_v63 = vmin.f32 %v2137_v51, %v2129_v21 }
 0x320   : > { %v8097_v32 = vpop.permute.xlu1 %3156  ;;  %v2102_v7 = vpop.permute.xlu0 %2101  ;;  %9945 = vst [vmem:[#allocation35_spill] sm:$0xff] %v8108_v42  ;;  %9946 = vst [vmem:[#allocation52_spill] sm:$0xff] %v8111_v24  ;;  %v2132_v9 = vadd.f32 %v8108_v42, %v9947_v2  ;;  %v2134_v15 = vadd.f32 %v8111_v24, %v9948_v60 }
 0x321   : > { %v2131_v56 = vadd.f32 %v8095_v4, %v2102_v7  ;;  %v2138_v37 = vmin.f32 %v2122_v46, %v2126_v58  ;;  %v2002_v46 = vmin.f32 %v2000_v57, %v2001_v35  ;;  %v8132_v4 = vld [vmem:[%s6602_s21 + $0x158] sm:$0xff] }
 0x322   : > { %2408 = vperm.xlu0 %6026, %v2322_v14   ;;  %v2140_v14 = vmin.f32 %v2136_v62, %v2128_v39  ;;  %v2480_v39 = vld [vmem:[%s6604_s28 + $0x10] sm:$0xff] }
 0x323   : > { %3740 = vperm.xlu1 %6021, %v8100_v23   ;;  %v2142_v58 = vmin.f32 %v2138_v37, %v2130_v53  ;;  %v2143_v45 = vmin.f32 %v2139_v11, %v2131_v56  ;;  %v2003_v37 = vrot.slane %v2002_v46, 2  ;;  %v8141_v11 = vld [vmem:[%s6602_s21 + $0x168] sm:$0xff] }
 0x324   : > { %v8122_v22 = vpop.permute.xlu1 %3166  ;;  %v2112_v7 = vpop.permute.xlu0 %2111  ;;  %v2144_v60 = vmin.f32 %v2140_v14, %v2132_v9 }
 0x325   : > { %v2133_v2 = vadd.f32 %v8120_v44, %v2112_v7  ;;  %v2146_v21 = vmin.f32 %v2142_v58, %v2134_v15  ;;  %v2004_v35 = vmin.f32 %v2002_v46, %v2003_v37  ;;  %v8152_v7 = vld [vmem:[%s6602_s21 + $0x178] sm:$0xff]  ;;  %v6041_v58 = vld [vmem:[%s6604_s28 + $0x30] sm:$0xff]  ;;  %v9954_v37 = vld [vmem:[#allocation21_spill] sm:$0xff] }
 0x326   : > { %2418 = vperm.xlu0 %6026, %v2324_v8   ;;  %v2147_v55 = vmin.f32 %v2143_v45, %v2144_v60  ;;  %v9952_v45 = vld [vmem:[#allocation22_spill] sm:$0xff]  ;;  %v3179_v60 = vadd.f32 %v7936_v36, %v7696_v59  ;;  %v9957_v36 = vld [vmem:[#allocation108_spill] sm:$0xff] }
 0x327   : > { %v2145_v51 = vmin.f32 %v2141_v63, %v2133_v2  ;;  %3750 = vperm.xlu1 %6021, %v8125_v38   ;;  %v3185_v2 = vadd.f32 %v6041_v58, %v9952_v45  ;;  %v2005_v46 = vrot.slane %v2004_v35, 1  ;;  %v8167_v45 = vld [vmem:[%s6602_s21 + $0x188] sm:$0xff] }
 0x328   : > { %v3177_v24 = vpop.permute.xlu1 %3176  ;;  %v8129_v42 = vpop.permute.xlu0 %4314 }
 0x329   : > { %9949 = vst [vmem:[#allocation9_spill] sm:$0xff] %v8129_v42  ;;  %v2148_v62 = vmin.f32 %v2145_v51, %v2146_v21  ;;  %v9953_v21 = vld [vmem:[#allocation105_spill] sm:$0xff]  ;;  %v9956_v42 = vld [vmem:[#allocation104_spill] sm:$0xff] }
 0x32a   : > { %4611 = vperm.xlu0 %6026, %v7986_v50   ;;  %v3182_v59 = vadd.f32 %v7983_v43, %v9956_v42 }
 0x32b   : > { %v2149_v57 = vmin.f32 %v2147_v55, %v2148_v62  ;;  %3760 = vperm.xlu1 %6021, %v8132_v4   ;;  %v3181_v55 = vadd.f32 %v7944_v41, %v2480_v39  ;;  %v3186_v41 = vadd.f32 %v8034_v20, %v9953_v21  ;;  %v6042_v62 = vld [vmem:[%s6604_s28 + $0x20] sm:$0xff]  ;;  %v9958_v20 = vld [vmem:[#allocation107_spill] sm:$0xff]  ;;  %v6043_v21 = vld [vmem:[%s6604_s28 + $0x8] sm:$0xff] }
 0x32c   : > { %v8136_v9 = vpop.permute.xlu1 %3255  ;;  %v8138_v63 = vpop.permute.xlu0 %4329 }
 0x32d   : > { %9950 = vst [vmem:[#allocation71_spill] sm:$0xff] %v8138_v63  ;;  %v2150_v53 = vrot.slane %v2149_v57, 4  ;;  %v3184_v63 = vadd.f32 %v8019_v0, %v9957_v36  ;;  %v3198_v43 = vmin.f32 %v3182_v59, %v3186_v41  ;;  %v3188_v0 = vadd.f32 %v8056_v29, %v7715_v5  ;;  %v6045_v36 = vld [vmem:[%s6604_s28 + $0x40] sm:$0xff]  ;;  %v9964_v29 = vld [vmem:[#allocation26_spill] sm:$0xff] }
 0x32e   : > { %4626 = vperm.xlu0 %6026, %v8037_v1   ;;  %v2157_v1 = vld [vmem:[#allocation2 + $0x4] sm:$0x1]  ;;  %v3192_v5 = vadd.f32 %v8122_v22, %v7730_v17  ;;  %v6047_v17 = vld [vmem:[%s6604_s28 + $0x60] sm:$0xff] }
 0x32f   : > { %v2151_v56 = vmin.f32 %v2149_v57, %v2150_v53  ;;  %3770 = vperm.xlu1 %6021, %v8141_v11   ;;  %v3183_v57 = vadd.f32 %v6042_v62, %v9954_v37  ;;  %v3197_v53 = vmin.f32 %v3181_v55, %v3185_v2  ;;  %v6044_v55 = vld [vmem:[%s6604_s28 + $0x50] sm:$0xff]  ;;  %v9960_v2 = vld [vmem:[#allocation24_spill] sm:$0xff]  ;;  %v9967_v22 = vld [vmem:[#allocation25_spill] sm:$0xff] }
 0x330   : > { %v8147_v15 = vpop.permute.xlu1 %3265  ;;  %v8149_v8 = vpop.permute.xlu0 %4339  ;;  %v3189_v37 = vadd.f32 %v6044_v55, %v9960_v2 }
 0x331   : > { %9951 = vst [vmem:[#allocation73_spill] sm:$0xff] %v8149_v8  ;;  %v2152_v14 = vrot.slane %v2151_v56, 2  ;;  %v9959_v8 = vld [vmem:[#allocation20_spill] sm:$0xff] }
 0x332   : > { %4636 = vperm.xlu0 %6026, %v8059_v16   ;;  %v3180_v62 = vadd.f32 %v6043_v21, %v9959_v8  ;;  %v3195_v16 = vmin.f32 %v3179_v60, %v3183_v57  ;;  %v9961_v8 = vld [vmem:[#allocation23_spill] sm:$0xff]  ;;  %v3201_v21 = vmin.f32 %v3197_v53, %v3189_v37 }
 0x333   : > { %v2153_v51 = vmin.f32 %v2151_v56, %v2152_v14  ;;  %3780 = vperm.xlu1 %6021, %v8152_v7   ;;  %v3190_v56 = vadd.f32 %v8097_v32, %v9958_v20  ;;  %v3194_v32 = vadd.f32 %v3177_v24, %v7718_v61  ;;  %v3187_v20 = vadd.f32 %v6045_v36, %v9961_v8  ;;  %v6046_v24 = vld [vmem:[%s6604_s28 + $0x70] sm:$0xff]  ;;  %v6048_v8 = vld [vmem:[%s6604_s28 + $0xa0] sm:$0xff] }
 0x334   : > { %v3276_v39 = vpop.permute.xlu1 %3275  ;;  %v8164_v58 = vpop.permute.xlu0 %4349  ;;  %v3196_v60 = vmin.f32 %v3180_v62, %v3184_v63  ;;  %v8200_v63 = vld [vmem:[%s6602_s21 + $0x1a8] sm:$0xff] }
 0x335   : > { %9955 = vst [vmem:[#allocation22_spill] sm:$0xff] %v8164_v58  ;;  %v2154_v14 = vrot.slane %v2153_v51, 1  ;;  %v2006_v58 = vmin.f32 %v2004_v35, %v2005_v46  ;;  %v8189_v46 = vld [vmem:[%s6602_s21 + $0x198] sm:$0xff]  ;;  %v3202_v41 = vmin.f32 %v3198_v43, %v3190_v56  ;;  %v3199_v57 = vmin.f32 %v3195_v16, %v3187_v20  ;;  %9966 = vst [vmem:[#allocation108_spill] sm:$0xff] %v8200_v63  ;;  %v9970_v20 = vld [vmem:[#allocation29_spill] sm:$0xff] }
 0x336   : > { %4646 = vperm.xlu0 %6026, %v8100_v23   ;;  %9963 = vst [vmem:[#allocation21_spill] sm:$0xff] %v8189_v46  ;;  %v3200_v53 = vmin.f32 %v3196_v60, %v3188_v0  ;;  %v3333_v36 = vadd.f32 %v3276_v39, %v7746_v31  ;;  %v6049_v60 = vld [vmem:[%s6604_s28 + $0xb0] sm:$0xff]  ;;  %v6050_v31 = vld [vmem:[%s6604_s28 + $0x80] sm:$0xff] }
 0x337   : > { %v2155_v42 = vmin.f32 %v2153_v51, %v2154_v14  ;;  %3859 = vperm.xlu1 %6021, %v8167_v45   ;;  %v3193_v51 = vadd.f32 %v6046_v24, %v9964_v29  ;;  %v3206_v14 = vmin.f32 %v3202_v41, %v3194_v32  ;;  %v9971_v41 = vld [vmem:[#allocation30_spill] sm:$0xff]  ;;  %v3329_v24 = vadd.f32 %v8136_v9, %v7743_v19  ;;  %v9972_v39 = vld [vmem:[#allocation27_spill] sm:$0xff] }
 0x338   : > { %v3286_v55 = vpop.permute.xlu1 %3285  ;;  %v8186_v35 = vpop.permute.xlu0 %4359  ;;  %v3204_v56 = vmin.f32 %v3200_v53, %v3192_v5  ;;  %v3334_v5 = vadd.f32 %v6049_v60, %v9971_v41  ;;  %v6051_v53 = vld [vmem:[%s6604_s28 + $0x90] sm:$0xff]  ;;  %v9978_v60 = vld [vmem:[#allocation33_spill] sm:$0xff] }
 0x339   : > { %9962 = vst [vmem:[#allocation105_spill] sm:$0xff] %v8186_v35  ;;  %v2156_v61 = vmin.f32 %v2006_v58, %v2155_v42  ;;  %v3191_v58 = vadd.f32 %v6047_v17, %v9967_v22  ;;  %v3205_v62 = vmin.f32 %v3201_v21, %v3193_v51  ;;  %v8209_v42 = vld [vmem:[%s6602_s21 + $0x1b8] sm:$0xff]  ;;  %v3332_v21 = vadd.f32 %v6048_v8, %v9970_v20  ;;  %v6052_v17 = vld [vmem:[%s6604_s28 + $0xc0] sm:$0xff]  ;;  %v9974_v22 = vld [vmem:[#allocation31_spill] sm:$0xff] }
 0x33a   : > { %4656 = vperm.xlu0 %6026, %v8125_v38   ;;  %9969 = vst [vmem:[#allocation20_spill] sm:$0xff] %v8209_v42  ;;  %v3335_v29 = vadd.f32 %v3286_v55, %v7758_v27  ;;  %v3331_v55 = vadd.f32 %v8147_v15, %v7755_v26  ;;  %v6054_v20 = vld [vmem:[%s6604_s28 + $0xe0] sm:$0xff] }
 0x33b   : > { %v2158_v59 = vmin.f32 %v2157_v1, %v2156_v61  ;;  %3869 = vperm.xlu1 %6021, %v8189_v46   ;;  %v3203_v1 = vmin.f32 %v3199_v57, %v3191_v58  ;;  %v3208_v16 = vmin.f32 %v3205_v62, %v3206_v14  ;;  %v3328_v57 = vadd.f32 %v6050_v31, %v9972_v39  ;;  %v9975_v62 = vld [vmem:[#allocation32_spill] sm:$0xff]  ;;  %v6055_v31 = vld [vmem:[%s6604_s28 + $0xf0] sm:$0xff]  ;;  %v9979_v39 = vld [vmem:[#allocation34_spill] sm:$0xff] }
 0x33c   : > { %v3296_v2 = vpop.permute.xlu1 %3295  ;;  %v8197_v37 = vpop.permute.xlu0 %4369  ;;  %v3336_v58 = vadd.f32 %v6052_v17, %v9974_v22  ;;  %v3340_v41 = vadd.f32 %v6054_v20, %v9978_v60  ;;  %v3347_v17 = vmin.f32 %v3331_v55, %v3335_v29  ;;  %v9999_v35 = vld [vmem:[#allocation13_spill] sm:$0xff] }
 0x33d   : > { %9965 = vst [vmem:[#allocation104_spill] sm:$0xff] %v8197_v37  ;;  %2159 = vst [vmem:[#allocation2 + $0x4] sm:$0x1] %v2158_v59  ;;  %v3207_v32 = vmin.f32 %v3203_v1, %v3204_v56  ;;  %v3337_v51 = vadd.f32 %v3296_v2, %v7763_v3  ;;  %v9973_v59 = vld [vmem:[#allocation28_spill] sm:$0xff]  ;;  %v6053_v56 = vld [vmem:[%s6604_s28 + $0xd0] sm:$0xff]  ;;  %v3345_v2 = vmin.f32 %v3329_v24, %v3333_v36 }
 0x33e   : > { %4666 = vperm.xlu0 %6026, %v8132_v4   ;;  %v3330_v14 = vadd.f32 %v6051_v53, %v9973_v59  ;;  %v3338_v19 = vadd.f32 %v6053_v56, %v9975_v62  ;;  %v8233_v3 = vld [vmem:[%s6602_s21 + $0x1c8] sm:$0xff]  ;;  %v3342_v53 = vadd.f32 %v6055_v31, %v9979_v39 }
 0x33f   : > { %3879 = vperm.xlu1 %6021, %v8200_v63   ;;  %v3209_v61 = vmin.f32 %v3207_v32, %v3208_v16  ;;  %9977 = vst [vmem:[#allocation23_spill] sm:$0xff] %v8233_v3  ;;  %v3344_v32 = vmin.f32 %v3328_v57, %v3332_v21  ;;  %v3349_v22 = vmin.f32 %v3345_v2, %v3337_v51 }
 0x340   : > { %v3306_v43 = vpop.permute.xlu1 %3305  ;;  %v8206_v0 = vpop.permute.xlu0 %4379  ;;  %v3346_v8 = vmin.f32 %v3330_v14, %v3334_v5 }
 0x341   : > { %9968 = vst [vmem:[#allocation107_spill] sm:$0xff] %v8206_v0  ;;  %v3339_v1 = vadd.f32 %v3306_v43, %v7772_v10  ;;  %v3210_v59 = vrot.slane %v3209_v61, 4  ;;  %v3348_v26 = vmin.f32 %v3344_v32, %v3336_v58  ;;  %v8256_v58 = vld [vmem:[%s6602_s21 + $0x1e8] sm:$0xff] }
 0x342   : > { %4676 = vperm.xlu0 %6026, %v8141_v11   ;;  %v3350_v43 = vmin.f32 %v3346_v8, %v3338_v19  ;;  %9983 = vst [vmem:[#allocation30_spill] sm:$0xff] %v8256_v58 }
 0x343   : > { %3889 = vperm.xlu1 %6021, %v8209_v42   ;;  %v3351_v36 = vmin.f32 %v3347_v17, %v3339_v1  ;;  %v3352_v24 = vmin.f32 %v3348_v26, %v3340_v41  ;;  %v3211_v51 = vmin.f32 %v3209_v61, %v3210_v59  ;;  %v8265_v61 = vld [vmem:[%s6602_s21 + $0x1f8] sm:$0xff]  ;;  %v8274_v41 = vld [vmem:[%s6602_s21 + $0x108] sm:$0xff]  ;;  %v8282_v26 = vld [vmem:[%s6602_s21 + $0x110] sm:$0xff] }
 0x344   : > { %v3316_v9 = vpop.permute.xlu1 %3315  ;;  %v8230_v27 = vpop.permute.xlu0 %4458  ;;  %v3354_v29 = vmin.f32 %v3350_v43, %v3342_v53  ;;  %9985 = vst [vmem:[#allocation28_spill] sm:$0xff] %v8265_v61  ;;  %v9987_v53 = vmov 3   ;;  %9989 = vst [vmem:[#allocation33_spill] sm:$0xff] %v8282_v26 }
 0x345   : > { %9976 = vst [vmem:[#allocation24_spill] sm:$0xff] %v8230_v27  ;;  %v3341_v16 = vadd.f32 %v3316_v9, %v7782_v6  ;;  %v8248_v6 = vld [vmem:[%s6602_s21 + $0x1d8] sm:$0xff] }
 0x346   : > { %4686 = vperm.xlu0 %6026, %v8152_v7   ;;  %9981 = vst [vmem:[#allocation25_spill] sm:$0xff] %v8248_v6 }
 0x347   : > { %3899 = vperm.xlu1 %6021, %v8233_v3   ;;  %v3353_v21 = vmin.f32 %v3349_v22, %v3341_v16 }
 0x348   : > { %v3326_v10 = vpop.permute.xlu1 %3325  ;;  %v8245_v15 = vpop.permute.xlu0 %4468 }
 0x349   : > { %9980 = vst [vmem:[#allocation26_spill] sm:$0xff] %v8245_v15  ;;  %v3343_v5 = vadd.f32 %v3326_v10, %v7799_v47  ;;  %v3356_v56 = vmin.f32 %v3352_v24, %v3353_v21  ;;  %v3212_v47 = vrot.slane %v3211_v51, 2  ;;  %v2470_v15 = vld [vmem:[%s6602_s21 + $0x40] sm:$0xff] }
 0x34a   : > { %4765 = vperm.xlu0 %6026, %v8167_v45  }
 0x34b   : > { %v3355_v57 = vmin.f32 %v3351_v36, %v3343_v5  ;;  %3909 = vperm.xlu1 %6021, %v8248_v6   ;;  %v3213_v16 = vmin.f32 %v3211_v51, %v3212_v47  ;;  %v3366_v36 = vld [vmem:[#allocation2 + $0x8] sm:$0x1] }
 0x34c   : > { %v8253_v14 = vpop.permute.xlu0 %4478 }
 0x34d   : > { %9982 = vst [vmem:[#allocation29_spill] sm:$0xff] %v8253_v14  ;;  %v3357_v62 = vmin.f32 %v3354_v29, %v3355_v57  ;;  %v8258_v19 = vpop.permute.xlu1 %3408  ;;  %v3214_v31 = vrot.slane %v3213_v16, 1  ;;  %v8289_v29 = vld [vmem:[%s6602_s21 + $0x120] sm:$0xff] }
 0x34e   : > { %4775 = vperm.xlu0 %6026, %v8189_v46  }
 0x34f   : > { %v3358_v9 = vmin.f32 %v3356_v56, %v3357_v62  ;;  %3919 = vperm.xlu1 %6021, %v8256_v58   ;;  %v3215_v10 = vmin.f32 %v3213_v16, %v3214_v31  ;;  %v8296_v62 = vld [vmem:[%s6602_s21 + $0x130] sm:$0xff]  ;;  %v2463_v16 = vld [vmem:[%s6602_s21 + $0x8] sm:$0xff] }
 0x350   : > { %v8262_v55 = vpop.permute.xlu0 %4488  ;;  %v8311_v31 = vld [vmem:[%s6602_s21 + $0x150] sm:$0xff] }
 0x351   : > { %9984 = vst [vmem:[#allocation27_spill] sm:$0xff] %v8262_v55  ;;  %v3359_v2 = vrot.slane %v3358_v9, 4  ;;  %v8267_v1 = vpop.permute.xlu1 %3413  ;;  %v9994_v55 = vld [vmem:[#allocation14_spill] sm:$0xff] }
 0x352   : > { %4785 = vperm.xlu0 %6026, %v8200_v63   ;;  %v3486_v14 = vadd.f32 %v9994_v55, %v7956_v54  ;;  %v9998_v54 = vld [vmem:[#allocation18_spill] sm:$0xff] }
 0x353   : > { %v3360_v32 = vmin.f32 %v3358_v9, %v3359_v2  ;;  %3929 = vperm.xlu1 %6021, %v8265_v61   ;;  %v8303_v2 = vld [vmem:[%s6602_s21 + $0x140] sm:$0xff]  ;;  %v3492_v55 = vadd.f32 %v9998_v54, %v7977_v25 }
 0x354   : > { %v8271_v8 = vpop.permute.xlu0 %4498 }
 0x355   : > { %9986 = vst [vmem:[#allocation31_spill] sm:$0xff] %v8271_v8  ;;  %v3361_v20 = vrot.slane %v3360_v32, 2  ;;  %v3424_v60 = vpop.permute.xlu1 %3423 }
 0x356   : > { %4795 = vperm.xlu0 %6026, %v8209_v42   ;;  %v3485_v37 = vadd.f32 %v3424_v60, %v7967_v28  ;;  %v8516_v42 = vld [vmem:[%s6604_s28 + $0x88] sm:$0xff] }
 0x357   : > { %v3362_v39 = vmin.f32 %v3360_v32, %v3361_v20  ;;  %6023 = vset.pattern.permute.xlu1 %v9987_v53  ;;  %v2466_v53 = vld [vmem:[%s6602_s21 + $0x20] sm:$0xff] }
 0x358   : > { %4012 = vperm.xlu1 %6023, %v8274_v41   ;;  %v8279_v59 = vpop.permute.xlu0 %4508 }
 0x359   : > { %9988 = vst [vmem:[#allocation32_spill] sm:$0xff] %v8279_v59  ;;  %v3363_v17 = vrot.slane %v3362_v39, 1  ;;  %v3434_v22 = vpop.permute.xlu1 %3433 }
 0x35a   : > { %4805 = vperm.xlu0 %6026, %v8233_v3   ;;  %v3487_v59 = vadd.f32 %v3434_v22, %v7949_v30  ;;  %v8351_v22 = vld [vmem:[%s6602_s21 + $0x180] sm:$0xff] }
 0x35b   : > { %v3364_v43 = vmin.f32 %v3362_v39, %v3363_v17  ;;  %v9992_v39 = vmov 6  }
 0x35c   : > { %4017 = vperm.xlu1 %6023, %v8282_v26   ;;  %v8286_v21 = vpop.permute.xlu0 %4518 }
 0x35d   : > { %9990 = vst [vmem:[#allocation34_spill] sm:$0xff] %v8286_v21  ;;  %v3365_v5 = vmin.f32 %v3215_v10, %v3364_v43  ;;  %v3444_v24 = vpop.permute.xlu1 %3443  ;;  %v8321_v43 = vld [vmem:[%s6602_s21 + $0x160] sm:$0xff]  ;;  %v3482_v21 = vadd.f32 %v8258_v19, %v7942_v49 }
 0x35e   : > { %4815 = vperm.xlu0 %6026, %v8248_v6   ;;  %v3489_v60 = vadd.f32 %v3444_v24, %v7995_v18  ;;  %v10030_v6 = vld [vmem:[#allocation64_spill] sm:$0xff] }
 0x35f   : > { %v3367_v51 = vmin.f32 %v3366_v36, %v3365_v5  ;;  %v2468_v36 = vld [vmem:[%s6602_s21 + $0x30] sm:$0xff] }
 0x360   : > { %4027 = vperm.xlu1 %6023, %v8289_v29   ;;  %v8293_v57 = vpop.permute.xlu0 %4528 }
 0x361   : > { %9991 = vst [vmem:[#allocation146_spill] sm:$0xff] %v8293_v57  ;;  %3368 = vst [vmem:[#allocation2 + $0x8] sm:$0x1] %v3367_v51  ;;  %v3454_v56 = vpop.permute.xlu1 %3453  ;;  %v8333_v57 = vld [vmem:[%s6604_s28 + $0x10] sm:$0xff] }
 0x362   : > { %4825 = vperm.xlu0 %6026, %v8256_v58   ;;  %v3483_v27 = vadd.f32 %v8267_v1, %v8333_v57  ;;  %v3491_v49 = vadd.f32 %v3454_v56, %v7970_v13  ;;  %v3498_v1 = vmin.f32 %v3482_v21, %v3486_v14  ;;  %v10001_v14 = vld [vmem:[#allocation66_spill] sm:$0xff]  ;;  %v10029_v58 = vld [vmem:[#allocation52_spill] sm:$0xff] }
 0x364   : > { %4037 = vperm.xlu1 %6023, %v8296_v62   ;;  %v3499_v28 = vmin.f32 %v3483_v27, %v3487_v59 }
 0x365   : > { %v3464_v47 = vpop.permute.xlu1 %3463  ;;  %v8300_v9 = vpop.permute.xlu0 %2194 }
 0x366   : > { %4835 = vperm.xlu0 %6026, %v8265_v61   ;;  %v3493_v27 = vadd.f32 %v3464_v47, %v10001_v14  ;;  %v10011_v14 = vld [vmem:[#allocation54_spill] sm:$0xff] }
 0x368   : > { %4047 = vperm.xlu1 %6023, %v8303_v2  }
 0x369   : > { %v3474_v32 = vpop.permute.xlu1 %3473  ;;  %v8308_v20 = vpop.permute.xlu0 %2209 }
 0x36a   : > { %6028 = vset.pattern.permute.xlu0 %v9992_v39  ;;  %v3495_v13 = vadd.f32 %v3474_v32, %v7998_v40  ;;  %v3490_v39 = vadd.f32 %v9999_v35, %v8001_v34  ;;  %v8371_v40 = vld [vmem:[%s6602_s21 + $0x190] sm:$0xff] }
 0x36b   : > { %2501 = vperm.xlu0 %6028, %v2463_v16   ;;  %v8330_v16 = vld [vmem:[%s6602_s21 + $0x170] sm:$0xff]  ;;  %10002 = vst [vmem:[#allocation14_spill] sm:$0xff] %v8371_v40 }
 0x36c   : > { %4057 = vperm.xlu1 %6023, %v8311_v31  }
 0x36d   : > { %v8316_v17 = vpop.permute.xlu1 %3552  ;;  %v8318_v10 = vpop.permute.xlu0 %2219 }
 0x36f   : > { %2516 = vperm.xlu0 %6028, %v2466_v53   ;;  %v9993_v53 = vld [vmem:[#allocation15_spill] sm:$0xff] }
 0x370   : > { %4067 = vperm.xlu1 %6023, %v8321_v43   ;;  %v3488_v8 = vadd.f32 %v9993_v53, %v7959_v52  ;;  %9995 = vst [vmem:[#allocation15_spill] sm:$0xff] %v8351_v22  ;;  %v9996_v52 = vld [vmem:[#allocation10_spill] sm:$0xff]  ;;  %v9997_v53 = vld [vmem:[#allocation11_spill] sm:$0xff] }
 0x371   : > { %v8325_v5 = vpop.permute.xlu1 %3562  ;;  %v8327_v51 = vpop.permute.xlu0 %2229  ;;  %v3484_v0 = vadd.f32 %v9997_v53, %v7974_v33  ;;  %v10000_v33 = vld [vmem:[#allocation19_spill] sm:$0xff]  ;;  %v3503_v53 = vmin.f32 %v3499_v28, %v3491_v49  ;;  %v10007_v28 = vld [vmem:[#allocation58_spill] sm:$0xff] }
 0x373   : > { %2526 = vperm.xlu0 %6028, %v2468_v36   ;;  %v3481_v36 = vadd.f32 %v9996_v52, %v7953_v48  ;;  %v3500_v56 = vmin.f32 %v3484_v0, %v3488_v8  ;;  %v2472_v48 = vld [vmem:[%s6602_s21 + $0x50] sm:$0xff]  ;;  %v3496_v52 = vadd.f32 %v10000_v33, %v8007_v12  ;;  %v3507_v35 = vmin.f32 %v3503_v53, %v3495_v13  ;;  %v2474_v8 = vld [vmem:[%s6602_s21 + $0x60] sm:$0xff]  ;;  %v10010_v53 = vld [vmem:[#allocation142_spill] sm:$0xff] }
 0x374   : > { %4077 = vperm.xlu1 %6023, %v8330_v16   ;;  %v10003_v12 = vld [vmem:[#allocation67_spill] sm:$0xff] }
 0x375   : > { %v3573_v19 = vpop.permute.xlu1 %3572  ;;  %v8348_v30 = vpop.permute.xlu0 %2239  ;;  %v3497_v25 = vmin.f32 %v3481_v36, %v3485_v37  ;;  %v3504_v0 = vmin.f32 %v3500_v56, %v3492_v55  ;;  %v10004_v37 = vld [vmem:[#allocation16_spill] sm:$0xff]  ;;  %v8380_v36 = vld [vmem:[%s6602_s21 + $0x1a0] sm:$0xff]  ;;  %v2476_v55 = vld [vmem:[%s6602_s21 + $0x70] sm:$0xff]  ;;  %10041 = vst [vmem:[#allocation67_spill] sm:$0xff] %v8516_v42 }
 0x376   : > { %v3494_v21 = vadd.f32 %v10004_v37, %v10003_v12  ;;  %10005 = vst [vmem:[#allocation10_spill] sm:$0xff] %v8380_v36  ;;  %v8389_v33 = vld [vmem:[%s6602_s21 + $0x1b0] sm:$0xff]  ;;  %v10015_v37 = vld [vmem:[#allocation68_spill] sm:$0xff] }
 0x377   : > { %2536 = vperm.xlu0 %6028, %v2470_v15   ;;  %v3502_v15 = vmin.f32 %v3498_v1, %v3490_v39  ;;  %v3501_v34 = vmin.f32 %v3497_v25, %v3489_v60  ;;  %v3508_v24 = vmin.f32 %v3504_v0, %v3496_v52  ;;  %v10006_v1 = vld [vmem:[#allocation141_spill] sm:$0xff]  ;;  %10008 = vst [vmem:[#allocation11_spill] sm:$0xff] %v8389_v33  ;;  %v10009_v52 = vld [vmem:[#allocation44_spill] sm:$0xff]  ;;  %v10012_v0 = vld [vmem:[#allocation143_spill] sm:$0xff] }
 0x378   : > { %4156 = vperm.xlu1 %6023, %v8351_v22   ;;  %v3635_v60 = vadd.f32 %v10007_v28, %v10006_v1  ;;  %v3634_v25 = vadd.f32 %v3573_v19, %v10009_v52  ;;  %v10017_v19 = vld [vmem:[#allocation144_spill] sm:$0xff] }
 0x379   : > { %v3583_v18 = vpop.permute.xlu1 %3582  ;;  %v8368_v59 = vpop.permute.xlu0 %2249  ;;  %v3505_v47 = vmin.f32 %v3501_v34, %v3493_v27  ;;  %v3506_v54 = vmin.f32 %v3502_v15, %v3494_v21  ;;  %v3510_v39 = vmin.f32 %v3507_v35, %v3508_v24  ;;  %v3631_v27 = vadd.f32 %v10011_v14, %v10010_v53  ;;  %v10013_v15 = vld [vmem:[#allocation60_spill] sm:$0xff]  ;;  %v10019_v53 = vld [vmem:[#allocation145_spill] sm:$0xff] }
 0x37a   : > { %v3637_v34 = vadd.f32 %v10013_v15, %v10012_v0  ;;  %v3636_v21 = vadd.f32 %v3583_v18, %v10015_v37  ;;  %v10016_v24 = vld [vmem:[#allocation12_spill] sm:$0xff]  ;;  %v10020_v14 = vld [vmem:[#allocation61_spill] sm:$0xff]  ;;  %v10021_v15 = vld [vmem:[#allocation46_spill] sm:$0xff] }
 0x37b   : > { %2546 = vperm.xlu0 %6028, %v2472_v48   ;;  %v3509_v13 = vmin.f32 %v3505_v47, %v3506_v54  ;;  %v2611_v54 = vld [vmem:[%s6602_s21 + $0x80] sm:$0xff]  ;;  %v10018_v1 = vld [vmem:[#allocation56_spill] sm:$0xff]  ;;  %v3647_v52 = vmin.f32 %v3631_v27, %v3635_v60  ;;  %v3639_v0 = vadd.f32 %v10020_v14, %v10019_v53 }
 0x37c   : > { %4166 = vperm.xlu1 %6023, %v8371_v40   ;;  %v3633_v28 = vadd.f32 %v10018_v1, %v10017_v19  ;;  %v10024_v37 = vld [vmem:[#allocation69_spill] sm:$0xff]  ;;  %v10026_v1 = vld [vmem:[#allocation39_spill] sm:$0xff] }
 0x37d   : > { %v3593_v32 = vpop.permute.xlu1 %3592  ;;  %v8377_v49 = vpop.permute.xlu0 %2259  ;;  %v3511_v35 = vmin.f32 %v3509_v13, %v3510_v39  ;;  %v10022_v39 = vld [vmem:[#allocation62_spill] sm:$0xff]  ;;  %v8409_v13 = vld [vmem:[%s6604_s28 + $0x18] sm:$0xff]  ;;  %v3632_v60 = vadd.f32 %v8325_v5, %v10024_v37 }
 0x37e   : > { %v3638_v47 = vadd.f32 %v3593_v32, %v10016_v24  ;;  %v10025_v24 = vld [vmem:[#allocation37_spill] sm:$0xff]  ;;  %v3649_v14 = vmin.f32 %v3633_v28, %v3637_v34  ;;  %v2275_v5 = vadd.f32 %v8308_v20, %v8409_v13  ;;  %v3651_v28 = vmin.f32 %v3647_v52, %v3639_v0 }
 0x37f   : > { %2556 = vperm.xlu0 %6028, %v2474_v8   ;;  %v10014_v8 = vld [vmem:[#allocation47_spill] sm:$0xff]  ;;  %v3512_v3 = vrot.slane %v3511_v35, 4 }
 0x380   : > { %4176 = vperm.xlu1 %6023, %v8380_v36   ;;  %v3630_v12 = vadd.f32 %v8316_v17, %v10014_v8  ;;  %v8412_v17 = vld [vmem:[%s6604_s28 + $0x38] sm:$0xff]  ;;  %v8417_v8 = vld [vmem:[%s6602_s21 + $0x1c0] sm:$0xff] }
 0x381   : > { %v3603_v56 = vpop.permute.xlu1 %3602  ;;  %v8386_v48 = vpop.permute.xlu0 %2269  ;;  %10023 = vst [vmem:[#allocation18_spill] sm:$0xff] %v8417_v8  ;;  %v8428_v36 = vld [vmem:[%s6604_s28] sm:$0xff]  ;;  %v3513_v0 = vmin.f32 %v3511_v35, %v3512_v3 }
 0x382   : > { %v3646_v27 = vmin.f32 %v3630_v12, %v3634_v25  ;;  %v3640_v19 = vadd.f32 %v3603_v56, %v10025_v24  ;;  %v2279_v56 = vadd.f32 %v8327_v51, %v8412_v17  ;;  %v3648_v25 = vmin.f32 %v3632_v60, %v3636_v21  ;;  %v2613_v12 = vld [vmem:[%s6602_s21 + $0x90] sm:$0xff]  ;;  %v8448_v60 = vld [vmem:[%s6604_s28 + $0x28] sm:$0xff]  ;;  %v10033_v35 = vld [vmem:[#allocation81_spill] sm:$0xff] }
 0x383   : > { %2566 = vperm.xlu0 %6028, %v2476_v55   ;;  %v3641_v55 = vadd.f32 %v10022_v39, %v10021_v15  ;;  %v10027_v15 = vld [vmem:[#allocation35_spill] sm:$0xff]  ;;  %v2272_v52 = vadd.f32 %v8300_v9, %v8428_v36 }
 0x384   : > { %4186 = vperm.xlu1 %6023, %v8389_v33   ;;  %v10028_v39 = vld [vmem:[#allocation63_spill] sm:$0xff]  ;;  %v3645_v33 = vadd.f32 %v10030_v6, %v10029_v58  ;;  %v3650_v34 = vmin.f32 %v3646_v27, %v3638_v47  ;;  %v3652_v37 = vmin.f32 %v3648_v25, %v3640_v19  ;;  %v2291_v24 = vmin.f32 %v2275_v5, %v2279_v56 }
 0x385   : > { %v3613_v18 = vpop.permute.xlu1 %3612  ;;  %v8414_v32 = vpop.permute.xlu0 %2348  ;;  %v3643_v61 = vadd.f32 %v10028_v39, %v10027_v15  ;;  %v3653_v20 = vmin.f32 %v3649_v14, %v3641_v55  ;;  %v8460_v9 = vld [vmem:[%s6604_s28 + $0x30] sm:$0xff]  ;;  %v8471_v15 = vld [vmem:[%s6602_s21 + $0x1e0] sm:$0xff]  ;;  %v8474_v39 = vld [vmem:[%s6604_s28 + $0x8] sm:$0xff]  ;;  %v2277_v25 = vadd.f32 %v8318_v10, %v8448_v60 }
 0x386   : > { %v3642_v53 = vadd.f32 %v3613_v18, %v10026_v1  ;;  %v8437_v18 = vld [vmem:[%s6604_s28 + $0x58] sm:$0xff]  ;;  %v10032_v1 = vld [vmem:[#allocation79_spill] sm:$0xff]  ;;  %10034 = vst [vmem:[#allocation19_spill] sm:$0xff] %v8471_v15 }
 0x387   : > { %2645 = vperm.xlu0 %6028, %v2611_v54   ;;  %v8442_v54 = vld [vmem:[%s6602_s21 + $0x1d0] sm:$0xff]  ;;  %v3655_v47 = vmin.f32 %v3651_v28, %v3643_v61  ;;  %v3657_v27 = vmin.f32 %v3653_v20, %v3645_v33  ;;  %v2283_v55 = vadd.f32 %v8368_v59, %v8437_v18  ;;  %v8455_v61 = vld [vmem:[%s6604_s28 + $0x20] sm:$0xff]  ;;  %v2278_v33 = vadd.f32 %v8460_v9, %v10033_v35  ;;  %v8468_v59 = vld [vmem:[%s6604_s28 + $0x78] sm:$0xff] }
 0x388   : > { %4196 = vperm.xlu1 %6023, %v8417_v8   ;;  %10031 = vst [vmem:[#allocation13_spill] sm:$0xff] %v8442_v54  ;;  %v3654_v51 = vmin.f32 %v3650_v34, %v3642_v53  ;;  %v2276_v3 = vadd.f32 %v8455_v61, %v10032_v1  ;;  %v8465_v53 = vld [vmem:[%s6604_s28 + $0x48] sm:$0xff]  ;;  %v10035_v5 = vld [vmem:[#allocation75_spill] sm:$0xff]  ;;  %v10036_v20 = vld [vmem:[#allocation77_spill] sm:$0xff] }
 0x389   : > { %v3623_v6 = vpop.permute.xlu1 %3622  ;;  %v8439_v58 = vpop.permute.xlu0 %2358  ;;  %v2273_v56 = vadd.f32 %v8474_v39, %v10035_v5  ;;  %v10037_v1 = vld [vmem:[#allocation85_spill] sm:$0xff]  ;;  %v3514_v5 = vrot.slane %v3513_v0, 2  ;;  %v8490_v8 = vld [vmem:[%s6604_s28 + $0x68] sm:$0xff]  ;;  %v2281_v10 = vadd.f32 %v8348_v30, %v8465_v53 }
 0x38a   : > { %v3644_v21 = vadd.f32 %v3623_v6, %v8120_v44  ;;  %v2615_v44 = vld [vmem:[%s6602_s21 + $0xa0] sm:$0xff]  ;;  %v3658_v34 = vmin.f32 %v3654_v51, %v3655_v47  ;;  %v6059_v6 = vld [vmem:[%s6604_s28 + $0x10] sm:$0xff]  ;;  %v2295_v51 = vmin.f32 %v2291_v24, %v2283_v55  ;;  %v2287_v47 = vadd.f32 %v8386_v48, %v8468_v59 }
 0x38b   : > { %2655 = vperm.xlu0 %6028, %v2613_v12   ;;  %v8509_v48 = vld [vmem:[%s6602_s21 + $0x1f0] sm:$0xff]  ;;  %v2289_v55 = vmin.f32 %v2273_v56, %v2277_v25  ;;  %v8524_v56 = vld [vmem:[%s6604_s28 + $0x60] sm:$0xff] }
 0x38c   : > { %v3656_v19 = vmin.f32 %v3652_v37, %v3644_v21  ;;  %4206 = vperm.xlu1 %6023, %v8442_v54   ;;  %v2274_v37 = vadd.f32 %v6059_v6, %v10036_v20  ;;  %v8485_v21 = vld [vmem:[%s6604_s28 + $0x50] sm:$0xff]  ;;  %v2288_v54 = vmin.f32 %v2272_v52, %v2276_v3  ;;  %v8499_v52 = vld [vmem:[%s6604_s28 + $0x40] sm:$0xff]  ;;  %10040 = vst [vmem:[#allocation66_spill] sm:$0xff] %v8509_v48 }
 0x38d   : > { %v2369_v14 = vpop.permute.xlu0 %2368  ;;  %v2282_v35 = vadd.f32 %v8485_v21, %v10037_v1  ;;  %v10038_v3 = vld [vmem:[#allocation83_spill] sm:$0xff]  ;;  %v10039_v1 = vld [vmem:[#allocation89_spill] sm:$0xff]  ;;  %v2293_v40 = vmin.f32 %v2289_v55, %v2281_v10  ;;  %v2299_v63 = vmin.f32 %v2295_v51, %v2287_v47  ;;  %v2422_v10 = vadd.f32 %v8414_v32, %v8516_v42  ;;  %v8540_v55 = vld [vmem:[%s6604_s28 + $0xc8] sm:$0xff] }
 0x38e   : > { %v3659_v12 = vmin.f32 %v3656_v19, %v3657_v27  ;;  %v8480_v28 = vpop.permute.xlu1 %3705  ;;  %v2617_v19 = vld [vmem:[%s6602_s21 + $0xb0] sm:$0xff]  ;;  %v2290_v6 = vmin.f32 %v2274_v37, %v2278_v33  ;;  %v2280_v20 = vadd.f32 %v8499_v52, %v10038_v3  ;;  %10046 = vst [vmem:[#allocation44_spill] sm:$0xff] %v8540_v55  ;;  %v10047_v32 = vmov 4  }
 0x38f   : > { %2665 = vperm.xlu0 %6028, %v2615_v44   ;;  %v8504_v44 = vld [vmem:[%s6604_s28 + $0x70] sm:$0xff] }
 0x390   : > { %v3660_v27 = vmin.f32 %v3658_v34, %v3659_v12  ;;  %4216 = vperm.xlu1 %6023, %v8471_v15   ;;  %v2286_v30 = vadd.f32 %v8504_v44, %v10039_v1  ;;  %v2285_v34 = vadd.f32 %v8377_v49, %v8490_v8  ;;  %v2294_v37 = vmin.f32 %v2290_v6, %v2282_v35  ;;  %v8519_v1 = vld [vmem:[%s6604_s28 + $0xa8] sm:$0xff]  ;;  %v2619_v49 = vld [vmem:[%s6602_s21 + $0xc0] sm:$0xff]  ;;  %v10043_v25 = vld [vmem:[#allocation87_spill] sm:$0xff] }
 0x391   : > { %v2379_v24 = vpop.permute.xlu0 %2378  ;;  %v2292_v3 = vmin.f32 %v2288_v54, %v2280_v20  ;;  %v3515_v15 = vmin.f32 %v3513_v0, %v3514_v5  ;;  %10042 = vst [vmem:[#allocation16_spill] sm:$0xff] %v8519_v1  ;;  %v2284_v46 = vadd.f32 %v8524_v56, %v10043_v25  ;;  %v8529_v54 = vld [vmem:[%s6604_s28 + $0x98] sm:$0xff]  ;;  %v2426_v47 = vadd.f32 %v2369_v14, %v8519_v1  ;;  %v2621_v14 = vld [vmem:[%s6602_s21 + $0xd0] sm:$0xff] }
 0x392   : > { %v3661_v33 = vrot.slane %v3660_v27, 4  ;;  %v8513_v12 = vpop.permute.xlu1 %3715  ;;  %v2298_v35 = vmin.f32 %v2294_v37, %v2286_v30  ;;  %10044 = vst [vmem:[#allocation141_spill] sm:$0xff] %v8529_v54  ;;  %v8532_v0 = vld [vmem:[%s6604_s28 + $0xb8] sm:$0xff]  ;;  %v10050_v25 = vld [vmem:[#allocation95_spill] sm:$0xff] }
 0x393   : > { %2675 = vperm.xlu0 %6028, %v2617_v19   ;;  %10045 = vst [vmem:[#allocation58_spill] sm:$0xff] %v8532_v0  ;;  %v2297_v19 = vmin.f32 %v2293_v40, %v2285_v34  ;;  %v3516_v6 = vrot.slane %v3515_v15, 1  ;;  %v2296_v20 = vmin.f32 %v2292_v3, %v2284_v46  ;;  %v2424_v40 = vadd.f32 %v8439_v58, %v8529_v54  ;;  %v8549_v37 = vld [vmem:[%s6604_s28 + $0xd8] sm:$0xff]  ;;  %v2623_v54 = vld [vmem:[%s6602_s21 + $0xe0] sm:$0xff]  ;;  %v8575_v42 = vld [vmem:[%s6604_s28 + $0x90] sm:$0xff] }
 0x394   : > { %v3662_v22 = vmin.f32 %v3660_v27, %v3661_v33  ;;  %4226 = vperm.xlu1 %6023, %v8509_v48   ;;  %v2301_v30 = vmin.f32 %v2298_v35, %v2299_v63  ;;  %v2428_v34 = vadd.f32 %v2379_v24, %v8532_v0  ;;  %10048 = vst [vmem:[#allocation142_spill] sm:$0xff] %v8549_v37  ;;  %v8555_v24 = vld [vmem:[%s6604_s28 + $0xa0] sm:$0xff]  ;;  %v10055_v0 = vld [vmem:[#allocation91_spill] sm:$0xff]  ;;  %10056 = vst [vmem:[#allocation68_spill] sm:$0xff] %v8575_v42 }
 0x395   : > { %v2389_v5 = vpop.permute.xlu0 %2388  ;;  %v2300_v3 = vmin.f32 %v2296_v20, %v2297_v19  ;;  %v2438_v63 = vmin.f32 %v2422_v10, %v2426_v47  ;;  %10049 = vst [vmem:[#allocation54_spill] sm:$0xff] %v8555_v24  ;;  %v2425_v35 = vadd.f32 %v8555_v24, %v10050_v25  ;;  %v3517_v20 = vmin.f32 %v3515_v15, %v3516_v6  ;;  %v8565_v10 = vld [vmem:[%s6604_s28 + $0xe8] sm:$0xff]  ;;  %v8580_v6 = vld [vmem:[%s6604_s28 + $0xc0] sm:$0xff]  ;;  %v8602_v24 = vld [vmem:[%s6604_s28 + $0xf0] sm:$0xff] }
 0x396   : > { %v3663_v51 = vrot.slane %v3662_v22, 2  ;;  %v8537_v27 = vpop.permute.xlu1 %3720  ;;  %10053 = vst [vmem:[#allocation60_spill] sm:$0xff] %v8565_v10  ;;  %10058 = vst [vmem:[#allocation12_spill] sm:$0xff] %v8580_v6 }
 0x397   : > { %2685 = vperm.xlu0 %6028, %v2619_v49   ;;  %10064 = vst [vmem:[#allocation145_spill] sm:$0xff] %v8602_v24 }
 0x398   : > { %v3664_v33 = vmin.f32 %v3662_v22, %v3663_v51  ;;  %6025 = vset.pattern.permute.xlu1 %v10047_v32  ;;  %v2430_v22 = vadd.f32 %v2389_v5, %v8540_v55  ;;  %v10052_v51 = vld [vmem:[#allocation96_spill] sm:$0xff]  ;;  %v2302_v5 = vmin.f32 %v2300_v3, %v2301_v30  ;;  %v2440_v32 = vmin.f32 %v2424_v40, %v2428_v34  ;;  %v8570_v55 = vld [vmem:[%s6604_s28 + $0x80] sm:$0xff]  ;;  %v8586_v34 = vld [vmem:[%s6604_s28 + $0xd0] sm:$0xff] }
 0x399   : > { %4309 = vperm.xlu1 %6025, %v7986_v50   ;;  %v2399_v46 = vpop.permute.xlu0 %2398  ;;  %v8560_v50 = vld [vmem:[%s6604_s28 + $0xb0] sm:$0xff]  ;;  %10054 = vst [vmem:[#allocation47_spill] sm:$0xff] %v8570_v55  ;;  %v2421_v25 = vadd.f32 %v8570_v55, %v10055_v0  ;;  %10060 = vst [vmem:[#allocation144_spill] sm:$0xff] %v8586_v34  ;;  %v10061_v0 = vld [vmem:[#allocation98_spill] sm:$0xff] }
 0x39a   : > { %v3665_v49 = vrot.slane %v3664_v33, 1  ;;  %v8552_v58 = vpop.permute.xlu1 %3730  ;;  %10051 = vst [vmem:[#allocation143_spill] sm:$0xff] %v8560_v50  ;;  %v2427_v19 = vadd.f32 %v8560_v50, %v10052_v51  ;;  %v2432_v48 = vadd.f32 %v2399_v46, %v8549_v37  ;;  %v10057_v51 = vld [vmem:[#allocation93_spill] sm:$0xff]  ;;  %v2431_v46 = vadd.f32 %v8586_v34, %v10061_v0  ;;  %v8599_v50 = vld [vmem:[%s6604_s28 + $0xf8] sm:$0xff] }
 0x39b   : > { %2695 = vperm.xlu0 %6028, %v2621_v14   ;;  %v2423_v15 = vadd.f32 %v8575_v42, %v10057_v51  ;;  %v10059_v14 = vld [vmem:[#allocation97_spill] sm:$0xff]  ;;  %v2437_v42 = vmin.f32 %v2421_v25, %v2425_v35  ;;  %v10065_v0 = vld [vmem:[#allocation100_spill] sm:$0xff] }
 0x39c   : > { %v3666_v47 = vmin.f32 %v3664_v33, %v3665_v49  ;;  %v2429_v30 = vadd.f32 %v8580_v6, %v10059_v14  ;;  %v3668_v33 = vld [vmem:[#allocation2 + $0x9] sm:$0x1]  ;;  %v2442_v49 = vmin.f32 %v2438_v63, %v2430_v22  ;;  %v8594_v14 = vld [vmem:[%s6604_s28 + $0xe0] sm:$0xff]  ;;  %v10063_v6 = vld [vmem:[#allocation99_spill] sm:$0xff]  ;;  %v2303_v63 = vrot.slane %v2302_v5, 4 }
 0x39d   : > { %4319 = vperm.xlu1 %6025, %v8282_v26   ;;  %v2409_v40 = vpop.permute.xlu0 %2408  ;;  %v2439_v55 = vmin.f32 %v2423_v15, %v2427_v19  ;;  %10062 = vst [vmem:[#allocation56_spill] sm:$0xff] %v8594_v14  ;;  %v2433_v26 = vadd.f32 %v8594_v14, %v10063_v6 }
 0x39e   : > { %v3667_v3 = vmin.f32 %v3517_v20, %v3666_v47  ;;  %v2434_v51 = vadd.f32 %v2409_v40, %v8565_v10  ;;  %v8591_v37 = vpop.permute.xlu1 %3740  ;;  %v2435_v20 = vadd.f32 %v8602_v24, %v10065_v0  ;;  %v2444_v47 = vmin.f32 %v2440_v32, %v2432_v48  ;;  %v2625_v40 = vld [vmem:[%s6602_s21 + $0xf0] sm:$0xff]  ;;  %v10066_v10 = vld [vmem:[#allocation50_spill] sm:$0xff]  ;;  %v10067_v24 = vld [vmem:[#allocation36_spill] sm:$0xff] }
 0x39f   : > { %2705 = vperm.xlu0 %6028, %v2623_v54   ;;  %v2441_v19 = vmin.f32 %v2437_v42, %v2429_v30  ;;  %v2443_v25 = vmin.f32 %v2439_v55, %v2431_v46  ;;  %v2304_v1 = vmin.f32 %v2302_v5, %v2303_v63 }
 0x3a0   : > { %v3669_v22 = vmin.f32 %v3668_v33, %v3667_v3  ;;  %v2446_v15 = vmin.f32 %v2442_v49, %v2434_v51 }
 0x3a1   : > { %4324 = vperm.xlu1 %6025, %v10066_v10   ;;  %v2419_v35 = vpop.permute.xlu0 %2418  ;;  %v2445_v14 = vmin.f32 %v2441_v19, %v2433_v26  ;;  %v2447_v34 = vmin.f32 %v2443_v25, %v2435_v20  ;;  %v2305_v42 = vrot.slane %v2304_v1, 2 }
 0x3a2   : > { %3670 = vst [vmem:[#allocation2 + $0x9] sm:$0x1] %v3669_v22  ;;  %v2436_v54 = vadd.f32 %v2419_v35, %v8599_v50  ;;  %v8609_v6 = vpop.permute.xlu1 %3750  ;;  %v2459_v35 = vld [vmem:[#allocation2 + $0x5] sm:$0x1] }
 0x3a3   : > { %2715 = vperm.xlu0 %6028, %v2625_v40   ;;  %v2449_v32 = vmin.f32 %v2445_v14, %v2446_v15  ;;  %v2306_v26 = vmin.f32 %v2304_v1, %v2305_v42  ;;  %v3785_v15 = vadd.f32 %v8513_v12, %v8333_v57 }
 0x3a4   : > { %v2448_v0 = vmin.f32 %v2444_v47, %v2436_v54 }
 0x3a5   : > { %4334 = vperm.xlu1 %6025, %v10067_v24   ;;  %v8612_v48 = vpop.permute.xlu0 %4611  ;;  %v2307_v51 = vrot.slane %v2306_v26, 1 }
 0x3a6   : > { %10068 = vst [vmem:[#allocation61_spill] sm:$0xff] %v8612_v48  ;;  %v2450_v10 = vmin.f32 %v2447_v34, %v2448_v0  ;;  %v3761_v33 = vpop.permute.xlu1 %3760  ;;  %v10070_v0 = vld [vmem:[#allocation70_spill] sm:$0xff] }
 0x3a7   : > { %4918 = vperm.xlu0 %6028, %v8274_v41  }
 0x3a8   : > { %v2451_v55 = vmin.f32 %v2449_v32, %v2450_v10  ;;  %v3789_v32 = vadd.f32 %v8460_v9, %v10070_v0  ;;  %v3783_v10 = vadd.f32 %v8480_v28, %v8428_v36  ;;  %v3786_v9 = vadd.f32 %v8537_v27, %v8409_v13 }
 0x3a9   : > { %4344 = vperm.xlu1 %6025, %v8100_v23   ;;  %v4627_v30 = vpop.permute.xlu0 %4626  ;;  %v3788_v36 = vadd.f32 %v8552_v58, %v8448_v60  ;;  %v3794_v28 = vadd.f32 %v3761_v33, %v8437_v18  ;;  %v10076_v60 = vld [vmem:[#allocation72_spill] sm:$0xff] }
 0x3aa   : > { %v2452_v46 = vrot.slane %v2451_v55, 4  ;;  %v3771_v3 = vpop.permute.xlu1 %3770  ;;  %v4692_v63 = vadd.f32 %v4627_v30, %v8409_v13  ;;  %v3792_v13 = vadd.f32 %v8609_v6, %v8465_v53  ;;  %v3791_v58 = vadd.f32 %v8499_v52, %v10076_v60 }
 0x3ab   : > { %4933 = vperm.xlu0 %6028, %v8289_v29  }
 0x3ac   : > { %v2453_v5 = vmin.f32 %v2451_v55, %v2452_v46  ;;  %v10071_v55 = vld [vmem:[#allocation49_spill] sm:$0xff] }
 0x3ad   : > { %4354 = vperm.xlu1 %6025, %v8125_v38   ;;  %v8618_v24 = vpop.permute.xlu0 %4636  ;;  %v2308_v38 = vmin.f32 %v2306_v26, %v2307_v51  ;;  %v3787_v30 = vadd.f32 %v8455_v61, %v10071_v55  ;;  %v3801_v26 = vmin.f32 %v3785_v15, %v3789_v32  ;;  %v10085_v55 = vld [vmem:[#allocation84_spill] sm:$0xff] }
 0x3ae   : > { %v2454_v49 = vrot.slane %v2453_v5, 2  ;;  %v3781_v34 = vpop.permute.xlu1 %3780 }
 0x3af   : > { %4943 = vperm.xlu0 %6028, %v8296_v62   ;;  %v3798_v27 = vadd.f32 %v3781_v34, %v8468_v59 }
 0x3b0   : > { %v2455_v14 = vmin.f32 %v2453_v5, %v2454_v49  ;;  %v3799_v49 = vmin.f32 %v3783_v10, %v3787_v30 }
 0x3b1   : > { %4364 = vperm.xlu1 %6025, %v8132_v4   ;;  %v4647_v23 = vpop.permute.xlu0 %4646 }
 0x3b2   : > { %v2456_v20 = vrot.slane %v2455_v14, 1  ;;  %v4696_v22 = vadd.f32 %v4647_v23, %v8412_v17  ;;  %v8624_v1 = vpop.permute.xlu1 %3859  ;;  %v3796_v23 = vadd.f32 %v3771_v3, %v8490_v8  ;;  %v3803_v6 = vmin.f32 %v3799_v49, %v3791_v58  ;;  %v10081_v3 = vld [vmem:[#allocation15_spill] sm:$0xff]  ;;  %v10095_v58 = vld [vmem:[#allocation82_spill] sm:$0xff] }
 0x3b3   : > { %4953 = vperm.xlu0 %6028, %v8303_v2  }
 0x3b4   : > { %v2457_v47 = vmin.f32 %v2455_v14, %v2456_v20  ;;  %v4708_v40 = vmin.f32 %v4692_v63, %v4696_v22  ;;  %v10077_v20 = vld [vmem:[#allocation78_spill] sm:$0xff] }
 0x3b5   : > { %4374 = vperm.xlu1 %6025, %v8141_v11   ;;  %v8628_v19 = vpop.permute.xlu0 %4656  ;;  %v3790_v11 = vadd.f32 %v8591_v37, %v8412_v17  ;;  %v10073_v37 = vld [vmem:[#allocation74_spill] sm:$0xff]  ;;  %v3797_v53 = vadd.f32 %v8504_v44, %v10077_v20 }
 0x3b6   : > { %10069 = vst [vmem:[#allocation46_spill] sm:$0xff] %v8628_v19  ;;  %v2458_v25 = vmin.f32 %v2308_v38, %v2457_v47  ;;  %v8630_v4 = vpop.permute.xlu1 %3869  ;;  %v3793_v61 = vadd.f32 %v8485_v21, %v10073_v37  ;;  %v10080_v47 = vld [vmem:[#allocation76_spill] sm:$0xff] }
 0x3b7   : > { %4963 = vperm.xlu0 %6028, %v8311_v31   ;;  %v3802_v51 = vmin.f32 %v3786_v9, %v3790_v11 }
 0x3b8   : > { %v2460_v54 = vmin.f32 %v2459_v35, %v2458_v25  ;;  %v3805_v33 = vmin.f32 %v3801_v26, %v3793_v61  ;;  %v10088_v26 = vld [vmem:[#allocation143_spill] sm:$0xff]  ;;  %v10091_v61 = vld [vmem:[#allocation44_spill] sm:$0xff] }
 0x3b9   : > { %4384 = vperm.xlu1 %6025, %v8152_v7   ;;  %v4667_v42 = vpop.permute.xlu0 %4666  ;;  %v10072_v7 = vld [vmem:[#allocation43_spill] sm:$0xff]  ;;  %v3806_v21 = vmin.f32 %v3802_v51, %v3794_v28  ;;  %v10092_v51 = vld [vmem:[#allocation20_spill] sm:$0xff] }
 0x3ba   : > { %2461 = vst [vmem:[#allocation2 + $0x5] sm:$0x1] %v2460_v54  ;;  %v4700_v12 = vadd.f32 %v4667_v42, %v8437_v18  ;;  %v3880_v46 = vpop.permute.xlu1 %3879  ;;  %v3784_v17 = vadd.f32 %v8474_v39, %v10072_v7  ;;  %v3809_v8 = vmin.f32 %v3805_v33, %v3797_v53  ;;  %v10082_v54 = vld [vmem:[#allocation108_spill] sm:$0xff]  ;;  %v10084_v42 = vld [vmem:[#allocation14_spill] sm:$0xff]  ;;  %v10089_v28 = vld [vmem:[#allocation67_spill] sm:$0xff] }
 0x3bb   : > { %4973 = vperm.xlu0 %6028, %v8321_v43   ;;  %v3810_v63 = vmin.f32 %v3806_v21, %v3798_v27  ;;  %v3933_v7 = vadd.f32 %v8624_v1, %v10089_v28  ;;  %v10094_v27 = vld [vmem:[#allocation47_spill] sm:$0xff]  ;;  %v10096_v33 = vld [vmem:[#allocation68_spill] sm:$0xff]  ;;  %v10099_v53 = vld [vmem:[#allocation90_spill] sm:$0xff] }
 0x3bc   : > { %v8655_v5 = vmin.f32 %v4708_v40, %v4700_v12  ;;  %v3800_v14 = vmin.f32 %v3784_v17, %v3788_v36  ;;  %v3795_v40 = vadd.f32 %v8524_v56, %v10080_v47  ;;  %v10086_v56 = vld [vmem:[#allocation54_spill] sm:$0xff]  ;;  %v10097_v21 = vld [vmem:[#allocation88_spill] sm:$0xff] }
 0x3bd   : > { %4463 = vperm.xlu1 %6025, %v8167_v45   ;;  %v8661_v18 = vpop.permute.xlu0 %4676  ;;  %v10078_v45 = vld [vmem:[#allocation21_spill] sm:$0xff]  ;;  %v3812_v15 = vmin.f32 %v3809_v8, %v3810_v63  ;;  %v3936_v30 = vadd.f32 %v10086_v56, %v10085_v55  ;;  %v10087_v12 = vld [vmem:[#allocation86_spill] sm:$0xff]  ;;  %v10103_v47 = vld [vmem:[#allocation60_spill] sm:$0xff] }
 0x3be   : > { %10074 = vst [vmem:[#allocation62_spill] sm:$0xff] %v8655_v5  ;;  %10075 = vst [vmem:[#allocation69_spill] sm:$0xff] %v8661_v18  ;;  %v3890_v39 = vpop.permute.xlu1 %3889  ;;  %v3804_v34 = vmin.f32 %v3800_v14, %v3792_v13  ;;  %v3807_v25 = vmin.f32 %v3803_v6, %v3795_v40  ;;  %v3938_v9 = vadd.f32 %v10088_v26, %v10087_v12  ;;  %v10090_v17 = vld [vmem:[#allocation58_spill] sm:$0xff]  ;;  %v10100_v6 = vld [vmem:[#allocation144_spill] sm:$0xff] }
 0x3bf   : > { %4983 = vperm.xlu0 %6028, %v8330_v16   ;;  %v3939_v37 = vadd.f32 %v3890_v39, %v10090_v17  ;;  %v3934_v14 = vadd.f32 %v10096_v33, %v10095_v58  ;;  %v10101_v63 = vld [vmem:[#allocation141_spill] sm:$0xff]  ;;  %v10107_v55 = vld [vmem:[#allocation94_spill] sm:$0xff]  ;;  %v10153_v5 = vld [vmem:[#allocation127_spill] sm:$0xff] }
 0x3c0   : > { %v3808_v35 = vmin.f32 %v3804_v34, %v3796_v23  ;;  %v10098_v23 = vld [vmem:[#allocation12_spill] sm:$0xff]  ;;  %v3942_v34 = vadd.f32 %v10100_v6, %v10099_v53  ;;  %v3935_v39 = vadd.f32 %v8630_v4, %v10101_v63  ;;  %v10108_v56 = vld [vmem:[#allocation145_spill] sm:$0xff] }
 0x3c1   : > { %4473 = vperm.xlu1 %6025, %v10078_v45   ;;  %v4687_v22 = vpop.permute.xlu0 %4686  ;;  %v3940_v20 = vadd.f32 %v10098_v23, %v10097_v21  ;;  %v3946_v12 = vadd.f32 %v10108_v56, %v10107_v55  ;;  %v10111_v6 = vld [vmem:[#allocation25_spill] sm:$0xff]  ;;  %v10116_v55 = vld [vmem:[#allocation28_spill] sm:$0xff] }
 0x3c2   : > { %v8671_v38 = vadd.f32 %v4687_v22, %v8468_v59  ;;  %v3900_v52 = vpop.permute.xlu1 %3899  ;;  %v3811_v10 = vmin.f32 %v3807_v25, %v3808_v35  ;;  %v10083_v59 = vld [vmem:[#allocation16_spill] sm:$0xff]  ;;  %v10102_v22 = vld [vmem:[#allocation142_spill] sm:$0xff]  ;;  %v3950_v25 = vmin.f32 %v3934_v14, %v3938_v9  ;;  %v10110_v14 = vld [vmem:[#allocation11_spill] sm:$0xff] }
 0x3c3   : > { %5062 = vperm.xlu0 %6028, %v10081_v3   ;;  %v3937_v11 = vadd.f32 %v3880_v46, %v10083_v59  ;;  %v3941_v49 = vadd.f32 %v3900_v52, %v10091_v61  ;;  %v10093_v46 = vld [vmem:[#allocation80_spill] sm:$0xff]  ;;  %v10104_v35 = vld [vmem:[#allocation10_spill] sm:$0xff] }
 0x3c4   : > { %10079 = vst [vmem:[#allocation37_spill] sm:$0xff] %v8671_v38  ;;  %v3813_v36 = vmin.f32 %v3811_v10, %v3812_v15  ;;  %v3932_v60 = vadd.f32 %v10094_v27, %v10093_v46  ;;  %v10105_v15 = vld [vmem:[#allocation92_spill] sm:$0xff]  ;;  %v10109_v27 = vld [vmem:[#allocation23_spill] sm:$0xff]  ;;  %v10150_v38 = vld [vmem:[#allocation121_spill] sm:$0xff] }
 0x3c5   : > { %4483 = vperm.xlu1 %6025, %v10082_v54   ;;  %v4766_v0 = vpop.permute.xlu0 %4765  ;;  %v3949_v45 = vmin.f32 %v3933_v7, %v3937_v11  ;;  %v10106_v54 = vld [vmem:[#allocation56_spill] sm:$0xff] }
 0x3c6   : > { %v3910_v32 = vpop.permute.xlu1 %3909  ;;  %v3948_v8 = vmin.f32 %v3932_v60, %v3936_v30  ;;  %v3944_v10 = vadd.f32 %v10106_v54, %v10105_v15  ;;  %v3814_v26 = vrot.slane %v3813_v36, 4  ;;  %v3954_v30 = vmin.f32 %v3950_v25, %v3942_v34 }
 0x3c7   : > { %5072 = vperm.xlu0 %6028, %v10084_v42   ;;  %v3943_v52 = vadd.f32 %v3910_v32, %v10102_v22  ;;  %v3953_v46 = vmin.f32 %v3949_v45, %v3941_v49  ;;  %v4839_v32 = vadd.f32 %v4766_v0, %v10089_v28 }
 0x3c8   : > { %v3952_v11 = vmin.f32 %v3948_v8, %v3940_v20  ;;  %v3815_v49 = vmin.f32 %v3813_v36, %v3814_v26  ;;  %v10113_v8 = vld [vmem:[#allocation30_spill] sm:$0xff] }
 0x3c9   : > { %4493 = vperm.xlu1 %6025, %v10092_v51   ;;  %v4776_v13 = vpop.permute.xlu0 %4775  ;;  %v3951_v51 = vmin.f32 %v3935_v39, %v3939_v37  ;;  %v3958_v37 = vmin.f32 %v3954_v30, %v3946_v12  ;;  %v10112_v39 = vld [vmem:[#allocation18_spill] sm:$0xff] }
 0x3ca   : > { %v3920_v1 = vpop.permute.xlu1 %3919  ;;  %v3956_v23 = vmin.f32 %v3952_v11, %v3944_v10  ;;  %v4841_v0 = vadd.f32 %v4776_v13, %v10101_v63  ;;  %v10114_v13 = vld [vmem:[#allocation13_spill] sm:$0xff]  ;;  %v10119_v11 = vmov 5   ;;  %v10121_v30 = vld [vmem:[#allocation66_spill] sm:$0xff] }
 0x3cb   : > { %v3945_v40 = vadd.f32 %v3920_v1, %v10103_v47  ;;  %5082 = vperm.xlu0 %6028, %v10104_v35   ;;  %v3955_v9 = vmin.f32 %v3951_v51, %v3943_v52  ;;  %v3816_v52 = vrot.slane %v3815_v49, 2 }
 0x3cd   : > { %4503 = vperm.xlu1 %6025, %v10109_v27   ;;  %v4786_v4 = vpop.permute.xlu0 %4785  ;;  %v3957_v60 = vmin.f32 %v3953_v46, %v3945_v40  ;;  %v3817_v63 = vmin.f32 %v3815_v49, %v3816_v52  ;;  %v10117_v46 = vld [vmem:[#allocation19_spill] sm:$0xff] }
 0x3ce   : > { %v4843_v7 = vadd.f32 %v4786_v4, %v10083_v59  ;;  %v3930_v58 = vpop.permute.xlu1 %3929 }
 0x3cf   : > { %v3947_v33 = vadd.f32 %v3930_v58, %v8599_v50  ;;  %5092 = vperm.xlu0 %6028, %v10110_v14   ;;  %v3960_v28 = vmin.f32 %v3956_v23, %v3957_v60  ;;  %v3818_v27 = vrot.slane %v3817_v63, 1  ;;  %v2764_v23 = vld [vmem:[%s6602_s21] sm:$0xff] }
 0x3d0   : > { %v4855_v21 = vmin.f32 %v4839_v32, %v4843_v7 }
 0x3d1   : > { %v3959_v53 = vmin.f32 %v3955_v9, %v3947_v33  ;;  %4513 = vperm.xlu1 %6025, %v10111_v6   ;;  %v4796_v20 = vpop.permute.xlu0 %4795  ;;  %v3819_v60 = vmin.f32 %v3817_v63, %v3818_v27  ;;  %v10124_v6 = vmov 7   ;;  %v8771_v63 = vld [vmem:[%s6604_s28 + $0x8] sm:$0xff] }
 0x3d2   : > { %v4845_v59 = vadd.f32 %v4796_v20, %v10090_v17  ;;  %10125 = vst [vmem:[#allocation64_spill] sm:$0xff] %v8771_v63  ;;  %v6077_v9 = vld [vmem:[%s6604_s28 + $0x48] sm:$0xff] }
 0x3d3   : > { %v3961_v34 = vmin.f32 %v3958_v37, %v3959_v53  ;;  %v8715_v1 = vpop.permute.xlu1 %4012  ;;  %5102 = vperm.xlu0 %6028, %v10112_v39   ;;  %v3970_v37 = vld [vmem:[#allocation2 + $0xa] sm:$0x1] }
 0x3d4   : > { %v4857_v45 = vmin.f32 %v4841_v0, %v4845_v59  ;;  %v2767_v59 = vld [vmem:[%s6602_s21 + $0x18] sm:$0xff] }
 0x3d5   : > { %v3962_v40 = vmin.f32 %v3960_v28, %v3961_v34  ;;  %4523 = vperm.xlu1 %6025, %v10113_v8   ;;  %v4806_v36 = vpop.permute.xlu0 %4805  ;;  %v2769_v34 = vld [vmem:[%s6602_s21 + $0x28] sm:$0xff] }
 0x3d6   : > { %v4847_v25 = vadd.f32 %v4806_v36, %v10091_v61  ;;  %v2773_v36 = vld [vmem:[%s6602_s21 + $0x48] sm:$0xff] }
 0x3d7   : > { %v3963_v15 = vrot.slane %v3962_v40, 4  ;;  %v8720_v54 = vpop.permute.xlu1 %4017  ;;  %5112 = vperm.xlu0 %6028, %v10114_v13  }
 0x3d8   : > { %v8723_v17 = vmin.f32 %v4855_v21, %v4847_v25 }
 0x3d9   : > { %v3964_v10 = vmin.f32 %v3962_v40, %v3963_v15  ;;  %4533 = vperm.xlu1 %6025, %v10116_v55   ;;  %v4816_v56 = vpop.permute.xlu0 %4815  ;;  %v2771_v40 = vld [vmem:[%s6602_s21 + $0x38] sm:$0xff] }
 0x3da   : > { %10115 = vst [vmem:[#allocation39_spill] sm:$0xff] %v8723_v17  ;;  %v4849_v12 = vadd.f32 %v4816_v56, %v10102_v22  ;;  %v2775_v15 = vld [vmem:[%s6602_s21 + $0x58] sm:$0xff]  ;;  %v8782_v56 = vld [vmem:[%s6604_s28 + $0x50] sm:$0xff] }
 0x3db   : > { %v3965_v26 = vrot.slane %v3964_v10, 2  ;;  %v8727_v51 = vpop.permute.xlu1 %4027  ;;  %5122 = vperm.xlu0 %6028, %v10117_v46   ;;  %10128 = vst [vmem:[#allocation75_spill] sm:$0xff] %v8782_v56 }
 0x3dc   : > { %v8730_v61 = vmin.f32 %v4857_v45, %v4849_v12  ;;  %v2777_v12 = vld [vmem:[%s6602_s21 + $0x68] sm:$0xff] }
 0x3dd   : > { %v3966_v4 = vmin.f32 %v3964_v10, %v3965_v26  ;;  %6027 = vset.pattern.permute.xlu1 %v10119_v11  ;;  %v4826_v32 = vpop.permute.xlu0 %4825  ;;  %v8774_v10 = vld [vmem:[%s6604_s28 + $0x30] sm:$0xff]  ;;  %v10129_v11 = vld [vmem:[#allocation41_spill] sm:$0xff] }
 0x3de   : > { %10118 = vst [vmem:[#allocation35_spill] sm:$0xff] %v8730_v61  ;;  %v8734_v7 = vadd.f32 %v4826_v32, %v10103_v47  ;;  %4616 = vperm.xlu1 %6027, %v8274_v41   ;;  %v10123_v47 = vld [vmem:[#allocation33_spill] sm:$0xff]  ;;  %10126 = vst [vmem:[#allocation79_spill] sm:$0xff] %v8774_v10 }
 0x3df   : > { %v3967_v58 = vrot.slane %v3966_v4, 1  ;;  %v4038_v22 = vpop.permute.xlu1 %4037  ;;  %5132 = vperm.xlu0 %6028, %v10121_v30   ;;  %v10137_v61 = vld [vmem:[#allocation117_spill] sm:$0xff] }
 0x3e0   : > { %10120 = vst [vmem:[#allocation63_spill] sm:$0xff] %v8734_v7  ;;  %v4091_v26 = vadd.f32 %v4038_v22, %v8774_v10 }
 0x3e1   : > { %v3968_v33 = vmin.f32 %v3966_v4, %v3967_v58  ;;  %v4836_v21 = vpop.permute.xlu0 %4835  ;;  %v6072_v4 = vld [vmem:[%s6604_s28 + $0x38] sm:$0xff]  ;;  %v8794_v58 = vld [vmem:[%s6604_s28 + $0x40] sm:$0xff] }
 0x3e2   : > { %v8742_v49 = vadd.f32 %v4836_v21, %v8599_v50  ;;  %4621 = vperm.xlu1 %6027, %v10123_v47   ;;  %v4092_v32 = vadd.f32 %v6072_v4, %v10129_v11  ;;  %10130 = vst [vmem:[#allocation77_spill] sm:$0xff] %v8794_v58  ;;  %v10132_v21 = vld [vmem:[#allocation65_spill] sm:$0xff] }
 0x3e3   : > { %v3969_v41 = vmin.f32 %v3819_v60, %v3968_v33  ;;  %v4048_v53 = vpop.permute.xlu1 %4047  ;;  %6030 = vset.pattern.permute.xlu0 %v10124_v6  ;;  %v8797_v60 = vld [vmem:[%s6604_s28 + $0x70] sm:$0xff]  ;;  %v6074_v47 = vld [vmem:[%s6604_s28] sm:$0xff] }
 0x3e4   : > { %10122 = vst [vmem:[#allocation52_spill] sm:$0xff] %v8742_v49  ;;  %2798 = vperm.xlu0 %6030, %v2764_v23   ;;  %10131 = vst [vmem:[#allocation85_spill] sm:$0xff] %v8797_v60 }
 0x3e5   : > { %v3971_v0 = vmin.f32 %v3970_v37, %v3969_v41  ;;  %v10133_v41 = vld [vmem:[#allocation48_spill] sm:$0xff] }
 0x3e6   : > { %4631 = vperm.xlu1 %6027, %v8289_v29   ;;  %v8750_v28 = vpop.permute.xlu0 %2501 }
 0x3e7   : > { %3972 = vst [vmem:[#allocation2 + $0xa] sm:$0x1] %v3971_v0  ;;  %v4058_v50 = vpop.permute.xlu1 %4057  ;;  %v4085_v0 = vadd.f32 %v6074_v47, %v10133_v41 }
 0x3e8   : > { %2813 = vperm.xlu0 %6030, %v2767_v59   ;;  %v4095_v37 = vadd.f32 %v4058_v50, %v8782_v56  ;;  %v6075_v59 = vld [vmem:[%s6604_s28 + $0x18] sm:$0xff] }
 0x3ea   : > { %4641 = vperm.xlu1 %6027, %v8296_v62   ;;  %v8754_v45 = vpop.permute.xlu0 %2516 }
 0x3eb   : > { %v4068_v52 = vpop.permute.xlu1 %4067 }
 0x3ec   : > { %2823 = vperm.xlu0 %6030, %v2769_v34   ;;  %v10134_v34 = vld [vmem:[#allocation42_spill] sm:$0xff] }
 0x3ee   : > { %4651 = vperm.xlu1 %6027, %v8303_v2   ;;  %v8758_v29 = vpop.permute.xlu0 %2526 }
 0x3ef   : > { %v4078_v8 = vpop.permute.xlu1 %4077 }
 0x3f0   : > { %2833 = vperm.xlu0 %6030, %v2771_v40   ;;  %v4088_v40 = vadd.f32 %v6075_v59, %v10134_v34  ;;  %v4099_v50 = vadd.f32 %v4078_v8, %v8797_v60  ;;  %v10136_v34 = vld [vmem:[#allocation111_spill] sm:$0xff]  ;;  %v10138_v8 = vld [vmem:[#allocation109_spill] sm:$0xff] }
 0x3f1   : > { %v4094_v44 = vadd.f32 %v6077_v9, %v10136_v34 }
 0x3f2   : > { %4661 = vperm.xlu1 %6027, %v8311_v31   ;;  %v8762_v62 = vpop.permute.xlu0 %2536  ;;  %v8779_v31 = vld [vmem:[%s6604_s28 + $0x20] sm:$0xff]  ;;  %v4104_v41 = vmin.f32 %v4088_v40, %v4092_v32 }
 0x3f3   : > { %v8764_v25 = vpop.permute.xlu1 %4156  ;;  %10127 = vst [vmem:[#allocation81_spill] sm:$0xff] %v8779_v31  ;;  %v4089_v23 = vadd.f32 %v8727_v51, %v8779_v31  ;;  %v4093_v51 = vadd.f32 %v4048_v53, %v8794_v58 }
 0x3f4   : > { %2843 = vperm.xlu0 %6030, %v2773_v36   ;;  %v6076_v36 = vld [vmem:[%s6604_s28 + $0x58] sm:$0xff] }
 0x3f6   : > { %4671 = vperm.xlu1 %6027, %v8321_v43   ;;  %v8768_v2 = vpop.permute.xlu0 %2546  ;;  %v4086_v43 = vadd.f32 %v8715_v1, %v8771_v63  ;;  %v6073_v1 = vld [vmem:[%s6604_s28 + $0x28] sm:$0xff] }
 0x3f7   : > { %v8776_v55 = vpop.permute.xlu1 %4166  ;;  %v4090_v22 = vadd.f32 %v6073_v1, %v10132_v21  ;;  %v8815_v21 = vld [vmem:[%s6604_s28 + $0x60] sm:$0xff] }
 0x3f8   : > { %2853 = vperm.xlu0 %6030, %v2775_v15   ;;  %v10135_v15 = vld [vmem:[#allocation113_spill] sm:$0xff]  ;;  %v4097_v53 = vadd.f32 %v4068_v52, %v8815_v21 }
 0x3f9   : > { %v4096_v11 = vadd.f32 %v6076_v36, %v10135_v15  ;;  %v6078_v15 = vld [vmem:[%s6604_s28 + $0x78] sm:$0xff] }
 0x3fa   : > { %4681 = vperm.xlu1 %6027, %v8330_v16   ;;  %v8789_v27 = vpop.permute.xlu0 %2556  ;;  %v4087_v16 = vadd.f32 %v8720_v54, %v8333_v57  ;;  %v2779_v57 = vld [vmem:[%s6602_s21 + $0x78] sm:$0xff]  ;;  %v4102_v54 = vmin.f32 %v4086_v43, %v4090_v22  ;;  %v4100_v7 = vadd.f32 %v6078_v15, %v10137_v61  ;;  %v4101_v43 = vmin.f32 %v4085_v0, %v4089_v23  ;;  %v2914_v22 = vld [vmem:[%s6602_s21 + $0x88] sm:$0xff]  ;;  %v10139_v61 = vld [vmem:[#allocation103_spill] sm:$0xff] }
 0x3fb   : > { %v8799_v33 = vpop.permute.xlu1 %4176  ;;  %v10140_v23 = vld [vmem:[#allocation53_spill] sm:$0xff]  ;;  %v10141_v0 = vld [vmem:[#allocation115_spill] sm:$0xff] }
 0x3fc   : > { %2863 = vperm.xlu0 %6030, %v2777_v12   ;;  %v4103_v20 = vmin.f32 %v4087_v16, %v4091_v26  ;;  %v4108_v16 = vmin.f32 %v4104_v41, %v4096_v11  ;;  %v4106_v32 = vmin.f32 %v4102_v54, %v4094_v44  ;;  %v4105_v40 = vmin.f32 %v4101_v43, %v4093_v51  ;;  %v8853_v41 = vld [vmem:[%s6604_s28 + $0xb8] sm:$0xff]  ;;  %v10144_v43 = vld [vmem:[#allocation125_spill] sm:$0xff] }
 0x3fd   : > { %v2585_v52 = vadd.f32 %v6076_v36, %v10140_v23 }
 0x3fe   : > { %4760 = vperm.xlu1 %6027, %v10081_v3   ;;  %v8821_v12 = vpop.permute.xlu0 %2566  ;;  %v4107_v26 = vmin.f32 %v4103_v20, %v4095_v37  ;;  %v2581_v3 = vadd.f32 %v6072_v4, %v10138_v8  ;;  %v2577_v20 = vadd.f32 %v6075_v59, %v10139_v61  ;;  %v8838_v4 = vld [vmem:[%s6604_s28 + $0x68] sm:$0xff]  ;;  %v4112_v11 = vmin.f32 %v4108_v16, %v4100_v7  ;;  %v10143_v59 = vld [vmem:[#allocation101_spill] sm:$0xff]  ;;  %v2916_v8 = vld [vmem:[%s6602_s21 + $0x98] sm:$0xff] }
 0x3ff   : > { %v8825_v49 = vpop.permute.xlu1 %4186  ;;  %v4098_v44 = vadd.f32 %v8838_v4, %v10141_v0  ;;  %v4109_v51 = vmin.f32 %v4105_v40, %v4097_v53  ;;  %v8860_v7 = vld [vmem:[%s6604_s28 + $0xa0] sm:$0xff]  ;;  %v8864_v16 = vld [vmem:[%s6604_s28 + $0x10] sm:$0xff]  ;;  %v10146_v53 = vld [vmem:[#allocation102_spill] sm:$0xff] }
 0x400   : > { %2873 = vperm.xlu0 %6030, %v2779_v57   ;;  %v4111_v34 = vmin.f32 %v4107_v26, %v4099_v50  ;;  %v8843_v57 = vld [vmem:[%s6604_s28 + $0xa8] sm:$0xff]  ;;  %v8850_v50 = vadd.f32 %v6074_v47, %v10143_v59  ;;  %v2593_v36 = vmin.f32 %v2577_v20, %v2581_v3  ;;  %v8857_v26 = vadd.f32 %v8853_v41, %v10144_v43  ;;  %v10149_v59 = vld [vmem:[#allocation40_spill] sm:$0xff] }
 0x401   : > { %10145 = vst [vmem:[#allocation83_spill] sm:$0xff] %v8864_v16  ;;  %v8868_v47 = vadd.f32 %v8864_v16, %v10146_v53  ;;  %v8871_v3 = vld [vmem:[%s6604_s28 + $0x88] sm:$0xff]  ;;  %v4110_v61 = vmin.f32 %v4106_v32, %v4098_v44  ;;  %v8882_v43 = vadd.f32 %v6077_v9, %v10149_v59  ;;  %v8887_v16 = vld [vmem:[%s6604_s28 + $0x98] sm:$0xff] }
 0x402   : > { %4770 = vperm.xlu1 %6027, %v10084_v42   ;;  %v8833_v17 = vpop.permute.xlu0 %2645  ;;  %v10142_v42 = vld [vmem:[#allocation123_spill] sm:$0xff]  ;;  %v4114_v20 = vmin.f32 %v4111_v34, %v4112_v11  ;;  %v10148_v0 = vld [vmem:[#allocation106_spill] sm:$0xff]  ;;  %v8884_v53 = vmin.f32 %v2593_v36, %v2585_v52  ;;  %v4237_v32 = vadd.f32 %v8887_v16, %v10150_v38  ;;  %v8892_v34 = vld [vmem:[%s6604_s28 + $0x80] sm:$0xff]  ;;  %v4238_v38 = vadd.f32 %v8799_v33, %v8860_v7 }
 0x403   : > { %v4197_v37 = vpop.permute.xlu1 %4196  ;;  %v8847_v54 = vadd.f32 %v8843_v57, %v10142_v42  ;;  %v8879_v42 = vadd.f32 %v6073_v1, %v10148_v0  ;;  %v8898_v1 = vld [vmem:[%s6604_s28 + $0xc0] sm:$0xff]  ;;  %v4113_v36 = vmin.f32 %v4109_v51, %v4110_v61  ;;  %v8911_v59 = vld [vmem:[%s6604_s28 + $0xc8] sm:$0xff]  ;;  %v8920_v51 = vld [vmem:[%s6604_s28 + $0xd0] sm:$0xff] }
 0x404   : > { %2952 = vperm.xlu0 %6030, %v2914_v22   ;;  %v10147_v22 = vld [vmem:[#allocation119_spill] sm:$0xff]  ;;  %v10151_v11 = vld [vmem:[#allocation57_spill] sm:$0xff]  ;;  %v4253_v0 = vmin.f32 %v4237_v32, %v8857_v26  ;;  %v4243_v48 = vadd.f32 %v8911_v59, %v10153_v5  ;;  %v2918_v33 = vld [vmem:[%s6602_s21 + $0xa8] sm:$0xff]  ;;  %v4234_v26 = vadd.f32 %v8764_v25, %v8892_v34  ;;  %v4242_v5 = vadd.f32 %v4197_v37, %v8898_v1 }
 0x405   : > { %v4235_v40 = vadd.f32 %v8871_v3, %v10147_v22  ;;  %v8901_v9 = vadd.f32 %v6078_v15, %v10151_v11  ;;  %v8905_v22 = vld [vmem:[%s6604_s28 + $0x90] sm:$0xff]  ;;  %v2575_v15 = vadd.f32 %v8771_v63, %v8750_v28  ;;  %v8933_v32 = vld [vmem:[%s6604_s28 + $0xd8] sm:$0xff] }
 0x406   : > { %4780 = vperm.xlu1 %6027, %v10104_v35   ;;  %v8876_v23 = vpop.permute.xlu0 %2655  ;;  %v8895_v35 = vld [vmem:[%s6604_s28 + $0xb0] sm:$0xff]  ;;  %10152 = vst [vmem:[#allocation89_spill] sm:$0xff] %v8905_v22  ;;  %v4250_v6 = vmin.f32 %v4234_v26, %v4238_v38  ;;  %v10156_v38 = vld [vmem:[#allocation133_spill] sm:$0xff] }
 0x407   : > { %v4207_v44 = vpop.permute.xlu1 %4206  ;;  %v4251_v52 = vmin.f32 %v4235_v40, %v8847_v54  ;;  %v2580_v54 = vadd.f32 %v8774_v10, %v8758_v29  ;;  %v8923_v40 = vld [vmem:[%s6604_s28 + $0xe0] sm:$0xff]  ;;  %v4240_v61 = vadd.f32 %v8825_v49, %v8895_v35  ;;  %v8938_v10 = vld [vmem:[%s6604_s28 + $0xe8] sm:$0xff]  ;;  %v2578_v49 = vadd.f32 %v8779_v31, %v8754_v45  ;;  %v2920_v31 = vld [vmem:[%s6602_s21 + $0xb8] sm:$0xff] }
 0x408   : > { %2962 = vperm.xlu0 %6030, %v2916_v8   ;;  %v4115_v8 = vmin.f32 %v4113_v36, %v4114_v20  ;;  %v10154_v29 = vld [vmem:[#allocation129_spill] sm:$0xff]  ;;  %v10155_v20 = vld [vmem:[#allocation131_spill] sm:$0xff]  ;;  %v4236_v36 = vadd.f32 %v8776_v55, %v8905_v22  ;;  %v2591_v19 = vmin.f32 %v2575_v15, %v8879_v42  ;;  %v2582_v45 = vadd.f32 %v8794_v58, %v8762_v62  ;;  %v8961_v55 = vld [vmem:[%s6604_s28 + $0xf8] sm:$0xff] }
 0x409   : > { %v4245_v11 = vadd.f32 %v8933_v32, %v10154_v29  ;;  %v4247_v25 = vadd.f32 %v8938_v10, %v10155_v20  ;;  %v4244_v29 = vadd.f32 %v4207_v44, %v8920_v51  ;;  %v2592_v20 = vmin.f32 %v8868_v47, %v2580_v54 }
 0x40a   : > { %4790 = vperm.xlu1 %6027, %v10110_v14   ;;  %v2666_v28 = vpop.permute.xlu0 %2665  ;;  %v2584_v14 = vadd.f32 %v8782_v56, %v8768_v2  ;;  %v2588_v2 = vadd.f32 %v8797_v60, %v8821_v12  ;;  %v8957_v56 = vld [vmem:[%s6604_s28 + $0xf0] sm:$0xff]  ;;  %v4249_v44 = vadd.f32 %v8961_v55, %v10156_v38  ;;  %v4116_v26 = vrot.slane %v4115_v8, 4 }
 0x40b   : > { %v4217_v37 = vpop.permute.xlu1 %4216  ;;  %v4255_v42 = vmin.f32 %v4251_v52, %v4243_v48  ;;  %v2590_v62 = vmin.f32 %v8850_v50, %v2578_v49  ;;  %v2586_v12 = vadd.f32 %v8815_v21, %v8789_v27  ;;  %v4257_v60 = vmin.f32 %v4253_v0, %v4245_v11  ;;  %v2922_v52 = vld [vmem:[%s6602_s21 + $0xc8] sm:$0xff] }
 0x40c   : > { %v4246_v18 = vadd.f32 %v4217_v37, %v8923_v40  ;;  %2972 = vperm.xlu0 %6030, %v2918_v33   ;;  %v4252_v33 = vmin.f32 %v4236_v36, %v4240_v61  ;;  %v4254_v37 = vmin.f32 %v4250_v6, %v4242_v5  ;;  %v2596_v15 = vmin.f32 %v2592_v20, %v2584_v14  ;;  %v10157_v61 = vld [vmem:[#allocation17_spill] sm:$0xff]  ;;  %v10158_v20 = vld [vmem:[#allocation59_spill] sm:$0xff] }
 0x40d   : > { %v2587_v6 = vadd.f32 %v8838_v4, %v10157_v61  ;;  %v2594_v5 = vmin.f32 %v2590_v62, %v2582_v45  ;;  %v4259_v50 = vmin.f32 %v4255_v42, %v4247_v25  ;;  %v4261_v49 = vmin.f32 %v4257_v60, %v4249_v44  ;;  %v2924_v25 = vld [vmem:[%s6602_s21 + $0xd8] sm:$0xff]  ;;  %v10160_v42 = vld [vmem:[#allocation55_spill] sm:$0xff] }
 0x40e   : > { %4800 = vperm.xlu1 %6027, %v10112_v39   ;;  %v2676_v47 = vpop.permute.xlu0 %2675  ;;  %v4256_v58 = vmin.f32 %v4252_v33, %v4244_v29  ;;  %v4258_v63 = vmin.f32 %v4254_v37, %v4246_v18  ;;  %v2595_v39 = vmin.f32 %v2591_v19, %v8882_v43  ;;  %v2600_v48 = vmin.f32 %v2596_v15, %v2588_v2  ;;  %v10159_v2 = vld [vmem:[#allocation51_spill] sm:$0xff]  ;;  %v10161_v15 = vld [vmem:[#allocation45_spill] sm:$0xff] }
 0x40f   : > { %v4227_v54 = vpop.permute.xlu1 %4226  ;;  %v4117_v14 = vmin.f32 %v4115_v8, %v4116_v26  ;;  %v2601_v18 = vmin.f32 %v8884_v53, %v8901_v9  ;;  %v2723_v4 = vadd.f32 %v8892_v34, %v8833_v17  ;;  %v2727_v19 = vadd.f32 %v8860_v7, %v2666_v28 }
 0x410   : > { %v4248_v38 = vadd.f32 %v4227_v54, %v8957_v56  ;;  %2982 = vperm.xlu0 %6030, %v2920_v31   ;;  %v2598_v31 = vmin.f32 %v2594_v5, %v2586_v12  ;;  %v4262_v43 = vmin.f32 %v4258_v63, %v4259_v50  ;;  %v2599_v60 = vmin.f32 %v2595_v39, %v2587_v6  ;;  %v10163_v6 = vld [vmem:[#allocation110_spill] sm:$0xff] }
 0x411   : > { %v2603_v8 = vmin.f32 %v2600_v48, %v2601_v18  ;;  %v4118_v53 = vrot.slane %v4117_v14, 2  ;;  %v2739_v63 = vmin.f32 %v2723_v4, %v2727_v19  ;;  %v2728_v45 = vadd.f32 %v8843_v57, %v10158_v20  ;;  %v4272_v20 = vld [vmem:[#allocation2 + $0xb] sm:$0x1] }
 0x412   : > { %v4260_v27 = vmin.f32 %v4256_v58, %v4248_v38  ;;  %4810 = vperm.xlu1 %6027, %v10114_v13   ;;  %v2686_v0 = vpop.permute.xlu0 %2685  ;;  %v2725_v13 = vadd.f32 %v8905_v22, %v8876_v23  ;;  %v2729_v58 = vadd.f32 %v8895_v35, %v2676_v47  ;;  %v2602_v28 = vmin.f32 %v2598_v31, %v2599_v60  ;;  %v10162_v38 = vld [vmem:[#allocation38_spill] sm:$0xff] }
 0x413   : > { %v2731_v29 = vadd.f32 %v8898_v1, %v2686_v0  ;;  %v2730_v44 = vadd.f32 %v8853_v41, %v10159_v2  ;;  %v2724_v62 = vadd.f32 %v8871_v3, %v10160_v42  ;;  %v2726_v12 = vadd.f32 %v8887_v16, %v10161_v15  ;;  %v5822_v16 = vld [vmem:[%s6602_s21 + $0x100] sm:$0xff] }
 0x414   : > { %v4263_v11 = vmin.f32 %v4260_v27, %v4261_v49  ;;  %v8980_v36 = vpop.permute.xlu1 %4309  ;;  %2992 = vperm.xlu0 %6030, %v2922_v52   ;;  %v2604_v33 = vmin.f32 %v2602_v28, %v2603_v8  ;;  %v2741_v37 = vmin.f32 %v2725_v13, %v2729_v58  ;;  %v4119_v57 = vmin.f32 %v4117_v14, %v4118_v53  ;;  %v10164_v14 = vld [vmem:[#allocation112_spill] sm:$0xff]  ;;  %v10165_v27 = vld [vmem:[#allocation114_spill] sm:$0xff] }
 0x415   : > { %v2732_v61 = vadd.f32 %v8911_v59, %v10162_v38  ;;  %v2734_v39 = vadd.f32 %v8933_v32, %v10163_v6  ;;  %v2743_v5 = vmin.f32 %v2739_v63, %v2731_v29  ;;  %v2740_v52 = vmin.f32 %v2724_v62, %v2728_v45  ;;  %v2928_v32 = vld [vmem:[%s6602_s21 + $0xf8] sm:$0xff] }
 0x416   : > { %v4264_v9 = vmin.f32 %v4262_v43, %v4263_v11  ;;  %4820 = vperm.xlu1 %6027, %v10117_v46   ;;  %v2696_v17 = vpop.permute.xlu0 %2695  ;;  %v2926_v46 = vld [vmem:[%s6602_s21 + $0xe8] sm:$0xff]  ;;  %v2742_v3 = vmin.f32 %v2726_v12, %v2730_v44  ;;  %v2738_v0 = vadd.f32 %v8961_v55, %v10165_v27  ;;  %v2605_v59 = vrot.slane %v2604_v33, 4  ;;  %v9019_v55 = vld [vmem:[%s6602_s21 + $0x110] sm:$0xff]  ;;  %v5829_v6 = vld [vmem:[%s6602_s21 + $0x138] sm:$0xff] }
 0x417   : > { %v2733_v47 = vadd.f32 %v8920_v51, %v2696_v17  ;;  %v4120_v31 = vrot.slane %v4119_v57, 1  ;;  %v10166_v19 = vmov 6   ;;  %v2744_v11 = vmin.f32 %v2740_v52, %v2732_v61  ;;  %v5827_v12 = vld [vmem:[%s6602_s21 + $0x128] sm:$0xff] }
 0x418   : > { %v4265_v23 = vrot.slane %v4264_v9, 4  ;;  %v8992_v26 = vpop.permute.xlu1 %4319  ;;  %3002 = vperm.xlu0 %6030, %v2924_v25   ;;  %v2746_v60 = vmin.f32 %v2742_v3, %v2734_v39 }
 0x419   : > { %v2745_v18 = vmin.f32 %v2741_v37, %v2733_v47  ;;  %v4121_v28 = vmin.f32 %v4119_v57, %v4120_v31  ;;  %v5825_v37 = vld [vmem:[%s6602_s21 + $0x118] sm:$0xff]  ;;  %v5871_v31 = vld [vmem:[%s6602_s21 + $0x188] sm:$0xff] }
 0x41a   : > { %v4266_v54 = vmin.f32 %v4264_v9, %v4265_v23  ;;  %4830 = vperm.xlu1 %6027, %v10121_v30   ;;  %v2706_v41 = vpop.permute.xlu0 %2705  ;;  %v2736_v30 = vadd.f32 %v8938_v10, %v10164_v14  ;;  %v2750_v53 = vmin.f32 %v2746_v60, %v2738_v0  ;;  %v2606_v9 = vmin.f32 %v2604_v33, %v2605_v59  ;;  %v9056_v60 = vld [vmem:[%s6604_s28 + $0x10] sm:$0xff] }
 0x41b   : > { %v2735_v48 = vadd.f32 %v8923_v40, %v2706_v41 }
 0x41c   : > { %v4267_v50 = vrot.slane %v4266_v54, 2  ;;  %v9006_v49 = vpop.permute.xlu1 %4324  ;;  %3012 = vperm.xlu0 %6030, %v2926_v46   ;;  %v2748_v25 = vmin.f32 %v2744_v11, %v2736_v30  ;;  %v2607_v47 = vrot.slane %v2606_v9, 2  ;;  %v2761_v30 = vld [vmem:[#allocation2 + $0x6] sm:$0x1]  ;;  %v5873_v11 = vld [vmem:[%s6602_s21 + $0x198] sm:$0xff] }
 0x41d   : > { %v2747_v8 = vmin.f32 %v2743_v5, %v2735_v48 }
 0x41e   : > { %v4268_v4 = vmin.f32 %v4266_v54, %v4267_v50  ;;  %6029 = vset.pattern.permute.xlu1 %v10166_v19  ;;  %v2716_v43 = vpop.permute.xlu0 %2715  ;;  %v2608_v57 = vmin.f32 %v2606_v9, %v2607_v47  ;;  %v5831_v50 = vld [vmem:[%s6602_s21 + $0x148] sm:$0xff]  ;;  %v4389_v9 = vadd.f32 %v8992_v26, %v9056_v60 }
 0x41f   : > { %v2737_v13 = vadd.f32 %v8957_v56, %v2716_v43  ;;  %4913 = vperm.xlu1 %6029, %v5822_v16   ;;  %v2751_v45 = vmin.f32 %v2747_v8, %v2748_v25  ;;  %v9052_v43 = vld [vmem:[%s6602_s21 + $0x168] sm:$0xff] }
 0x420   : > { %v4269_v58 = vrot.slane %v4268_v4, 1  ;;  %v9016_v10 = vpop.permute.xlu1 %4334  ;;  %3022 = vperm.xlu0 %6030, %v2928_v32   ;;  %v2609_v39 = vrot.slane %v2608_v57, 1 }
 0x421   : > { %v2749_v17 = vmin.f32 %v2745_v18, %v2737_v13  ;;  %v9043_v18 = vld [vmem:[%s6602_s21 + $0x158] sm:$0xff]  ;;  %v9061_v13 = vld [vmem:[%s6604_s28] sm:$0xff] }
 0x422   : > { %v4270_v63 = vmin.f32 %v4268_v4, %v4269_v58  ;;  %v9021_v29 = vpop.permute.xlu0 %4918  ;;  %v9065_v58 = vld [vmem:[%s6604_s28 + $0x38] sm:$0xff] }
 0x423   : > { %10167 = vst [vmem:[#allocation87_spill] sm:$0xff] %v9021_v29  ;;  %v2752_v2 = vmin.f32 %v2749_v17, %v2750_v53  ;;  %4923 = vperm.xlu1 %6029, %v9019_v55   ;;  %v9070_v53 = vld [vmem:[%s6602_s21 + $0x178] sm:$0xff]  ;;  %v9075_v17 = vld [vmem:[%s6602_s21 + $0x1a8] sm:$0xff] }
 0x424   : > { %v4271_v44 = vmin.f32 %v4121_v28, %v4270_v63  ;;  %v9024_v23 = vpop.permute.xlu1 %4344  ;;  %5215 = vperm.xlu0 %6030, %v5822_v16   ;;  %v2610_v16 = vmin.f32 %v2608_v57, %v2609_v39  ;;  %v4387_v28 = vadd.f32 %v8980_v36, %v9061_v13  ;;  %v9080_v63 = vld [vmem:[%s6604_s28 + $0x18] sm:$0xff]  ;;  %v9097_v36 = vld [vmem:[%s6604_s28 + $0x20] sm:$0xff] }
 0x425   : > { %v2753_v46 = vmin.f32 %v2751_v45, %v2752_v2  ;;  %v9086_v45 = vld [vmem:[%s6604_s28 + $0x58] sm:$0xff]  ;;  %v4394_v26 = vadd.f32 %v9024_v23, %v9065_v58  ;;  %v4390_v23 = vadd.f32 %v9006_v49, %v9080_v63  ;;  %v10177_v49 = vld [vmem:[#allocation105_spill] sm:$0xff] }
 0x426   : > { %v4273_v33 = vmin.f32 %v4272_v20, %v4271_v44  ;;  %v9027_v42 = vpop.permute.xlu0 %4933  ;;  %v9083_v20 = vld [vmem:[%s6604_s28 + $0x28] sm:$0xff]  ;;  %v9089_v44 = vld [vmem:[%s6604_s28 + $0x30] sm:$0xff]  ;;  %v9114_v39 = vld [vmem:[%s6602_s21 + $0x1b8] sm:$0xff] }
 0x427   : > { %10168 = vst [vmem:[#allocation95_spill] sm:$0xff] %v9027_v42  ;;  %v2754_v62 = vrot.slane %v2753_v46, 4  ;;  %4928 = vperm.xlu1 %6029, %v5825_v37   ;;  %v9207_v42 = vld [vmem:[%s6604_s28 + $0xc0] sm:$0xff] }
 0x428   : > { %4274 = vst [vmem:[#allocation2 + $0xb] sm:$0x1] %v4273_v33  ;;  %v9029_v15 = vpop.permute.xlu1 %4354  ;;  %5230 = vperm.xlu0 %6030, %v5825_v37   ;;  %v10174_v37 = vld [vmem:[#allocation73_spill] sm:$0xff]  ;;  %10192 = vst [vmem:[#allocation74_spill] sm:$0xff] %v9207_v42 }
 0x429   : > { %v2755_v54 = vmin.f32 %v2753_v46, %v2754_v62  ;;  %v4393_v47 = vadd.f32 %v9089_v44, %v10174_v37  ;;  %v10175_v46 = vld [vmem:[#allocation71_spill] sm:$0xff]  ;;  %v9102_v62 = vld [vmem:[%s6604_s28 + $0x48] sm:$0xff]  ;;  %v9133_v37 = vld [vmem:[%s6604_s28 + $0x40] sm:$0xff] }
 0x42a   : > { %v9032_v41 = vpop.permute.xlu0 %4943  ;;  %v4391_v33 = vadd.f32 %v9097_v36, %v10175_v46 }
 0x42b   : > { %10169 = vst [vmem:[#allocation96_spill] sm:$0xff] %v9032_v41  ;;  %v2756_v38 = vrot.slane %v2755_v54, 2  ;;  %4938 = vperm.xlu1 %6029, %v5827_v12  }
 0x42c   : > { %v4365_v61 = vpop.permute.xlu1 %4364  ;;  %5240 = vperm.xlu0 %6030, %v5827_v12   ;;  %v9105_v12 = vld [vmem:[%s6604_s28 + $0x78] sm:$0xff] }
 0x42d   : > { %v2757_v5 = vmin.f32 %v2755_v54, %v2756_v38  ;;  %v4405_v54 = vmin.f32 %v4389_v9, %v4393_v47  ;;  %v4392_v38 = vadd.f32 %v9016_v10, %v9083_v20  ;;  %v4406_v10 = vmin.f32 %v4390_v23, %v4394_v26  ;;  %v10178_v47 = vld [vmem:[#allocation22_spill] sm:$0xff]  ;;  %v9141_v23 = vld [vmem:[%s6604_s28 + $0x70] sm:$0xff] }
 0x42e   : > { %v9035_v48 = vpop.permute.xlu0 %4953 }
 0x42f   : > { %10170 = vst [vmem:[#allocation91_spill] sm:$0xff] %v9035_v48  ;;  %v2758_v52 = vrot.slane %v2757_v5, 1  ;;  %4948 = vperm.xlu1 %6029, %v5829_v6   ;;  %v9202_v48 = vld [vmem:[%s6604_s28 + $0x90] sm:$0xff] }
 0x430   : > { %v9037_v3 = vpop.permute.xlu1 %4374  ;;  %5250 = vperm.xlu0 %6030, %v5829_v6   ;;  %v4398_v6 = vadd.f32 %v4365_v61, %v9086_v45  ;;  %v4396_v61 = vadd.f32 %v9029_v15, %v9102_v62  ;;  %v10179_v15 = vld [vmem:[#allocation107_spill] sm:$0xff]  ;;  %10190 = vst [vmem:[#allocation43_spill] sm:$0xff] %v9202_v48 }
 0x431   : > { %v2759_v14 = vmin.f32 %v2757_v5, %v2758_v52  ;;  %v9117_v5 = vld [vmem:[%s6604_s28 + $0x8] sm:$0xff]  ;;  %v10176_v52 = vld [vmem:[#allocation9_spill] sm:$0xff] }
 0x432   : > { %v9040_v27 = vpop.permute.xlu0 %4963  ;;  %v4410_v29 = vmin.f32 %v4406_v10, %v4398_v6  ;;  %v10180_v6 = vld [vmem:[#allocation104_spill] sm:$0xff]  ;;  %v5879_v10 = vld [vmem:[%s6602_s21 + $0x1c8] sm:$0xff] }
 0x433   : > { %10171 = vst [vmem:[#allocation93_spill] sm:$0xff] %v9040_v27  ;;  %v2760_v0 = vmin.f32 %v2610_v16, %v2759_v14  ;;  %4958 = vperm.xlu1 %6029, %v5831_v50   ;;  %v4403_v16 = vmin.f32 %v4387_v28, %v4391_v33  ;;  %v9122_v14 = vld [vmem:[%s6604_s28 + $0x68] sm:$0xff]  ;;  %v4395_v28 = vadd.f32 %v9133_v37, %v10178_v47 }
 0x434   : > { %v4385_v59 = vpop.permute.xlu1 %4384  ;;  %5260 = vperm.xlu0 %6030, %v5831_v50   ;;  %v4388_v50 = vadd.f32 %v9117_v5, %v10176_v52  ;;  %v4400_v26 = vadd.f32 %v9037_v3, %v9122_v14  ;;  %v9149_v3 = vld [vmem:[%s6604_s28 + $0x60] sm:$0xff] }
 0x435   : > { %v2762_v32 = vmin.f32 %v2761_v30, %v2760_v0  ;;  %v9125_v0 = vld [vmem:[%s6604_s28 + $0x50] sm:$0xff]  ;;  %v4402_v9 = vadd.f32 %v4385_v59, %v9105_v12  ;;  %v4401_v59 = vadd.f32 %v9141_v23, %v10179_v15 }
 0x436   : > { %v9046_v4 = vpop.permute.xlu0 %4973  ;;  %v4404_v52 = vmin.f32 %v4388_v50, %v4392_v38  ;;  %v4399_v50 = vadd.f32 %v9149_v3, %v10180_v6  ;;  %v10187_v6 = vld [vmem:[#allocation29_spill] sm:$0xff] }
 0x437   : > { %10172 = vst [vmem:[#allocation97_spill] sm:$0xff] %v9046_v4  ;;  %2763 = vst [vmem:[#allocation2 + $0x6] sm:$0x1] %v2762_v32  ;;  %4968 = vperm.xlu1 %6029, %v9043_v18   ;;  %v4397_v32 = vadd.f32 %v9125_v0, %v10177_v49 }
 0x438   : > { %v9049_v19 = vpop.permute.xlu1 %4463  ;;  %5369 = vperm.xlu0 %6030, %v5871_v31   ;;  %v4408_v47 = vmin.f32 %v4404_v52, %v4396_v61  ;;  %v9155_v61 = vld [vmem:[%s6604_s28 + $0xa8] sm:$0xff] }
 0x439   : > { %v4409_v33 = vmin.f32 %v4405_v54, %v4397_v32 }
 0x43a   : > { %v9058_v8 = vpop.permute.xlu0 %4983 }
 0x43b   : > { %10173 = vst [vmem:[#allocation98_spill] sm:$0xff] %v9058_v8  ;;  %4978 = vperm.xlu1 %6029, %v9052_v43   ;;  %v4414_v8 = vmin.f32 %v4410_v29, %v4402_v9  ;;  %v4413_v32 = vmin.f32 %v4409_v33, %v4401_v59  ;;  %v9164_v33 = vld [vmem:[%s6604_s28 + $0xb8] sm:$0xff] }
 0x43c   : > { %v9067_v25 = vpop.permute.xlu1 %4473  ;;  %5379 = vperm.xlu0 %6030, %v5873_v11   ;;  %10181 = vst [vmem:[#allocation99_spill] sm:$0xff] %v9164_v33 }
 0x43d   : > { %v4416_v9 = vmin.f32 %v4413_v32, %v4414_v8  ;;  %v9170_v8 = vld [vmem:[%s6604_s28 + $0x98] sm:$0xff]  ;;  %v10189_v32 = vld [vmem:[#allocation27_spill] sm:$0xff] }
 0x43e   : > { %v5063_v2 = vpop.permute.xlu0 %5062  ;;  %10183 = vst [vmem:[#allocation50_spill] sm:$0xff] %v9170_v8 }
 0x43f   : > { %4988 = vperm.xlu1 %6029, %v9070_v53   ;;  %v5140_v27 = vadd.f32 %v5063_v2, %v8892_v34 }
 0x440   : > { %v4484_v57 = vpop.permute.xlu1 %4483  ;;  %5389 = vperm.xlu0 %6030, %v9075_v17  }
 0x441   : > { %v4541_v59 = vadd.f32 %v4484_v57, %v9155_v61 }
 0x442   : > { %v5073_v30 = vpop.permute.xlu0 %5072 }
 0x443   : > { %5067 = vperm.xlu1 %6029, %v5871_v31   ;;  %v4407_v31 = vmin.f32 %v4403_v16, %v4395_v28  ;;  %v4412_v16 = vmin.f32 %v4408_v47, %v4400_v26  ;;  %v5142_v28 = vadd.f32 %v5073_v30, %v8905_v22  ;;  %v5881_v30 = vld [vmem:[%s6602_s21 + $0x1d8] sm:$0xff]  ;;  %v10197_v22 = vld [vmem:[#allocation34_spill] sm:$0xff] }
 0x444   : > { %v4494_v46 = vpop.permute.xlu1 %4493  ;;  %5399 = vperm.xlu0 %6030, %v9114_v39   ;;  %v10185_v47 = vld [vmem:[#allocation24_spill] sm:$0xff] }
 0x445   : > { %v4543_v4 = vadd.f32 %v4494_v46, %v9164_v33  ;;  %v10195_v46 = vld [vmem:[#allocation32_spill] sm:$0xff] }
 0x446   : > { %v5083_v49 = vpop.permute.xlu0 %5082 }
 0x447   : > { %v5144_v54 = vadd.f32 %v5083_v49, %v8860_v7  ;;  %5077 = vperm.xlu1 %6029, %v5873_v11   ;;  %v4411_v11 = vmin.f32 %v4407_v31, %v4399_v50  ;;  %v9175_v49 = vld [vmem:[%s6604_s28 + $0x80] sm:$0xff] }
 0x448   : > { %v4504_v38 = vpop.permute.xlu1 %4503  ;;  %5270 = vperm.xlu0 %6030, %v9043_v18   ;;  %v9158_v18 = vld [vmem:[%s6604_s28 + $0x88] sm:$0xff]  ;;  %10184 = vst [vmem:[#allocation36_spill] sm:$0xff] %v9175_v49 }
 0x449   : > { %v5156_v29 = vmin.f32 %v5140_v27, %v5144_v54  ;;  %v9167_v27 = vld [vmem:[%s6604_s28 + $0xc8] sm:$0xff]  ;;  %v4415_v15 = vmin.f32 %v4411_v11, %v4412_v16  ;;  %v9180_v54 = vld [vmem:[%s6604_s28 + $0xa0] sm:$0xff]  ;;  %v9185_v16 = vld [vmem:[%s6604_s28 + $0xb0] sm:$0xff] }
 0x44a   : > { %v5093_v2 = vpop.permute.xlu0 %5092  ;;  %10182 = vst [vmem:[#allocation100_spill] sm:$0xff] %v9167_v27  ;;  %10186 = vst [vmem:[#allocation70_spill] sm:$0xff] %v9180_v54  ;;  %v4540_v50 = vadd.f32 %v9180_v54, %v10187_v6  ;;  %v4542_v57 = vadd.f32 %v9185_v16, %v10189_v32  ;;  %v9192_v11 = vld [vmem:[%s6604_s28 + $0xd8] sm:$0xff]  ;;  %v4545_v41 = vadd.f32 %v4504_v38, %v9167_v27  ;;  %v10191_v32 = vld [vmem:[#allocation26_spill] sm:$0xff] }
 0x44b   : > { %v5146_v52 = vadd.f32 %v5093_v2, %v8895_v35  ;;  %5087 = vperm.xlu1 %6029, %v9075_v17   ;;  %v4536_v17 = vadd.f32 %v9175_v49, %v10185_v47  ;;  %10188 = vst [vmem:[#allocation49_spill] sm:$0xff] %v9185_v16  ;;  %v4537_v2 = vadd.f32 %v9049_v19, %v9158_v18  ;;  %v10193_v49 = vld [vmem:[#allocation31_spill] sm:$0xff] }
 0x44c   : > { %v4514_v26 = vpop.permute.xlu1 %4513  ;;  %5409 = vperm.xlu0 %6030, %v5879_v10   ;;  %v4417_v47 = vmin.f32 %v4415_v15, %v4416_v9  ;;  %v4538_v19 = vadd.f32 %v9202_v48, %v10191_v32  ;;  %v4544_v9 = vadd.f32 %v9207_v42, %v10193_v49  ;;  %v9212_v15 = vld [vmem:[%s6604_s28 + $0xd0] sm:$0xff]  ;;  %v9223_v42 = vld [vmem:[%s6604_s28 + $0xe0] sm:$0xff] }
 0x44d   : > { %v5158_v31 = vmin.f32 %v5142_v28, %v5146_v52  ;;  %v9195_v52 = vld [vmem:[%s6604_s28 + $0xe8] sm:$0xff]  ;;  %10194 = vst [vmem:[#allocation72_spill] sm:$0xff] %v9212_v15  ;;  %v4546_v38 = vadd.f32 %v9212_v15, %v10195_v46  ;;  %v4553_v16 = vmin.f32 %v4537_v2, %v4541_v59  ;;  %v4547_v32 = vadd.f32 %v4514_v26, %v9192_v11  ;;  %v9228_v46 = vld [vmem:[%s6604_s28 + $0xf0] sm:$0xff]  ;;  %v9233_v59 = vld [vmem:[%s6604_s28 + $0xf8] sm:$0xff] }
 0x44e   : > { %v5103_v28 = vpop.permute.xlu0 %5102  ;;  %v4552_v27 = vmin.f32 %v4536_v17, %v4540_v50  ;;  %v4554_v49 = vmin.f32 %v4538_v19, %v4542_v57  ;;  %10196 = vst [vmem:[#allocation78_spill] sm:$0xff] %v9223_v42  ;;  %v4548_v33 = vadd.f32 %v9223_v42, %v10197_v22  ;;  %10198 = vst [vmem:[#allocation21_spill] sm:$0xff] %v9228_v46  ;;  %v10199_v15 = vld [vmem:[#allocation146_spill] sm:$0xff]  ;;  %v4418_v26 = vrot.slane %v4417_v47, 4 }
 0x44f   : > { %v5148_v6 = vadd.f32 %v5103_v28, %v8898_v1  ;;  %5097 = vperm.xlu1 %6029, %v9114_v39   ;;  %v4539_v39 = vadd.f32 %v9067_v25, %v9170_v8  ;;  %v4550_v25 = vadd.f32 %v9228_v46, %v10199_v15  ;;  %v4557_v2 = vmin.f32 %v4553_v16, %v4545_v41 }
 0x450   : > { %v4524_v28 = vpop.permute.xlu1 %4523  ;;  %5419 = vperm.xlu0 %6030, %v5881_v30   ;;  %v4556_v17 = vmin.f32 %v4552_v27, %v4544_v9  ;;  %v4558_v50 = vmin.f32 %v4554_v49, %v4546_v38  ;;  %v4419_v41 = vmin.f32 %v4417_v47, %v4418_v26  ;;  %v10200_v9 = vld [vmem:[#allocation64_spill] sm:$0xff]  ;;  %v10201_v49 = vld [vmem:[#allocation46_spill] sm:$0xff] }
 0x451   : > { %v9219_v48 = vmin.f32 %v5156_v29, %v5148_v6  ;;  %v4549_v54 = vadd.f32 %v4524_v28, %v9195_v52  ;;  %v4555_v29 = vmin.f32 %v4539_v39, %v4543_v4  ;;  %v5853_v26 = vld [vmem:[%s6602_s21 + $0x1f8] sm:$0xff] }
 0x452   : > { %v5113_v8 = vpop.permute.xlu0 %5112  ;;  %v4560_v46 = vmin.f32 %v4556_v17, %v4548_v33  ;;  %v4562_v4 = vmin.f32 %v4558_v50, %v4550_v25  ;;  %v6104_v33 = vld [vmem:[%s6604_s28 + $0x28] sm:$0xff]  ;;  %v4420_v39 = vrot.slane %v4419_v41, 2  ;;  %v10202_v17 = vld [vmem:[#allocation69_spill] sm:$0xff] }
 0x453   : > { %v5150_v6 = vadd.f32 %v5113_v8, %v8920_v51  ;;  %5107 = vperm.xlu1 %6029, %v5879_v10   ;;  %v4559_v22 = vmin.f32 %v4555_v29, %v4547_v32  ;;  %v4561_v19 = vmin.f32 %v4557_v2, %v4549_v54  ;;  %v4694_v47 = vadd.f32 %v6104_v33, %v8618_v24  ;;  %v10219_v24 = vld [vmem:[#allocation124_spill] sm:$0xff] }
 0x454   : > { %v4534_v57 = vpop.permute.xlu1 %4533  ;;  %5280 = vperm.xlu0 %6030, %v9052_v43   ;;  %v5851_v43 = vld [vmem:[%s6602_s21 + $0x1e8] sm:$0xff]  ;;  %v10203_v33 = vmov 7  }
 0x455   : > { %v9237_v28 = vmin.f32 %v5158_v31, %v5150_v6  ;;  %v4551_v15 = vadd.f32 %v4534_v57, %v9233_v59  ;;  %v4564_v27 = vmin.f32 %v4560_v46, %v4561_v19  ;;  %v6106_v6 = vld [vmem:[%s6604_s28 + $0x68] sm:$0xff] }
 0x456   : > { %v5123_v42 = vpop.permute.xlu0 %5122  ;;  %v4702_v50 = vadd.f32 %v6106_v6, %v10202_v17 }
 0x457   : > { %v4563_v16 = vmin.f32 %v4559_v22, %v4551_v15  ;;  %v9241_v10 = vadd.f32 %v5123_v42, %v8923_v40  ;;  %5117 = vperm.xlu1 %6029, %v5881_v30   ;;  %v4421_v22 = vmin.f32 %v4419_v41, %v4420_v39 }
 0x458   : > { %5290 = vperm.xlu0 %6030, %v9070_v53   ;;  %v6105_v53 = vld [vmem:[%s6604_s28 + $0x48] sm:$0xff] }
 0x459   : > { %v4565_v8 = vmin.f32 %v4562_v4, %v4563_v16  ;;  %v5164_v31 = vmin.f32 %v9219_v48, %v9241_v10  ;;  %v4617_v54 = vpop.permute.xlu1 %4616  ;;  %v4698_v46 = vadd.f32 %v6105_v53, %v10201_v49 }
 0x45a   : > { %v4690_v38 = vadd.f32 %v4617_v54, %v10200_v9  ;;  %v5133_v42 = vpop.permute.xlu0 %5132 }
 0x45b   : > { %v4566_v32 = vmin.f32 %v4564_v27, %v4565_v8  ;;  %v9251_v30 = vadd.f32 %v5133_v42, %v8957_v56  ;;  %5127 = vperm.xlu1 %6029, %v5851_v43   ;;  %v5855_v27 = vld [vmem:[%s6602_s21 + $0x108] sm:$0xff]  ;;  %v4422_v8 = vrot.slane %v4421_v22, 1 }
 0x45c   : > { %v4706_v25 = vmin.f32 %v4690_v38, %v4694_v47  ;;  %5429 = vperm.xlu0 %6030, %v5851_v43  }
 0x45d   : > { %v4567_v29 = vrot.slane %v4566_v32, 4  ;;  %v4622_v2 = vpop.permute.xlu1 %4621  ;;  %v4423_v41 = vmin.f32 %v4421_v22, %v4422_v8 }
 0x45e   : > { %v4710_v57 = vmin.f32 %v4706_v25, %v4698_v46  ;;  %v5858_v46 = vld [vmem:[%s6602_s21 + $0x120] sm:$0xff] }
 0x45f   : > { %v4568_v19 = vmin.f32 %v4566_v32, %v4567_v29  ;;  %5137 = vperm.xlu1 %6029, %v5853_v26   ;;  %v9260_v15 = vpop.permute.xlu0 %2798  ;;  %v4574_v32 = vld [vmem:[#allocation2 + $0xc] sm:$0x1]  ;;  %v10204_v29 = vld [vmem:[#allocation81_spill] sm:$0xff] }
 0x460   : > { %5439 = vperm.xlu0 %6030, %v5853_v26   ;;  %v4714_v4 = vmin.f32 %v4710_v57, %v4702_v50  ;;  %v5860_v50 = vld [vmem:[%s6602_s21 + $0x130] sm:$0xff]  ;;  %v6107_v57 = vld [vmem:[%s6604_s28] sm:$0xff] }
 0x461   : > { %v4569_v16 = vrot.slane %v4568_v19, 2  ;;  %v4632_v43 = vpop.permute.xlu1 %4631 }
 0x462   : > { %v4693_v6 = vadd.f32 %v4632_v43, %v10204_v29 }
 0x463   : > { %v4570_v54 = vmin.f32 %v4568_v19, %v4569_v16  ;;  %6031 = vset.pattern.permute.xlu1 %v10203_v33  ;;  %v2814_v47 = vpop.permute.xlu0 %2813  ;;  %v10205_v19 = vld [vmem:[#allocation61_spill] sm:$0xff] }
 0x464   : > { %5220 = vperm.xlu1 %6031, %v5855_v27   ;;  %v4689_v22 = vadd.f32 %v6107_v57, %v10205_v19  ;;  %v10206_v16 = vld [vmem:[#allocation77_spill] sm:$0xff] }
 0x465   : > { %v4571_v9 = vrot.slane %v4570_v54, 1  ;;  %v4642_v38 = vpop.permute.xlu1 %4641 }
 0x467   : > { %v4572_v42 = vmin.f32 %v4570_v54, %v4571_v9  ;;  %v2824_v39 = vpop.permute.xlu0 %2823  ;;  %v10207_v54 = vld [vmem:[#allocation79_spill] sm:$0xff] }
 0x468   : > { %5225 = vperm.xlu1 %6031, %v9019_v55   ;;  %v4705_v55 = vmin.f32 %v4689_v22, %v4693_v6  ;;  %v4695_v33 = vadd.f32 %v4642_v38, %v10207_v54  ;;  %v5870_v6 = vld [vmem:[%s6602_s21 + $0x180] sm:$0xff] }
 0x469   : > { %v4573_v53 = vmin.f32 %v4423_v41, %v4572_v42  ;;  %v4652_v49 = vpop.permute.xlu1 %4651  ;;  %v5862_v41 = vld [vmem:[%s6602_s21 + $0x140] sm:$0xff]  ;;  %v4691_v42 = vadd.f32 %v4622_v2, %v9056_v60 }
 0x46a   : > { %v4697_v27 = vadd.f32 %v4652_v49, %v10206_v16  ;;  %v10211_v54 = vld [vmem:[#allocation37_spill] sm:$0xff] }
 0x46b   : > { %v4575_v25 = vmin.f32 %v4574_v32, %v4573_v53  ;;  %v2834_v26 = vpop.permute.xlu0 %2833  ;;  %v10208_v32 = vld [vmem:[#allocation75_spill] sm:$0xff]  ;;  %v4707_v29 = vmin.f32 %v4691_v42, %v4695_v33 }
 0x46c   : > { %5235 = vperm.xlu1 %6031, %v5858_v46   ;;  %v4709_v43 = vmin.f32 %v4705_v55, %v4697_v27  ;;  %v5872_v55 = vld [vmem:[%s6602_s21 + $0x190] sm:$0xff] }
 0x46d   : > { %4576 = vst [vmem:[#allocation2 + $0xc] sm:$0x1] %v4575_v25  ;;  %v4662_v17 = vpop.permute.xlu1 %4661 }
 0x46e   : > { %v4699_v53 = vadd.f32 %v4662_v17, %v10208_v32  ;;  %v10210_v17 = vld [vmem:[#allocation62_spill] sm:$0xff]  ;;  %v2879_v32 = vadd.f32 %v9080_v63, %v2814_v47 }
 0x46f   : > { %v2844_v8 = vpop.permute.xlu0 %2843 }
 0x470   : > { %5245 = vperm.xlu1 %6031, %v5860_v50   ;;  %v4711_v19 = vmin.f32 %v4707_v29, %v4699_v53  ;;  %v10209_v50 = vld [vmem:[#allocation85_spill] sm:$0xff]  ;;  %v2883_v53 = vadd.f32 %v9065_v58, %v2834_v26  ;;  %v5876_v29 = vld [vmem:[%s6602_s21 + $0x1b0] sm:$0xff]  ;;  %v2881_v26 = vadd.f32 %v9083_v20, %v2824_v39 }
 0x471   : > { %v4672_v9 = vpop.permute.xlu1 %4671  ;;  %v5878_v39 = vld [vmem:[%s6602_s21 + $0x1c0] sm:$0xff] }
 0x472   : > { %v4701_v46 = vadd.f32 %v4672_v9, %v8815_v21  ;;  %v10212_v21 = vmin.f32 %v10210_v17, %v10211_v54  ;;  %v10215_v54 = vld [vmem:[#allocation116_spill] sm:$0xff] }
 0x473   : > { %v2854_v25 = vpop.permute.xlu0 %2853 }
 0x474   : > { %v4713_v57 = vmin.f32 %v4709_v43, %v4701_v46  ;;  %5255 = vperm.xlu1 %6031, %v5862_v41   ;;  %v5874_v43 = vld [vmem:[%s6602_s21 + $0x1a0] sm:$0xff] }
 0x475   : > { %v4682_v49 = vpop.permute.xlu1 %4681 }
 0x476   : > { %v4717_v38 = vmin.f32 %v4713_v57, %v4714_v4  ;;  %v4703_v22 = vadd.f32 %v4682_v49, %v10209_v50  ;;  %v2876_v49 = vadd.f32 %v9061_v13, %v9260_v15  ;;  %v5864_v50 = vld [vmem:[%s6602_s21 + $0x150] sm:$0xff] }
 0x477   : > { %v2864_v16 = vpop.permute.xlu0 %2863  ;;  %v10217_v15 = vld [vmem:[#allocation83_spill] sm:$0xff] }
 0x478   : > { %v4715_v2 = vmin.f32 %v4711_v19, %v4703_v22  ;;  %5364 = vperm.xlu1 %6031, %v5870_v6   ;;  %v2895_v6 = vmin.f32 %v2879_v32, %v2883_v53  ;;  %v2887_v19 = vadd.f32 %v9086_v45, %v2854_v25  ;;  %v10213_v22 = vld [vmem:[#allocation122_spill] sm:$0xff] }
 0x479   : > { %v4761_v27 = vpop.permute.xlu1 %4760  ;;  %v10218_v32 = vld [vmem:[#allocation126_spill] sm:$0xff] }
 0x47a   : > { %v4718_v9 = vmin.f32 %v4715_v2, %v10212_v21  ;;  %v2882_v2 = vadd.f32 %v9089_v44, %v10213_v22  ;;  %v2877_v21 = vadd.f32 %v9117_v5, %v10215_v54  ;;  %v2886_v25 = vadd.f32 %v9125_v0, %v10218_v32  ;;  %v10220_v54 = vld [vmem:[#allocation130_spill] sm:$0xff] }
 0x47b   : > { %v2874_v33 = vpop.permute.xlu0 %2873  ;;  %v2899_v44 = vmin.f32 %v2895_v6, %v2887_v19  ;;  %v2884_v5 = vadd.f32 %v9133_v37, %v10219_v24  ;;  %v2889_v0 = vadd.f32 %v9122_v14, %v2864_v16 }
 0x47c   : > { %v9282_v42 = vmin.f32 %v4717_v38, %v4718_v9  ;;  %5374 = vperm.xlu1 %6031, %v5872_v55   ;;  %v10214_v55 = vld [vmem:[#allocation120_spill] sm:$0xff]  ;;  %v10216_v9 = vld [vmem:[#allocation118_spill] sm:$0xff] }
 0x47d   : > { %v4771_v41 = vpop.permute.xlu1 %4770  ;;  %v2880_v47 = vadd.f32 %v9097_v36, %v10214_v55  ;;  %v2891_v36 = vadd.f32 %v9105_v12, %v2874_v33  ;;  %v5880_v33 = vld [vmem:[%s6602_s21 + $0x1d0] sm:$0xff] }
 0x47f   : > { %v2953_v4 = vpop.permute.xlu0 %2952  ;;  %v2892_v53 = vmin.f32 %v2876_v49, %v2880_v47  ;;  %v2903_v19 = vmin.f32 %v2899_v44, %v2891_v36  ;;  %v10223_v36 = vld [vmem:[#allocation99_spill] sm:$0xff] }
 0x480   : > { %5384 = vperm.xlu1 %6031, %v5874_v43   ;;  %v2878_v43 = vadd.f32 %v10217_v15, %v10216_v9  ;;  %v2890_v9 = vadd.f32 %v9141_v23, %v10220_v54  ;;  %v2893_v15 = vmin.f32 %v2877_v21, %v2881_v26  ;;  %v4838_v23 = vadd.f32 %v4761_v27, %v8892_v34 }
 0x481   : > { %v4781_v46 = vpop.permute.xlu1 %4780  ;;  %v3026_v16 = vadd.f32 %v9158_v18, %v2953_v4 }
 0x482   : > { %v2894_v55 = vmin.f32 %v2878_v43, %v2882_v2  ;;  %v4842_v32 = vadd.f32 %v4781_v46, %v8860_v7  ;;  %v10221_v2 = vld [vmem:[#allocation128_spill] sm:$0xff]  ;;  %v10222_v46 = vld [vmem:[#allocation50_spill] sm:$0xff] }
 0x483   : > { %v2963_v57 = vpop.permute.xlu0 %2962  ;;  %v2888_v37 = vadd.f32 %v9149_v3, %v10221_v2 }
 0x484   : > { %5394 = vperm.xlu1 %6031, %v5876_v29   ;;  %v2885_v29 = vadd.f32 %v9102_v62, %v2844_v8  ;;  %v2898_v49 = vmin.f32 %v2894_v55, %v2886_v25  ;;  %v2896_v8 = vmin.f32 %v2892_v53, %v2884_v5  ;;  %v3028_v44 = vadd.f32 %v10222_v46, %v2963_v57  ;;  %v5866_v55 = vld [vmem:[%s6602_s21 + $0x160] sm:$0xff]  ;;  %v10225_v57 = vld [vmem:[#allocation100_spill] sm:$0xff] }
 0x485   : > { %v4791_v38 = vpop.permute.xlu1 %4790  ;;  %v10224_v5 = vld [vmem:[#allocation89_spill] sm:$0xff]  ;;  %v4854_v27 = vmin.f32 %v4838_v23, %v4842_v32 }
 0x486   : > { %v2897_v6 = vmin.f32 %v2893_v15, %v2885_v29  ;;  %v2902_v24 = vmin.f32 %v2898_v49, %v2890_v9  ;;  %v4844_v21 = vadd.f32 %v4791_v38, %v8895_v35  ;;  %v2900_v29 = vmin.f32 %v2896_v8, %v2888_v37  ;;  %v10229_v8 = vld [vmem:[#allocation49_spill] sm:$0xff] }
 0x487   : > { %v2973_v17 = vpop.permute.xlu0 %2972  ;;  %v4840_v34 = vadd.f32 %v4771_v41, %v10224_v5  ;;  %v4720_v38 = vrot.slane %v9282_v42, 4  ;;  %v10228_v41 = vld [vmem:[#allocation136_spill] sm:$0xff] }
 0x488   : > { %5265 = vperm.xlu1 %6031, %v5864_v50   ;;  %v2901_v43 = vmin.f32 %v2897_v6, %v2889_v0  ;;  %v3030_v25 = vadd.f32 %v9155_v61, %v2973_v17  ;;  %v2905_v7 = vmin.f32 %v2902_v24, %v2903_v19  ;;  %v10226_v0 = vld [vmem:[#allocation135_spill] sm:$0xff]  ;;  %v3031_v6 = vadd.f32 %v10229_v8, %v10228_v41  ;;  %v10230_v24 = vld [vmem:[#allocation132_spill] sm:$0xff] }
 0x489   : > { %v4801_v22 = vpop.permute.xlu1 %4800  ;;  %v10242_v8 = vld [vmem:[#allocation39_spill] sm:$0xff] }
 0x48a   : > { %v4846_v53 = vadd.f32 %v4801_v22, %v8898_v1  ;;  %v2904_v1 = vmin.f32 %v2900_v29, %v2901_v43  ;;  %v4856_v22 = vmin.f32 %v4840_v34, %v4844_v21  ;;  %v3042_v54 = vmin.f32 %v3026_v16, %v3030_v25  ;;  %v10231_v43 = vld [vmem:[#allocation36_spill] sm:$0xff]  ;;  %v10233_v16 = vld [vmem:[#allocation43_spill] sm:$0xff]  ;;  %v10234_v25 = vld [vmem:[#allocation137_spill] sm:$0xff] }
 0x48b   : > { %v2983_v50 = vpop.permute.xlu0 %2982  ;;  %v3025_v23 = vadd.f32 %v10231_v43, %v10230_v24  ;;  %v6108_v43 = vld [vmem:[%s6604_s28 + $0x20] sm:$0xff] }
 0x48c   : > { %5404 = vperm.xlu1 %6031, %v5878_v39   ;;  %v3032_v3 = vadd.f32 %v10223_v36, %v2983_v50  ;;  %v4858_v9 = vmin.f32 %v4854_v27, %v4846_v53  ;;  %v10227_v50 = vld [vmem:[#allocation70_spill] sm:$0xff]  ;;  %v2906_v19 = vmin.f32 %v2904_v1, %v2905_v7 }
 0x48d   : > { %v4811_v47 = vpop.permute.xlu1 %4810  ;;  %v3029_v49 = vadd.f32 %v10227_v50, %v10226_v0  ;;  %v10235_v53 = vld [vmem:[#allocation74_spill] sm:$0xff]  ;;  %v5882_v50 = vld [vmem:[%s6602_s21 + $0x1e0] sm:$0xff] }
 0x48e   : > { %v4848_v4 = vadd.f32 %v4811_v47, %v8920_v51  ;;  %v3044_v51 = vmin.f32 %v3028_v44, %v3032_v3  ;;  %v3033_v29 = vadd.f32 %v10235_v53, %v10234_v25  ;;  %v10236_v7 = vld [vmem:[#allocation138_spill] sm:$0xff]  ;;  %v10237_v44 = vld [vmem:[#allocation72_spill] sm:$0xff]  ;;  %v2907_v41 = vrot.slane %v2906_v19, 4 }
 0x48f   : > { %v2993_v26 = vpop.permute.xlu0 %2992  ;;  %v3035_v3 = vadd.f32 %v10237_v44, %v10236_v7  ;;  %v3041_v27 = vmin.f32 %v3025_v23, %v3029_v49  ;;  %v10239_v1 = vld [vmem:[#allocation78_spill] sm:$0xff]  ;;  %v10248_v23 = vld [vmem:[#allocation95_spill] sm:$0xff]  ;;  %v6109_v7 = vld [vmem:[%s6604_s28 + $0x40] sm:$0xff] }
 0x490   : > { %5414 = vperm.xlu1 %6031, %v5880_v33   ;;  %v3034_v15 = vadd.f32 %v10225_v57, %v2993_v26  ;;  %v4860_v33 = vmin.f32 %v4856_v22, %v4848_v4  ;;  %v10232_v26 = vld [vmem:[#allocation134_spill] sm:$0xff]  ;;  %v10240_v22 = vld [vmem:[#allocation140_spill] sm:$0xff]  ;;  %v10249_v44 = vld [vmem:[#allocation91_spill] sm:$0xff] }
 0x491   : > { %v4821_v39 = vpop.permute.xlu1 %4820  ;;  %v3027_v21 = vadd.f32 %v10233_v16, %v10232_v26  ;;  %v4995_v26 = vadd.f32 %v6108_v43, %v10248_v23  ;;  %v6113_v43 = vld [vmem:[%s6604_s28 + $0x70] sm:$0xff]  ;;  %v10253_v23 = vld [vmem:[#allocation98_spill] sm:$0xff] }
 0x492   : > { %v4850_v35 = vadd.f32 %v4821_v39, %v8923_v40  ;;  %v5868_v40 = vld [vmem:[%s6602_s21 + $0x170] sm:$0xff]  ;;  %v3046_v5 = vmin.f32 %v3042_v54, %v3034_v15  ;;  %v10246_v15 = vld [vmem:[#allocation52_spill] sm:$0xff] }
 0x493   : > { %v3003_v17 = vpop.permute.xlu0 %3002  ;;  %v3043_v4 = vmin.f32 %v3027_v21, %v3031_v6  ;;  %v10245_v54 = vld [vmem:[#allocation35_spill] sm:$0xff]  ;;  %v3045_v6 = vmin.f32 %v3041_v27, %v3033_v29  ;;  %v2908_v27 = vmin.f32 %v2906_v19, %v2907_v41  ;;  %v10252_v19 = vld [vmem:[#allocation93_spill] sm:$0xff] }
 0x494   : > { %5275 = vperm.xlu1 %6031, %v5866_v55   ;;  %v4862_v32 = vmin.f32 %v4858_v9, %v4850_v35  ;;  %v3036_v2 = vadd.f32 %v9192_v11, %v3003_v17  ;;  %v4721_v55 = vmin.f32 %v9282_v42, %v4720_v38  ;;  %v10238_v35 = vld [vmem:[#allocation139_spill] sm:$0xff]  ;;  %v10241_v9 = vld [vmem:[#allocation21_spill] sm:$0xff] }
 0x495   : > { %v4831_v47 = vpop.permute.xlu1 %4830  ;;  %v3037_v17 = vadd.f32 %v10239_v1, %v10238_v35  ;;  %v3039_v0 = vadd.f32 %v10241_v9, %v10240_v22  ;;  %v6110_v22 = vld [vmem:[%s6604_s28 + $0x30] sm:$0xff]  ;;  %v10250_v9 = vld [vmem:[#allocation96_spill] sm:$0xff] }
 0x496   : > { %v4852_v37 = vadd.f32 %v4831_v47, %v8957_v56  ;;  %v10243_v47 = vld [vmem:[#allocation63_spill] sm:$0xff]  ;;  %v3048_v38 = vmin.f32 %v3044_v51, %v3036_v2  ;;  %v4722_v25 = vrot.slane %v4721_v55, 2 }
 0x497   : > { %v3013_v39 = vpop.permute.xlu0 %3012  ;;  %v10244_v24 = vmin.f32 %v10242_v8, %v10243_v47  ;;  %v3049_v2 = vmin.f32 %v3045_v6, %v3037_v17  ;;  %v4997_v8 = vadd.f32 %v6110_v22, %v10250_v9  ;;  %v6111_v47 = vld [vmem:[%s6604_s28 + $0x60] sm:$0xff] }
 0x498   : > { %v4864_v34 = vmin.f32 %v4860_v33, %v4852_v37  ;;  %v3038_v56 = vadd.f32 %v9195_v52, %v3013_v39  ;;  %5285 = vperm.xlu1 %6031, %v5868_v40   ;;  %v10247_v33 = vmin.f32 %v10245_v54, %v10246_v15  ;;  %v3047_v37 = vmin.f32 %v3043_v4, %v3035_v3  ;;  %v5884_v3 = vld [vmem:[%s6602_s21 + $0x1f0] sm:$0xff] }
 0x499   : > { %v4866_v42 = vmin.f32 %v4862_v32, %v10244_v24  ;;  %v4999_v39 = vadd.f32 %v6109_v7, %v10249_v44  ;;  %v4723_v24 = vmin.f32 %v4721_v55, %v4722_v25 }
 0x49a   : > { %v4867_v40 = vmin.f32 %v4864_v34, %v10247_v33  ;;  %v4914_v49 = vpop.permute.xlu1 %4913  ;;  %v3050_v32 = vmin.f32 %v3046_v5, %v3038_v56  ;;  %v3051_v34 = vmin.f32 %v3047_v37, %v3039_v0  ;;  %v10251_v5 = vld [vmem:[#allocation97_spill] sm:$0xff]  ;;  %v6112_v0 = vld [vmem:[%s6604_s28 + $0x50] sm:$0xff] }
 0x49b   : > { %v4991_v16 = vadd.f32 %v4914_v49, %v9061_v13  ;;  %v3023_v21 = vpop.permute.xlu0 %3022  ;;  %v5003_v56 = vadd.f32 %v6111_v47, %v10251_v5  ;;  %v5001_v41 = vadd.f32 %v6112_v0, %v10252_v19  ;;  %v3063_v5 = vld [vmem:[#allocation2 + $0x7] sm:$0x1] }
 0x49c   : > { %v4868_v53 = vmin.f32 %v4866_v42, %v4867_v40  ;;  %v3040_v51 = vadd.f32 %v9233_v59, %v3023_v21  ;;  %5424 = vperm.xlu1 %6031, %v5882_v50   ;;  %v3053_v54 = vmin.f32 %v3049_v2, %v3050_v32  ;;  %v2909_v40 = vrot.slane %v2908_v27, 2 }
 0x49d   : > { %v5007_v29 = vmin.f32 %v4991_v16, %v4995_v26  ;;  %v5005_v26 = vadd.f32 %v6113_v43, %v10253_v23  ;;  %v4724_v21 = vrot.slane %v4723_v24, 1 }
 0x49e   : > { %v4869_v4 = vrot.slane %v4868_v53, 4  ;;  %v3052_v35 = vmin.f32 %v3048_v38, %v3040_v51  ;;  %v4924_v1 = vpop.permute.xlu1 %4923 }
 0x49f   : > { %v5011_v50 = vmin.f32 %v5007_v29, %v4999_v39  ;;  %v4993_v17 = vadd.f32 %v4924_v1, %v9056_v60  ;;  %v4725_v7 = vmin.f32 %v4723_v24, %v4724_v21  ;;  %v4876_v29 = vld [vmem:[#allocation2 + $0xd] sm:$0x1]  ;;  %v6114_v24 = vld [vmem:[%s6604_s28 + $0x8] sm:$0xff] }
 0x4a0   : > { %v4870_v42 = vmin.f32 %v4868_v53, %v4869_v4  ;;  %v3054_v15 = vmin.f32 %v3051_v34, %v3052_v35  ;;  %5434 = vperm.xlu1 %6031, %v5884_v3   ;;  %v2910_v53 = vmin.f32 %v2908_v27, %v2909_v40 }
 0x4a1   : > { %v5009_v38 = vmin.f32 %v4993_v17, %v4997_v8  ;;  %v5015_v33 = vmin.f32 %v5011_v50, %v5003_v56 }
 0x4a2   : > { %v4871_v49 = vrot.slane %v4870_v42, 2  ;;  %v3055_v6 = vmin.f32 %v3053_v54, %v3054_v15  ;;  %v4929_v37 = vpop.permute.xlu1 %4928  ;;  %v2911_v3 = vrot.slane %v2910_v53, 1 }
 0x4a3   : > { %v5013_v16 = vmin.f32 %v5009_v38, %v5001_v41  ;;  %v4994_v38 = vadd.f32 %v4929_v37, %v9080_v63 }
 0x4a4   : > { %v4872_v60 = vmin.f32 %v4870_v42, %v4871_v49  ;;  %v3056_v55 = vrot.slane %v3055_v6, 4  ;;  %v2912_v9 = vmin.f32 %v2910_v53, %v2911_v3  ;;  %v10254_v42 = vld [vmem:[#allocation87_spill] sm:$0xff] }
 0x4a5   : > { %v5017_v25 = vmin.f32 %v5013_v16, %v5005_v26  ;;  %v4992_v54 = vadd.f32 %v6114_v24, %v10254_v42 }
 0x4a6   : > { %v4873_v32 = vrot.slane %v4872_v60, 1  ;;  %v3057_v51 = vmin.f32 %v3055_v6, %v3056_v55  ;;  %v4939_v2 = vpop.permute.xlu1 %4938  ;;  %v9381_v55 = vpop.permute.xlu0 %5215 }
 0x4a7   : > { %v4996_v56 = vadd.f32 %v4939_v2, %v9083_v20 }
 0x4a8   : > { %v4874_v44 = vmin.f32 %v4872_v60, %v4873_v32  ;;  %v3058_v39 = vrot.slane %v3057_v51, 2 }
 0x4a9   : > { %v5008_v0 = vmin.f32 %v4992_v54, %v4996_v56 }
 0x4aa   : > { %v4875_v34 = vmin.f32 %v4725_v7, %v4874_v44  ;;  %v3059_v4 = vmin.f32 %v3057_v51, %v3058_v39  ;;  %v4949_v35 = vpop.permute.xlu1 %4948  ;;  %v9383_v37 = vpop.permute.xlu0 %5230 }
 0x4ab   : > { %v4998_v19 = vadd.f32 %v4949_v35, %v9065_v58 }
 0x4ac   : > { %v4877_v1 = vmin.f32 %v4876_v29, %v4875_v34  ;;  %v3060_v22 = vrot.slane %v3059_v4, 1 }
 0x4ad   : > { %v5010_v43 = vmin.f32 %v4994_v38, %v4998_v19 }
 0x4ae   : > { %4878 = vst [vmem:[#allocation2 + $0xd] sm:$0x1] %v4877_v1  ;;  %v3061_v8 = vmin.f32 %v3059_v4, %v3060_v22  ;;  %v4959_v47 = vpop.permute.xlu1 %4958  ;;  %v9385_v39 = vpop.permute.xlu0 %5240 }
 0x4af   : > { %v5000_v15 = vadd.f32 %v4959_v47, %v9102_v62 }
 0x4b0   : > { %v3062_v27 = vmin.f32 %v2912_v9, %v3061_v8 }
 0x4b1   : > { %v5012_v40 = vmin.f32 %v5008_v0, %v5000_v15 }
 0x4b2   : > { %v3064_v50 = vmin.f32 %v3063_v5, %v3062_v27  ;;  %v4969_v17 = vpop.permute.xlu1 %4968  ;;  %v9387_v34 = vpop.permute.xlu0 %5250 }
 0x4b3   : > { %v5002_v49 = vadd.f32 %v4969_v17, %v9086_v45 }
 0x4b4   : > { %3065 = vst [vmem:[#allocation2 + $0x7] sm:$0x1] %v3064_v50 }
 0x4b5   : > { %v5014_v16 = vmin.f32 %v5010_v43, %v5002_v49 }
 0x4b6   : > { %v4979_v41 = vpop.permute.xlu1 %4978  ;;  %v9390_v35 = vpop.permute.xlu0 %5260 }
 0x4b7   : > { %v5004_v6 = vadd.f32 %v4979_v41, %v9122_v14 }
 0x4b9   : > { %v5016_v23 = vmin.f32 %v5012_v40, %v5004_v6  ;;  %v10255_v40 = vmin.f32 %v9237_v28, %v9251_v30 }
 0x4ba   : > { %v4989_v26 = vpop.permute.xlu1 %4988  ;;  %v9398_v42 = vpop.permute.xlu0 %5369 }
 0x4bb   : > { %v5019_v21 = vmin.f32 %v5015_v33, %v5016_v23  ;;  %v5006_v60 = vadd.f32 %v4989_v26, %v9105_v12 }
 0x4bd   : > { %v5018_v53 = vmin.f32 %v5014_v16, %v5006_v60 }
 0x4be   : > { %v5068_v32 = vpop.permute.xlu1 %5067  ;;  %v9407_v43 = vpop.permute.xlu0 %5379 }
 0x4bf   : > { %v5020_v51 = vmin.f32 %v5017_v25, %v5018_v53  ;;  %v5141_v1 = vadd.f32 %v5068_v32, %v9158_v18 }
 0x4c1   : > { %v5021_v2 = vmin.f32 %v5019_v21, %v5020_v51 }
 0x4c2   : > { %v5078_v7 = vpop.permute.xlu1 %5077  ;;  %v9409_v32 = vpop.permute.xlu0 %5389 }
 0x4c3   : > { %v5143_v8 = vadd.f32 %v5078_v7, %v10222_v46  ;;  %v5022_v56 = vrot.slane %v5021_v2, 4 }
 0x4c5   : > { %v5023_v19 = vmin.f32 %v5021_v2, %v5022_v56 }
 0x4c6   : > { %v5088_v44 = vpop.permute.xlu1 %5087  ;;  %v9411_v28 = vpop.permute.xlu0 %5399 }
 0x4c7   : > { %v5145_v33 = vadd.f32 %v5088_v44, %v9155_v61  ;;  %v5024_v23 = vrot.slane %v5023_v19, 2 }
 0x4c9   : > { %v5157_v47 = vmin.f32 %v5141_v1, %v5145_v33  ;;  %v5025_v60 = vmin.f32 %v5023_v19, %v5024_v23  ;;  %v5205_v19 = vld [vmem:[%s6604_s28 + $0x40] sm:$0xff]  ;;  %v5199_v23 = vld [vmem:[%s6604_s28 + $0x10] sm:$0xff] }
 0x4ca   : > { %v5098_v29 = vpop.permute.xlu1 %5097  ;;  %v5271_v1 = vpop.permute.xlu0 %5270 }
 0x4cb   : > { %v5147_v25 = vadd.f32 %v5098_v29, %v10223_v36  ;;  %v5026_v7 = vrot.slane %v5025_v60, 1  ;;  %v5178_v29 = vld [vmem:[#allocation2 + $0xe] sm:$0x1] }
 0x4cd   : > { %v5159_v50 = vmin.f32 %v5143_v8, %v5147_v25  ;;  %v5027_v44 = vmin.f32 %v5025_v60, %v5026_v7  ;;  %v5293_v60 = vadd.f32 %v9381_v55, %v9061_v13  ;;  %v5296_v7 = vadd.f32 %v9383_v37, %v9080_v63  ;;  %v5211_v63 = vld [vmem:[%s6604_s28 + $0x70] sm:$0xff] }
 0x4ce   : > { %v5108_v3 = vpop.permute.xlu1 %5107 }
 0x4cf   : > { %v5149_v22 = vadd.f32 %v5108_v3, %v10225_v57 }
 0x4d1   : > { %v5161_v17 = vmin.f32 %v5157_v47, %v5149_v22 }
 0x4d2   : > { %v5118_v4 = vpop.permute.xlu1 %5117 }
 0x4d3   : > { %v5151_v5 = vadd.f32 %v5118_v4, %v9192_v11 }
 0x4d5   : > { %v5163_v54 = vmin.f32 %v5159_v50, %v5151_v5  ;;  %v5198_v50 = vld [vmem:[%s6604_s28 + $0x8] sm:$0xff] }
 0x4d6   : > { %v5128_v9 = vpop.permute.xlu1 %5127 }
 0x4d7   : > { %v5153_v27 = vadd.f32 %v5128_v9, %v9195_v52  ;;  %v9415_v9 = vpop.permute.xlu0 %5409 }
 0x4d9   : > { %v5165_v15 = vmin.f32 %v5161_v17, %v5153_v27 }
 0x4da   : > { %v5138_v24 = vpop.permute.xlu1 %5137 }
 0x4db   : > { %v5155_v0 = vadd.f32 %v5138_v24, %v9233_v59  ;;  %v5168_v38 = vmin.f32 %v5164_v31, %v5165_v15  ;;  %v5420_v47 = vpop.permute.xlu0 %5419  ;;  %v5201_v24 = vld [vmem:[%s6604_s28 + $0x20] sm:$0xff] }
 0x4dd   : > { %v5167_v41 = vmin.f32 %v5163_v54, %v5155_v0  ;;  %v5203_v0 = vld [vmem:[%s6604_s28 + $0x30] sm:$0xff] }
 0x4df   : > { %v5169_v49 = vmin.f32 %v10255_v40, %v5167_v41  ;;  %v5221_v6 = vpop.permute.xlu1 %5220  ;;  %v5281_v56 = vpop.permute.xlu0 %5280 }
 0x4e0   : > { %v5294_v54 = vadd.f32 %v5221_v6, %v5198_v50 }
 0x4e1   : > { %v5170_v26 = vmin.f32 %v5168_v38, %v5169_v49  ;;  %v5298_v38 = vadd.f32 %v9385_v39, %v9083_v20  ;;  %v5300_v49 = vadd.f32 %v9387_v34, %v9065_v58  ;;  %v5302_v20 = vadd.f32 %v9390_v35, %v9102_v62  ;;  %v5346_v62 = vld [vmem:[%s6604_s28 + $0x80] sm:$0xff] }
 0x4e2   : > { %v5304_v39 = vadd.f32 %v5271_v1, %v9086_v45  ;;  %v5443_v45 = vadd.f32 %v9398_v42, %v9158_v18  ;;  %v5445_v35 = vadd.f32 %v9407_v43, %v10222_v46  ;;  %v5449_v18 = vadd.f32 %v9411_v28, %v10223_v36  ;;  %v5356_v43 = vld [vmem:[%s6604_s28 + $0xd0] sm:$0xff] }
 0x4e3   : > { %v5171_v16 = vrot.slane %v5170_v26, 4  ;;  %v5226_v21 = vpop.permute.xlu1 %5225  ;;  %v5291_v15 = vpop.permute.xlu0 %5290  ;;  %v5310_v6 = vmin.f32 %v5294_v54, %v5298_v38 }
 0x4e4   : > { %v5295_v34 = vadd.f32 %v5226_v21, %v5199_v23 }
 0x4e5   : > { %v5172_v53 = vmin.f32 %v5170_v26, %v5171_v16  ;;  %v5207_v26 = vld [vmem:[%s6604_s28 + $0x50] sm:$0xff]  ;;  %v5209_v16 = vld [vmem:[%s6604_s28 + $0x60] sm:$0xff]  ;;  %v5314_v37 = vmin.f32 %v5310_v6, %v5302_v20 }
 0x4e7   : > { %v5173_v51 = vrot.slane %v5172_v53, 2  ;;  %v5236_v2 = vpop.permute.xlu1 %5235 }
 0x4e8   : > { %v5297_v40 = vadd.f32 %v5236_v2, %v5201_v24 }
 0x4e9   : > { %v5174_v48 = vmin.f32 %v5172_v53, %v5173_v51 }
 0x4ea   : > { %v5309_v2 = vmin.f32 %v5293_v60, %v5297_v40  ;;  %v5360_v60 = vld [vmem:[%s6604_s28 + $0xf0] sm:$0xff] }
 0x4eb   : > { %v5175_v10 = vrot.slane %v5174_v48, 1  ;;  %v5246_v31 = vpop.permute.xlu1 %5245 }
 0x4ec   : > { %v5299_v53 = vadd.f32 %v5246_v31, %v5203_v0  ;;  %v5308_v31 = vadd.f32 %v5291_v15, %v9105_v12  ;;  %v5306_v12 = vadd.f32 %v5281_v56, %v9122_v14  ;;  %v5447_v15 = vadd.f32 %v9409_v32, %v9155_v61  ;;  %v5358_v0 = vld [vmem:[%s6604_s28 + $0xe0] sm:$0xff] }
 0x4ed   : > { %v5176_v30 = vmin.f32 %v5174_v48, %v5175_v10  ;;  %v5350_v48 = vld [vmem:[%s6604_s28 + $0xa0] sm:$0xff]  ;;  %v5312_v10 = vmin.f32 %v5296_v7, %v5300_v49  ;;  %v5451_v14 = vadd.f32 %v9415_v9, %v10225_v57  ;;  %v5453_v56 = vadd.f32 %v5420_v47, %v9192_v11 }
 0x4ee   : > { %v5318_v38 = vmin.f32 %v5314_v37, %v5306_v12 }
 0x4ef   : > { %v5177_v3 = vmin.f32 %v5027_v44, %v5176_v30  ;;  %v5256_v4 = vpop.permute.xlu1 %5255  ;;  %v5430_v44 = vpop.permute.xlu0 %5429  ;;  %v5311_v30 = vmin.f32 %v5295_v34, %v5299_v53  ;;  %v5316_v21 = vmin.f32 %v5312_v10, %v5304_v39 }
 0x4f0   : > { %v5301_v51 = vadd.f32 %v5256_v4, %v5205_v19  ;;  %v5352_v4 = vld [vmem:[%s6604_s28 + $0xb0] sm:$0xff] }
 0x4f1   : > { %v5179_v33 = vmin.f32 %v5178_v29, %v5177_v3  ;;  %v5320_v42 = vmin.f32 %v5316_v21, %v5308_v31 }
 0x4f2   : > { %v5313_v29 = vmin.f32 %v5309_v2, %v5301_v51 }
 0x4f3   : > { %5180 = vst [vmem:[#allocation2 + $0xe] sm:$0x1] %v5179_v33  ;;  %v5365_v25 = vpop.permute.xlu1 %5364  ;;  %v5354_v33 = vld [vmem:[%s6604_s28 + $0xc0] sm:$0xff]  ;;  %v5440_v49 = vpop.permute.xlu0 %5439 }
 0x4f4   : > { %v5442_v46 = vadd.f32 %v5365_v25, %v5346_v62  ;;  %v5457_v6 = vadd.f32 %v5440_v49, %v9233_v59 }
 0x4f7   : > { %v9413_v22 = vpop.permute.xlu1 %5374 }
 0x4fb   : > { %v5385_v8 = vpop.permute.xlu1 %5384 }
 0x4fc   : > { %v5446_v3 = vadd.f32 %v5385_v8, %v5350_v48 }
 0x4fe   : > { %v5458_v32 = vmin.f32 %v5442_v46, %v5446_v3 }
 0x4ff   : > { %v5395_v5 = vpop.permute.xlu1 %5394 }
 0x500   : > { %v5448_v8 = vadd.f32 %v5395_v5, %v5352_v4  ;;  %v5461_v5 = vmin.f32 %v5445_v35, %v5449_v18 }
 0x502   : > { %v5465_v47 = vmin.f32 %v5461_v5, %v5453_v56 }
 0x503   : > { %v5266_v27 = vpop.permute.xlu1 %5265 }
 0x504   : > { %v5303_v13 = vadd.f32 %v5266_v27, %v5207_v26  ;;  %v5348_v27 = vld [vmem:[%s6604_s28 + $0x90] sm:$0xff] }
 0x505   : > { %v5444_v61 = vadd.f32 %v9413_v22, %v5348_v27 }
 0x506   : > { %v5315_v50 = vmin.f32 %v5311_v30, %v5303_v13 }
 0x507   : > { %v5405_v17 = vpop.permute.xlu1 %5404  ;;  %v5460_v53 = vmin.f32 %v5444_v61, %v5448_v8 }
 0x508   : > { %v5450_v19 = vadd.f32 %v5405_v17, %v5354_v33  ;;  %v5455_v17 = vadd.f32 %v5430_v44, %v9195_v52 }
 0x50a   : > { %v5462_v57 = vmin.f32 %v5458_v32, %v5450_v19 }
 0x50b   : > { %v5415_v41 = vpop.permute.xlu1 %5414 }
 0x50c   : > { %v5452_v36 = vadd.f32 %v5415_v41, %v5356_v43 }
 0x50e   : > { %v5464_v22 = vmin.f32 %v5460_v53, %v5452_v36 }
 0x50f   : > { %v5276_v58 = vpop.permute.xlu1 %5275 }
 0x510   : > { %v5305_v55 = vadd.f32 %v5276_v58, %v5209_v16  ;;  %v5459_v16 = vmin.f32 %v5443_v45, %v5447_v15  ;;  %v5469_v58 = vmin.f32 %v5465_v47, %v5457_v6  ;;  %v5480_v45 = vld [vmem:[#allocation2 + $0xf] sm:$0x1] }
 0x512   : > { %v5317_v24 = vmin.f32 %v5313_v29, %v5305_v55  ;;  %v5463_v11 = vmin.f32 %v5459_v16, %v5451_v14 }
 0x513   : > { %v5286_v1 = vpop.permute.xlu1 %5285 }
 0x514   : > { %v5307_v54 = vadd.f32 %v5286_v1, %v5211_v63  ;;  %v5321_v28 = vmin.f32 %v5317_v24, %v5318_v38  ;;  %v5467_v39 = vmin.f32 %v5463_v11, %v5455_v17 }
 0x516   : > { %v5319_v40 = vmin.f32 %v5315_v50, %v5307_v54 }
 0x517   : > { %v5425_v23 = vpop.permute.xlu1 %5424 }
 0x518   : > { %v5322_v25 = vmin.f32 %v5319_v40, %v5320_v42  ;;  %v5454_v26 = vadd.f32 %v5425_v23, %v5358_v0 }
 0x51a   : > { %v5323_v9 = vmin.f32 %v5321_v28, %v5322_v25  ;;  %v5466_v20 = vmin.f32 %v5462_v57, %v5454_v26 }
 0x51b   : > { %v5435_v51 = vpop.permute.xlu1 %5434 }
 0x51c   : > { %v5324_v7 = vrot.slane %v5323_v9, 4  ;;  %v5456_v41 = vadd.f32 %v5435_v51, %v5360_v60  ;;  %v5470_v48 = vmin.f32 %v5466_v20, %v5467_v39 }
 0x51e   : > { %v5325_v34 = vmin.f32 %v5323_v9, %v5324_v7  ;;  %v5468_v2 = vmin.f32 %v5464_v22, %v5456_v41 }
 0x520   : > { %v5471_v13 = vmin.f32 %v5468_v2, %v5469_v58  ;;  %v5326_v52 = vrot.slane %v5325_v34, 2 }
 0x522   : > { %v5472_v55 = vmin.f32 %v5470_v48, %v5471_v13  ;;  %v5327_v59 = vmin.f32 %v5325_v34, %v5326_v52 }
 0x524   : > { %v5473_v10 = vrot.slane %v5472_v55, 4  ;;  %v5328_v63 = vrot.slane %v5327_v59, 1 }
 0x526   : > { %v5474_v31 = vmin.f32 %v5472_v55, %v5473_v10  ;;  %v5329_v29 = vmin.f32 %v5327_v59, %v5328_v63 }
 0x528   : > { %v5475_v44 = vrot.slane %v5474_v31, 2 }
 0x52a   : > { %v5476_v37 = vmin.f32 %v5474_v31, %v5475_v44 }
 0x52c   : > { %v5477_v30 = vrot.slane %v5476_v37, 1 }
 0x52e   : > { %v5478_v62 = vmin.f32 %v5476_v37, %v5477_v30 }
 0x530   : > { %v5479_v35 = vmin.f32 %v5329_v29, %v5478_v62  ;;  %5486 = sbr.rel (%p5886_p7) target bundleno = 1341 (0x53d), region = 112 }
 0x532   : > { %v5481_v21 = vmin.f32 %v5480_v45, %v5479_v35 }
 0x534   : > { %5482 = vst [vmem:[#allocation2 + $0xf] sm:$0x1] %v5481_v21 }
 0x535   : > { %v5487_v3 = vld [vmem:[#allocation2] sm:$0xff] }
 0x536   : > { %5489 = vst [vmem:[%s6606_s22] sm:$0xff] %v5487_v3 }
 0x53b   : > { %v5488_v4 = vld [vmem:[#allocation2 + $0x8] sm:$0xff] }
 0x53c   : > { %5490 = vst [vmem:[%s6606_s22 + $0x8] sm:$0xff] %v5488_v4 }
 0x53d PF: > { %s5888_s12 = sshll.u32 %s6227_s17, 7  ;;  %s5507_s0 = sshll.u32 %s6606_s22, 4  ;;  %s9470_s0 = int_to_ptr.vmem [resolvable:$true] %s5507_s0 }
 0x53e   : > { %s9467_s3 = scalar_lea.hbm %s9539_s2, %s5888_s12  ;;  %s9474_s16 = scalar_lea.sflag [#allocation6], %s637_s26 }
 0x53f   : > { %s6115_s4 = scalar_lea.vmem %s9470_s0, 256  ;;  %s6250_s17 = smov [#allocation5]  }
 0x540   : > { %p6116_p8 = scmp.ne.s32.totalorder %s9470_s0, %s6115_s4  ;;  %s6119_s27 = sshll.u32 %s6250_s17, 4  ;;  %s6120_s27 = int_to_ptr.vmem [resolvable:$false] %s6119_s27 }
 0x541   : > { %s6121_s5 = scalar_lea.vmem %s6120_s27, 512  ;;  %p6122_p11 = scmp.lt.s32.totalorder %s9470_s0, %s6120_s27 }
 0x542   : > { %p6117_p9 = pnand %p6116_p8, %p6371_p0  ;;  %p6123_p12 = scmp.lt.s32.totalorder %s6121_s5, %s6115_s4 }
 0x544   : > { %p6118_p10 = pneg %p6117_p9  ;;  %p6124_p13 = por %p6123_p12, %p6122_p11 }
 0x546   : > { %p6125_p2 = pnand %p6124_p13, %p6118_p10 }
 0x548   : > { %6128 = shalt.err (!%p6125_p2)
}
 0x549   : > { %s6129_s26 = scalar_lea.hbm %s9467_s3, 256  ;;  %s6133_s28 = scalar_lea.hbm %s9539_s2, 512 }
 0x54a   : > { %p6130_p3 = scmp.ne.s32.totalorder %s9467_s3, %s6129_s26  ;;  %p6134_p6 = scmp.lt.s32.totalorder %s9467_s3, %s9539_s2 }
 0x54b   : > { %p6135_p7 = scmp.lt.s32.totalorder %s6133_s28, %s6129_s26 }
 0x54c   : > { %p6131_p4 = pnand %p6130_p3, %p6371_p0 }
 0x54d   : > { %p6136_p8 = por %p6135_p7, %p6134_p6 }
 0x54e   : > { %p6132_p5 = pneg %p6131_p4 }
 0x550   : > { %p6137_p9 = pnand %p6136_p8, %p6132_p5 }
 0x552   : > { %6140 = shalt.err (!%p6137_p9)
}
 0x553   : > { %s6251_s14 = smov 128   ;;  %s6252_s30 = smov 256  }
 0x554   : > { %s6253_s4 = smov 8  }
 0x555   : > { %5893 = dma.vmem_to_hbm [thread:$0]  (%p6371_p0), %s9470_s0, 256, %s9467_s3, %s9474_s16, %s6251_s14, %s6252_s30, %s6253_s4  }
 0x556 PF: > { %p5899_p10 = scmp.ge.s32.totalorder %s6239_s20, 2  ;;  %s5522_s17 = sand.u32 1, %s6195_s9  }
 0x557   : > { %s5523_s27 = scalar_lea.sflag [#allocation6], %s5522_s17 }
 0x558   : > { %p5896_p11 = pnand %p5899_p10, %p6375_p1 }
 0x55a   : > { %p5897_p12 = pneg %p5896_p11 }
 0x55c   : > { %6190 = dma.done.wait (%p5897_p12), %s5523_s27, 256  }
 0x55d   : > { %6192 = vsyncadd (%p5897_p12), %s5523_s27, 4294967040  ;;  %s15_s20 = sadd.s32 1, %s6239_s20   ;;  %s10256_s8 = sld [smem:[#allocation8_spill]] }
 0x55e   : > { %p12_p13 = scmp.ge.s32.totalorder %s15_s20, 6   ;;  %s10257_s9 = smov %s6199_s10 }
 0x55f   : > { %s10258_s10 = smov %s6203_s11  ;;  %s10259_s11 = smov %s6362_s6 }
 0x560   : > { %s10260_s12 = smov %s6211_s13  ;;  %s10261_s13 = smov %s6365_s7 }
 0x561   : > { %s10262_s14 = smov %s6219_s15  ;;  %s10263_s15 = smov %s6352_s29 }
 0x562   : > { %s10264_s16 = smov %s6231_s18  ;;  %s10265_s17 = smov %s6235_s19 }
 0x563   : > { %s10266_s18 = smov %s10269_s23  ;;  %s10267_s19 = smov %s10256_s8 }
 0x564   :  { %14 = sbr.rel (!%p12_p13) target bundleno = 9 (0x9), region = 161 }
 0x569   :  { %5528 = vsyncpa [#allocation6], 1 }
 0x56a   :  { %5530 = vsyncpa [#allocation6 + $0x1], 1 }

</bundles_post_ra>
